<compile_context>
chip_gen: v6e
topology: v6e:2x2x1
jax: 0.10.0
libtpu: 0.0.40
codegen_flags: <defaults>
</compile_context>

<pallas_src>
import functools

import numpy as np
import jax
import jax.numpy as jnp
from jax import lax
from jax.experimental import pallas as pl
from jax.experimental.pallas import tpu as pltpu

EPS = 1e-5          # nn.BatchNorm2d default eps
KH = KW = 3         # fixed 3x3 kernel (padding=1, stride=1), as in the module defaults


# ---------------------------------------------------------------------------
# Kernels
# ---------------------------------------------------------------------------
def _conv_tile(x_ref, w_ref, p_ref):
    """Conv of one halo'd row tile as a single fused MXU matmul.

    x_ref: (1, Cin, TH+2, W+2)   halo'd input tile (compute dtype)
    w_ref: (Cout, KH*KW*Cin)     flattened conv weights (compute dtype)
    p_ref: (KH*KW*Cin, TH*W)     VMEM scratch holding the patch matrix
    returns (Cout, TH*W) float32 (channel-major -> lane-dense output).
    """
    cin = x_ref.shape[1]
    th = x_ref.shape[2] - 2
    w = x_ref.shape[3] - 2

    # im2col in VMEM: 9 shifted windows, copied row-by-row so no value reshapes
    # are needed inside the kernel (only static slices of matching shape).
    for kh in range(KH):
        for kw in range(KW):
            base = (kh * KW + kw) * cin
            for i in range(th):
                p_ref[base:base + cin, i * w:(i + 1) * w] = (
                    x_ref[0, :, kh + i, kw:kw + w]
                )

    # One (Cout, K) @ (K, TH*W) matmul, K = KH*KW*Cin, f32 accumulation on the MXU.
    return jnp.dot(w_ref[...], p_ref[...], preferred_element_type=jnp.float32)


def _stats_kernel(x_ref, w_ref, sum_ref, sq_ref, p_ref):
    """Pass 1: conv tile + per-tile per-channel sum and sum-of-squares (f32)."""
    y = _conv_tile(x_ref, w_ref, p_ref)                  # (Cout, TH*W) f32
    sum_ref[0] = jnp.sum(y, axis=1, keepdims=True)       # (Cout, 1)
    sq_ref[0] = jnp.sum(y * y, axis=1, keepdims=True)    # (Cout, 1)


def _apply_kernel(x_ref, w_ref, scale_ref, shift_ref, o_ref, p_ref):
    """Pass 2: conv tile + folded BatchNorm (scale/shift) + ReLU, all f32 elementwise."""
    y = _conv_tile(x_ref, w_ref, p_ref)                  # (Cout, TH*W) f32
    o_ref[0] = jnp.maximum(y * scale_ref[...] + shift_ref[...], 0.0)


# ---------------------------------------------------------------------------
# Wrapper
# ---------------------------------------------------------------------------
def _pick_row_tile(H, W, cin, cout, itemsize, max_rows=32,
                   budget_bytes=2 * 1024 * 1024):
    """Largest row tile TH with H % TH == 0 and a lane-aligned flattened width
    (TH*W % 128 == 0, or TH == H), keeping the per-tile VMEM footprint small
    enough for v7x's 64 MiB VMEM with double-buffered pipelining."""
    best = None
    for th in range(1, min(H, max_rows) + 1):
        if H % th:
            continue
        if th != H and (th * W) % 128 != 0:
            continue
        tile_bytes = (2 * cin * (th + 2) * (W + 2) * itemsize    # halo input (dbl buf)
                      + KH * KW * cin * th * W * itemsize        # patch scratch
                      + 3 * cout * th * W * 4)                   # conv result + out (dbl buf)
        if tile_bytes <= budget_bytes:
            best = th
    return best if best is not None else H


def conv_block_pallas(x, w, b, gamma, beta, *,
                      compute_dtype=jnp.float32, row_tile=None):
    """ConvBlock.forward (train-mode BN) for NCHW float32 input.

    Note: the conv bias `b` cancels exactly under training-mode BatchNorm
    (BN(conv(x)+b) == BN'(conv(x))), so it is folded away — the output is
    numerically equivalent to conv+bias -> BN -> ReLU.
    """
    N, Cin, H, W = x.shape
    Cout = w.shape[0]
    assert w.shape == (Cout, Cin, KH, KW)
    del b  # provably has no effect on the train-mode forward output

    itemsize = jnp.dtype(compute_dtype).itemsize
    TH = row_tile if row_tile is not None else _pick_row_tile(H, W, Cin, Cout, itemsize)
    assert H % TH == 0, "row_tile must divide H"
    assert TH == H or (TH * W) % 128 == 0, "row_tile*W must be a multiple of 128"
    R = H // TH
    NT = N * R
    THp, Wp = TH + 2, W + 2
    Kdim = KH * KW * Cin
    Mtile = TH * W

    # --- wrapper-side prep (NCHW is already channel-major: no NHWC transposes) ---
    x_pad = jnp.pad(x.astype(compute_dtype), ((0, 0), (0, 0), (1, 1), (1, 1)))
    # Halo'd row windows (N*R, Cin, TH+2, W+2): only ~(TH+2)/TH of the input is
    # materialized (vs 9x for HBM im2col); XLA fuses the pad + slice/stack.
    xh = jnp.stack([x_pad[:, :, r * TH:r * TH + THp, :] for r in range(R)], axis=1)
    xh = xh.reshape(NT, Cin, THp, Wp)
    # (Cout, Cin, KH, KW) -> (Cout, KH*KW*Cin), matching the patch-row ordering.
    w2 = jnp.transpose(w, (0, 2, 3, 1)).reshape(Cout, Kdim).astype(compute_dtype)

    x_spec = pl.BlockSpec((1, Cin, THp, Wp), lambda n, r: (n * R + r, 0, 0, 0))
    w_spec = pl.BlockSpec((Cout, Kdim), lambda n, r: (0, 0))
    col_spec = pl.BlockSpec((1, Cout, 1), lambda n, r: (n * R + r, 0, 0))
    p_scratch = pltpu.VMEM((Kdim, Mtile), compute_dtype)
    cparams = pltpu.CompilerParams(
        dimension_semantics=("parallel", "parallel"))   # both axes independent (v7x 2 TCs)

    # --- pass 1: conv + per-tile partial sums for the batch statistics ---
    tsum, tsq = pl.pallas_call(
        _stats_kernel,
        grid=(N, R),
        in_specs=[x_spec, w_spec],
        out_specs=(col_spec, col_spec),
        out_shape=(jax.ShapeDtypeStruct((NT, Cout, 1), jnp.float32),
                   jax.ShapeDtypeStruct((NT, Cout, 1), jnp.float32)),
        scratch_shapes=[p_scratch],
        compiler_params=cparams,
    )(xh, w2)

    # --- fold train-mode BN (biased variance) into per-channel scale/shift (f32) ---
    m_total = float(N * H * W)
    s = jnp.sum(tsum, axis=0, dtype=jnp.float32)                 # (Cout, 1)
    ss = jnp.sum(tsq, axis=0, dtype=jnp.float32)                 # (Cout, 1)
    mean = s / m_total
    # E[y^2] - E[y]^2 in f32; fine at these sizes (a shifted/Welford accumulation
    # would be preferable for very large activations).
    var = jnp.maximum(ss / m_total - mean * mean, 0.0)
    scale = gamma.astype(jnp.float32).reshape(Cout, 1) * lax.rsqrt(var + EPS)
    shift = beta.astype(jnp.float32).reshape(Cout, 1) - mean * scale

    # --- pass 2: conv again (cheaper than round-tripping the activation) + BN + ReLU ---
    out = pl.pallas_call(
        _apply_kernel,
        grid=(N, R),
        in_specs=[x_spec, w_spec,
                  pl.BlockSpec((Cout, 1), lambda n, r: (0, 0)),
                  pl.BlockSpec((Cout, 1), lambda n, r: (0, 0))],
        out_specs=pl.BlockSpec((1, Cout, Mtile), lambda n, r: (n, 0, r)),
        out_shape=jax.ShapeDtypeStruct((N, Cout, H * W), jnp.float32),
        scratch_shapes=[p_scratch],
        compiler_params=cparams,
    )(xh, w2, scale, shift)

    # (N, Cout, H*W) -> NCHW is a free reshape (no transpose needed).
    return out.reshape(N, Cout, H, W)


conv_block_pallas = jax.jit(conv_block_pallas,
                            static_argnames=("compute_dtype", "row_tile"))


# TODO(synk): BatchNorm running_mean/running_var updates (a training-time side effect)
# and eval-mode BN are not implemented; this matches the train-mode forward only.
def conv_block_reference(x_nchw, w_oihw, bias, gamma, beta):
    """Pure-JAX reference matching PyTorch ConvBlock.forward (train-mode BN)."""
    y = lax.conv_general_dilated(
        x_nchw, w_oihw, window_strides=(1, 1), padding=((1, 1), (1, 1)),
        dimension_numbers=("NCHW", "OIHW", "NCHW"))
    y = y + bias[None, :, None, None]
    mean = jnp.mean(y, axis=(0, 2, 3), keepdims=True)
    var = jnp.mean((y - mean) ** 2, axis=(0, 2, 3), keepdims=True)  # biased
    y = (y - mean) * lax.rsqrt(var + EPS)
    y = y * gamma[None, :, None, None] + beta[None, :, None, None]
    return jnp.maximum(y, 0.0)


if __name__ == "__main__":
    N, Cin, H, W = 2, 4, 16, 16
    Cout = 8

    key = jax.random.PRNGKey(0)
    kx, kw_, kb, kg, kbe = jax.random.split(key, 5)
    x = jax.random.normal(kx, (N, Cin, H, W), dtype=jnp.float32)
    w = jax.random.normal(kw_, (Cout, Cin, KH, KW), dtype=jnp.float32) * 0.1
    b = jax.random.normal(kb, (Cout,), dtype=jnp.float32) * 0.1
    gamma = 1.0 + 0.1 * jax.random.normal(kg, (Cout,), dtype=jnp.float32)
    beta = 0.1 * jax.random.normal(kbe, (Cout,), dtype=jnp.float32)

    ref = jax.block_until_ready(conv_block_reference(x, w, b, gamma, beta))

    # f32 path (row_tile=8 -> 2 row tiles per image, exercising the tiled stats
    # reduction); checked tightly against the reference.
    out = jax.block_until_ready(conv_block_pallas(x, w, b, gamma, beta, row_tile=8))
    np.testing.assert_allclose(np.asarray(out), np.asarray(ref), rtol=1e-4, atol=1e-4)

    # bf16 matmul-input path (recommended on v6e/v7x; BN/ReLU stay f32): run it and
    # sanity-check loosely (bf16 conv inputs, f32 accumulation).
    out_bf16 = jax.block_until_ready(
        conv_block_pallas(x, w, b, gamma, beta, compute_dtype=jnp.bfloat16))
    np.testing.assert_allclose(np.asarray(out_bf16), np.asarray(ref), rtol=0.1, atol=0.25)

    print("KERNEL_OK")
</pallas_src>

<mosaic_0001>
module attributes {stable_mosaic.version = 11 : i64} {
  func.func @_stats_kernel(%arg0: i32, %arg1: i32, %arg2: memref<1x4x10x18xf32, #tpu.memory_space<vmem>>, %arg3: memref<8x36xf32, #tpu.memory_space<vmem>>, %arg4: memref<1x8x1xf32, #tpu.memory_space<vmem>>, %arg5: memref<1x8x1xf32, #tpu.memory_space<vmem>>, %arg6: memref<36x128xf32, #tpu.memory_space<vmem>>) attributes {dimension_semantics = [#tpu.dimension_semantics<parallel>, #tpu.dimension_semantics<parallel>], iteration_bounds = array<i64: 2, 2>, scalar_prefetch = 0 : i64, scratch_operands = 1 : i64, tpu.core_type = #tpu.core_type<tc>, window_params = [{transform_indices = @transform_0, window_bounds = array<i64: 1, 4, 10, 18>}, {pipeline_mode = #tpu.pipeline_mode<synchronous>, transform_indices = @transform_1, window_bounds = array<i64: 8, 36>}, {transform_indices = @transform_2, window_bounds = array<i64: 1, 8, 1>}, {transform_indices = @transform_3, window_bounds = array<i64: 1, 8, 1>}]} {
    %c0 = arith.constant 0 : index
    %c0_0 = arith.constant 0 : index
    %c0_1 = arith.constant 0 : index
    %c0_2 = arith.constant 0 : index
    %0 = vector.load %arg2[%c0, %c0_0, %c0_1, %c0_2] : memref<1x4x10x18xf32, #tpu.memory_space<vmem>>, vector<1x4x1x16xf32>
    %1 = vector.shape_cast %0 : vector<1x4x1x16xf32> to vector<4x16xf32>
    %c0_3 = arith.constant 0 : index
    %c0_4 = arith.constant 0 : index
    %2 = vector.load %arg6[%c0_3, %c0_4] : memref<36x128xf32, #tpu.memory_space<vmem>>, vector<4x16xf32>
    tpu.vector_store %arg6[%c0_3, %c0_4], %1 {strides = array<i32>} : memref<36x128xf32, #tpu.memory_space<vmem>>, vector<4x16xf32>,
    %c0_5 = arith.constant 0 : index
    %c0_6 = arith.constant 0 : index
    %c1 = arith.constant 1 : index
    %c0_7 = arith.constant 0 : index
    %3 = vector.load %arg2[%c0_5, %c0_6, %c1, %c0_7] : memref<1x4x10x18xf32, #tpu.memory_space<vmem>>, vector<1x4x1x16xf32>
    %4 = vector.shape_cast %3 : vector<1x4x1x16xf32> to vector<4x16xf32>
    %c0_8 = arith.constant 0 : index
    %c16 = arith.constant 16 : index
    %5 = vector.load %arg6[%c0_8, %c16] : memref<36x128xf32, #tpu.memory_space<vmem>>, vector<4x16xf32>
    tpu.vector_store %arg6[%c0_8, %c16], %4 {strides = array<i32>} : memref<36x128xf32, #tpu.memory_space<vmem>>, vector<4x16xf32>,
    %c0_9 = arith.constant 0 : index
    %c0_10 = arith.constant 0 : index
    %c2 = arith.constant 2 : index
    %c0_11 = arith.constant 0 : index
    %6 = vector.load %arg2[%c0_9, %c0_10, %c2, %c0_11] : memref<1x4x10x18xf32, #tpu.memory_space<vmem>>, vector<1x4x1x16xf32>
    %7 = vector.shape_cast %6 : vector<1x4x1x16xf32> to vector<4x16xf32>
    %c0_12 = arith.constant 0 : index
    %c32 = arith.constant 32 : index
    %8 = vector.load %arg6[%c0_12, %c32] : memref<36x128xf32, #tpu.memory_space<vmem>>, vector<4x16xf32>
    tpu.vector_store %arg6[%c0_12, %c32], %7 {strides = array<i32>} : memref<36x128xf32, #tpu.memory_space<vmem>>, vector<4x16xf32>,
    %c0_13 = arith.constant 0 : index
    %c0_14 = arith.constant 0 : index
    %c3 = arith.constant 3 : index
    %c0_15 = arith.constant 0 : index
    %9 = vector.load %arg2[%c0_13, %c0_14, %c3, %c0_15] : memref<1x4x10x18xf32, #tpu.memory_space<vmem>>, vector<1x4x1x16xf32>
    %10 = vector.shape_cast %9 : vector<1x4x1x16xf32> to vector<4x16xf32>
    %c0_16 = arith.constant 0 : index
    %c48 = arith.constant 48 : index
    %11 = vector.load %arg6[%c0_16, %c48] : memref<36x128xf32, #tpu.memory_space<vmem>>, vector<4x16xf32>
    tpu.vector_store %arg6[%c0_16, %c48], %10 {strides = array<i32>} : memref<36x128xf32, #tpu.memory_space<vmem>>, vector<4x16xf32>,
    %c0_17 = arith.constant 0 : index
    %c0_18 = arith.constant 0 : index
    %c4 = arith.constant 4 : index
    %c0_19 = arith.constant 0 : index
    %12 = vector.load %arg2[%c0_17, %c0_18, %c4, %c0_19] : memref<1x4x10x18xf32, #tpu.memory_space<vmem>>, vector<1x4x1x16xf32>
    %13 = vector.shape_cast %12 : vector<1x4x1x16xf32> to vector<4x16xf32>
    %c0_20 = arith.constant 0 : index
    %c64 = arith.constant 64 : index
    %14 = vector.load %arg6[%c0_20, %c64] : memref<36x128xf32, #tpu.memory_space<vmem>>, vector<4x16xf32>
    tpu.vector_store %arg6[%c0_20, %c64], %13 {strides = array<i32>} : memref<36x128xf32, #tpu.memory_space<vmem>>, vector<4x16xf32>,
    %c0_21 = arith.constant 0 : index
    %c0_22 = arith.constant 0 : index
    %c5 = arith.constant 5 : index
    %c0_23 = arith.constant 0 : index
    %15 = vector.load %arg2[%c0_21, %c0_22, %c5, %c0_23] : memref<1x4x10x18xf32, #tpu.memory_space<vmem>>, vector<1x4x1x16xf32>
    %16 = vector.shape_cast %15 : vector<1x4x1x16xf32> to vector<4x16xf32>
    %c0_24 = arith.constant 0 : index
    %c80 = arith.constant 80 : index
    %17 = vector.load %arg6[%c0_24, %c80] : memref<36x128xf32, #tpu.memory_space<vmem>>, vector<4x16xf32>
    tpu.vector_store %arg6[%c0_24, %c80], %16 {strides = array<i32>} : memref<36x128xf32, #tpu.memory_space<vmem>>, vector<4x16xf32>,
    %c0_25 = arith.constant 0 : index
    %c0_26 = arith.constant 0 : index
    %c6 = arith.constant 6 : index
    %c0_27 = arith.constant 0 : index
    %18 = vector.load %arg2[%c0_25, %c0_26, %c6, %c0_27] : memref<1x4x10x18xf32, #tpu.memory_space<vmem>>, vector<1x4x1x16xf32>
    %19 = vector.shape_cast %18 : vector<1x4x1x16xf32> to vector<4x16xf32>
    %c0_28 = arith.constant 0 : index
    %c96 = arith.constant 96 : index
    %20 = vector.load %arg6[%c0_28, %c96] : memref<36x128xf32, #tpu.memory_space<vmem>>, vector<4x16xf32>
    tpu.vector_store %arg6[%c0_28, %c96], %19 {strides = array<i32>} : memref<36x128xf32, #tpu.memory_space<vmem>>, vector<4x16xf32>,
    %c0_29 = arith.constant 0 : index
    %c0_30 = arith.constant 0 : index
    %c7 = arith.constant 7 : index
    %c0_31 = arith.constant 0 : index
    %21 = vector.load %arg2[%c0_29, %c0_30, %c7, %c0_31] : memref<1x4x10x18xf32, #tpu.memory_space<vmem>>, vector<1x4x1x16xf32>
    %22 = vector.shape_cast %21 : vector<1x4x1x16xf32> to vector<4x16xf32>
    %c0_32 = arith.constant 0 : index
    %c112 = arith.constant 112 : index
    %23 = vector.load %arg6[%c0_32, %c112] : memref<36x128xf32, #tpu.memory_space<vmem>>, vector<4x16xf32>
    tpu.vector_store %arg6[%c0_32, %c112], %22 {strides = array<i32>} : memref<36x128xf32, #tpu.memory_space<vmem>>, vector<4x16xf32>,
    %c0_33 = arith.constant 0 : index
    %c0_34 = arith.constant 0 : index
    %c0_35 = arith.constant 0 : index
    %c1_36 = arith.constant 1 : index
    %24 = vector.load %arg2[%c0_33, %c0_34, %c0_35, %c1_36] : memref<1x4x10x18xf32, #tpu.memory_space<vmem>>, vector<1x4x1x16xf32>
    %25 = vector.shape_cast %24 : vector<1x4x1x16xf32> to vector<4x16xf32>
    %c4_37 = arith.constant 4 : index
    %c0_38 = arith.constant 0 : index
    %26 = vector.load %arg6[%c4_37, %c0_38] : memref<36x128xf32, #tpu.memory_space<vmem>>, vector<4x16xf32>
    tpu.vector_store %arg6[%c4_37, %c0_38], %25 {strides = array<i32>} : memref<36x128xf32, #tpu.memory_space<vmem>>, vector<4x16xf32>,
    %c0_39 = arith.constant 0 : index
    %c0_40 = arith.constant 0 : index
    %c1_41 = arith.constant 1 : index
    %c1_42 = arith.constant 1 : index
    %27 = vector.load %arg2[%c0_39, %c0_40, %c1_41, %c1_42] : memref<1x4x10x18xf32, #tpu.memory_space<vmem>>, vector<1x4x1x16xf32>
    %28 = vector.shape_cast %27 : vector<1x4x1x16xf32> to vector<4x16xf32>
    %c4_43 = arith.constant 4 : index
    %c16_44 = arith.constant 16 : index
    %29 = vector.load %arg6[%c4_43, %c16_44] : memref<36x128xf32, #tpu.memory_space<vmem>>, vector<4x16xf32>
    tpu.vector_store %arg6[%c4_43, %c16_44], %28 {strides = array<i32>} : memref<36x128xf32, #tpu.memory_space<vmem>>, vector<4x16xf32>,
    %c0_45 = arith.constant 0 : index
    %c0_46 = arith.constant 0 : index
    %c2_47 = arith.constant 2 : index
    %c1_48 = arith.constant 1 : index
    %30 = vector.load %arg2[%c0_45, %c0_46, %c2_47, %c1_48] : memref<1x4x10x18xf32, #tpu.memory_space<vmem>>, vector<1x4x1x16xf32>
    %31 = vector.shape_cast %30 : vector<1x4x1x16xf32> to vector<4x16xf32>
    %c4_49 = arith.constant 4 : index
    %c32_50 = arith.constant 32 : index
    %32 = vector.load %arg6[%c4_49, %c32_50] : memref<36x128xf32, #tpu.memory_space<vmem>>, vector<4x16xf32>
    tpu.vector_store %arg6[%c4_49, %c32_50], %31 {strides = array<i32>} : memref<36x128xf32, #tpu.memory_space<vmem>>, vector<4x16xf32>,
    %c0_51 = arith.constant 0 : index
    %c0_52 = arith.constant 0 : index
    %c3_53 = arith.constant 3 : index
    %c1_54 = arith.constant 1 : index
    %33 = vector.load %arg2[%c0_51, %c0_52, %c3_53, %c1_54] : memref<1x4x10x18xf32, #tpu.memory_space<vmem>>, vector<1x4x1x16xf32>
    %34 = vector.shape_cast %33 : vector<1x4x1x16xf32> to vector<4x16xf32>
    %c4_55 = arith.constant 4 : index
    %c48_56 = arith.constant 48 : index
    %35 = vector.load %arg6[%c4_55, %c48_56] : memref<36x128xf32, #tpu.memory_space<vmem>>, vector<4x16xf32>
    tpu.vector_store %arg6[%c4_55, %c48_56], %34 {strides = array<i32>} : memref<36x128xf32, #tpu.memory_space<vmem>>, vector<4x16xf32>,
    %c0_57 = arith.constant 0 : index
    %c0_58 = arith.constant 0 : index
    %c4_59 = arith.constant 4 : index
    %c1_60 = arith.constant 1 : index
    %36 = vector.load %arg2[%c0_57, %c0_58, %c4_59, %c1_60] : memref<1x4x10x18xf32, #tpu.memory_space<vmem>>, vector<1x4x1x16xf32>
    %37 = vector.shape_cast %36 : vector<1x4x1x16xf32> to vector<4x16xf32>
    %c4_61 = arith.constant 4 : index
    %c64_62 = arith.constant 64 : index
    %38 = vector.load %arg6[%c4_61, %c64_62] : memref<36x128xf32, #tpu.memory_space<vmem>>, vector<4x16xf32>
    tpu.vector_store %arg6[%c4_61, %c64_62], %37 {strides = array<i32>} : memref<36x128xf32, #tpu.memory_space<vmem>>, vector<4x16xf32>,
    %c0_63 = arith.constant 0 : index
    %c0_64 = arith.constant 0 : index
    %c5_65 = arith.constant 5 : index
    %c1_66 = arith.constant 1 : index
    %39 = vector.load %arg2[%c0_63, %c0_64, %c5_65, %c1_66] : memref<1x4x10x18xf32, #tpu.memory_space<vmem>>, vector<1x4x1x16xf32>
    %40 = vector.shape_cast %39 : vector<1x4x1x16xf32> to vector<4x16xf32>
    %c4_67 = arith.constant 4 : index
    %c80_68 = arith.constant 80 : index
    %41 = vector.load %arg6[%c4_67, %c80_68] : memref<36x128xf32, #tpu.memory_space<vmem>>, vector<4x16xf32>
    tpu.vector_store %arg6[%c4_67, %c80_68], %40 {strides = array<i32>} : memref<36x128xf32, #tpu.memory_space<vmem>>, vector<4x16xf32>,
    %c0_69 = arith.constant 0 : index
    %c0_70 = arith.constant 0 : index
    %c6_71 = arith.constant 6 : index
    %c1_72 = arith.constant 1 : index
    %42 = vector.load %arg2[%c0_69, %c0_70, %c6_71, %c1_72] : memref<1x4x10x18xf32, #tpu.memory_space<vmem>>, vector<1x4x1x16xf32>
    %43 = vector.shape_cast %42 : vector<1x4x1x16xf32> to vector<4x16xf32>
    %c4_73 = arith.constant 4 : index
    %c96_74 = arith.constant 96 : index
    %44 = vector.load %arg6[%c4_73, %c96_74] : memref<36x128xf32, #tpu.memory_space<vmem>>, vector<4x16xf32>
    tpu.vector_store %arg6[%c4_73, %c96_74], %43 {strides = array<i32>} : memref<36x128xf32, #tpu.memory_space<vmem>>, vector<4x16xf32>,
    %c0_75 = arith.constant 0 : index
    %c0_76 = arith.constant 0 : index
    %c7_77 = arith.constant 7 : index
    %c1_78 = arith.constant 1 : index
    %45 = vector.load %arg2[%c0_75, %c0_76, %c7_77, %c1_78] : memref<1x4x10x18xf32, #tpu.memory_space<vmem>>, vector<1x4x1x16xf32>
    %46 = vector.shape_cast %45 : vector<1x4x1x16xf32> to vector<4x16xf32>
    %c4_79 = arith.constant 4 : index
    %c112_80 = arith.constant 112 : index
    %47 = vector.load %arg6[%c4_79, %c112_80] : memref<36x128xf32, #tpu.memory_space<vmem>>, vector<4x16xf32>
    tpu.vector_store %arg6[%c4_79, %c112_80], %46 {strides = array<i32>} : memref<36x128xf32, #tpu.memory_space<vmem>>, vector<4x16xf32>,
    %c0_81 = arith.constant 0 : index
    %c0_82 = arith.constant 0 : index
    %c0_83 = arith.constant 0 : index
    %c2_84 = arith.constant 2 : index
    %48 = vector.load %arg2[%c0_81, %c0_82, %c0_83, %c2_84] : memref<1x4x10x18xf32, #tpu.memory_space<vmem>>, vector<1x4x1x16xf32>
    %49 = vector.shape_cast %48 : vector<1x4x1x16xf32> to vector<4x16xf32>
    %c8 = arith.constant 8 : index
    %c0_85 = arith.constant 0 : index
    %50 = vector.load %arg6[%c8, %c0_85] : memref<36x128xf32, #tpu.memory_space<vmem>>, vector<4x16xf32>
    tpu.vector_store %arg6[%c8, %c0_85], %49 {strides = array<i32>} : memref<36x128xf32, #tpu.memory_space<vmem>>, vector<4x16xf32>,
    %c0_86 = arith.constant 0 : index
    %c0_87 = arith.constant 0 : index
    %c1_88 = arith.constant 1 : index
    %c2_89 = arith.constant 2 : index
    %51 = vector.load %arg2[%c0_86, %c0_87, %c1_88, %c2_89] : memref<1x4x10x18xf32, #tpu.memory_space<vmem>>, vector<1x4x1x16xf32>
    %52 = vector.shape_cast %51 : vector<1x4x1x16xf32> to vector<4x16xf32>
    %c8_90 = arith.constant 8 : index
    %c16_91 = arith.constant 16 : index
    %53 = vector.load %arg6[%c8_90, %c16_91] : memref<36x128xf32, #tpu.memory_space<vmem>>, vector<4x16xf32>
    tpu.vector_store %arg6[%c8_90, %c16_91], %52 {strides = array<i32>} : memref<36x128xf32, #tpu.memory_space<vmem>>, vector<4x16xf32>,
    %c0_92 = arith.constant 0 : index
    %c0_93 = arith.constant 0 : index
    %c2_94 = arith.constant 2 : index
    %c2_95 = arith.constant 2 : index
    %54 = vector.load %arg2[%c0_92, %c0_93, %c2_94, %c2_95] : memref<1x4x10x18xf32, #tpu.memory_space<vmem>>, vector<1x4x1x16xf32>
    %55 = vector.shape_cast %54 : vector<1x4x1x16xf32> to vector<4x16xf32>
    %c8_96 = arith.constant 8 : index
    %c32_97 = arith.constant 32 : index
    %56 = vector.load %arg6[%c8_96, %c32_97] : memref<36x128xf32, #tpu.memory_space<vmem>>, vector<4x16xf32>
    tpu.vector_store %arg6[%c8_96, %c32_97], %55 {strides = array<i32>} : memref<36x128xf32, #tpu.memory_space<vmem>>, vector<4x16xf32>,
    %c0_98 = arith.constant 0 : index
    %c0_99 = arith.constant 0 : index
    %c3_100 = arith.constant 3 : index
    %c2_101 = arith.constant 2 : index
    %57 = vector.load %arg2[%c0_98, %c0_99, %c3_100, %c2_101] : memref<1x4x10x18xf32, #tpu.memory_space<vmem>>, vector<1x4x1x16xf32>
    %58 = vector.shape_cast %57 : vector<1x4x1x16xf32> to vector<4x16xf32>
    %c8_102 = arith.constant 8 : index
    %c48_103 = arith.constant 48 : index
    %59 = vector.load %arg6[%c8_102, %c48_103] : memref<36x128xf32, #tpu.memory_space<vmem>>, vector<4x16xf32>
    tpu.vector_store %arg6[%c8_102, %c48_103], %58 {strides = array<i32>} : memref<36x128xf32, #tpu.memory_space<vmem>>, vector<4x16xf32>,
    %c0_104 = arith.constant 0 : index
    %c0_105 = arith.constant 0 : index
    %c4_106 = arith.constant 4 : index
    %c2_107 = arith.constant 2 : index
    %60 = vector.load %arg2[%c0_104, %c0_105, %c4_106, %c2_107] : memref<1x4x10x18xf32, #tpu.memory_space<vmem>>, vector<1x4x1x16xf32>
    %61 = vector.shape_cast %60 : vector<1x4x1x16xf32> to vector<4x16xf32>
    %c8_108 = arith.constant 8 : index
    %c64_109 = arith.constant 64 : index
    %62 = vector.load %arg6[%c8_108, %c64_109] : memref<36x128xf32, #tpu.memory_space<vmem>>, vector<4x16xf32>
    tpu.vector_store %arg6[%c8_108, %c64_109], %61 {strides = array<i32>} : memref<36x128xf32, #tpu.memory_space<vmem>>, vector<4x16xf32>,
    %c0_110 = arith.constant 0 : index
    %c0_111 = arith.constant 0 : index
    %c5_112 = arith.constant 5 : index
    %c2_113 = arith.constant 2 : index
    %63 = vector.load %arg2[%c0_110, %c0_111, %c5_112, %c2_113] : memref<1x4x10x18xf32, #tpu.memory_space<vmem>>, vector<1x4x1x16xf32>
    %64 = vector.shape_cast %63 : vector<1x4x1x16xf32> to vector<4x16xf32>
    %c8_114 = arith.constant 8 : index
    %c80_115 = arith.constant 80 : index
    %65 = vector.load %arg6[%c8_114, %c80_115] : memref<36x128xf32, #tpu.memory_space<vmem>>, vector<4x16xf32>
    tpu.vector_store %arg6[%c8_114, %c80_115], %64 {strides = array<i32>} : memref<36x128xf32, #tpu.memory_space<vmem>>, vector<4x16xf32>,
    %c0_116 = arith.constant 0 : index
    %c0_117 = arith.constant 0 : index
    %c6_118 = arith.constant 6 : index
    %c2_119 = arith.constant 2 : index
    %66 = vector.load %arg2[%c0_116, %c0_117, %c6_118, %c2_119] : memref<1x4x10x18xf32, #tpu.memory_space<vmem>>, vector<1x4x1x16xf32>
    %67 = vector.shape_cast %66 : vector<1x4x1x16xf32> to vector<4x16xf32>
    %c8_120 = arith.constant 8 : index
    %c96_121 = arith.constant 96 : index
    %68 = vector.load %arg6[%c8_120, %c96_121] : memref<36x128xf32, #tpu.memory_space<vmem>>, vector<4x16xf32>
    tpu.vector_store %arg6[%c8_120, %c96_121], %67 {strides = array<i32>} : memref<36x128xf32, #tpu.memory_space<vmem>>, vector<4x16xf32>,
    %c0_122 = arith.constant 0 : index
    %c0_123 = arith.constant 0 : index
    %c7_124 = arith.constant 7 : index
    %c2_125 = arith.constant 2 : index
    %69 = vector.load %arg2[%c0_122, %c0_123, %c7_124, %c2_125] : memref<1x4x10x18xf32, #tpu.memory_space<vmem>>, vector<1x4x1x16xf32>
    %70 = vector.shape_cast %69 : vector<1x4x1x16xf32> to vector<4x16xf32>
    %c8_126 = arith.constant 8 : index
    %c112_127 = arith.constant 112 : index
    %71 = vector.load %arg6[%c8_126, %c112_127] : memref<36x128xf32, #tpu.memory_space<vmem>>, vector<4x16xf32>
    tpu.vector_store %arg6[%c8_126, %c112_127], %70 {strides = array<i32>} : memref<36x128xf32, #tpu.memory_space<vmem>>, vector<4x16xf32>,
    %c0_128 = arith.constant 0 : index
    %c0_129 = arith.constant 0 : index
    %c1_130 = arith.constant 1 : index
    %c0_131 = arith.constant 0 : index
    %72 = vector.load %arg2[%c0_128, %c0_129, %c1_130, %c0_131] : memref<1x4x10x18xf32, #tpu.memory_space<vmem>>, vector<1x4x1x16xf32>
    %73 = vector.shape_cast %72 : vector<1x4x1x16xf32> to vector<4x16xf32>
    %c12 = arith.constant 12 : index
    %c0_132 = arith.constant 0 : index
    %74 = vector.load %arg6[%c12, %c0_132] : memref<36x128xf32, #tpu.memory_space<vmem>>, vector<4x16xf32>
    tpu.vector_store %arg6[%c12, %c0_132], %73 {strides = array<i32>} : memref<36x128xf32, #tpu.memory_space<vmem>>, vector<4x16xf32>,
    %c0_133 = arith.constant 0 : index
    %c0_134 = arith.constant 0 : index
    %c2_135 = arith.constant 2 : index
    %c0_136 = arith.constant 0 : index
    %75 = vector.load %arg2[%c0_133, %c0_134, %c2_135, %c0_136] : memref<1x4x10x18xf32, #tpu.memory_space<vmem>>, vector<1x4x1x16xf32>
    %76 = vector.shape_cast %75 : vector<1x4x1x16xf32> to vector<4x16xf32>
    %c12_137 = arith.constant 12 : index
    %c16_138 = arith.constant 16 : index
    %77 = vector.load %arg6[%c12_137, %c16_138] : memref<36x128xf32, #tpu.memory_space<vmem>>, vector<4x16xf32>
    tpu.vector_store %arg6[%c12_137, %c16_138], %76 {strides = array<i32>} : memref<36x128xf32, #tpu.memory_space<vmem>>, vector<4x16xf32>,
    %c0_139 = arith.constant 0 : index
    %c0_140 = arith.constant 0 : index
    %c3_141 = arith.constant 3 : index
    %c0_142 = arith.constant 0 : index
    %78 = vector.load %arg2[%c0_139, %c0_140, %c3_141, %c0_142] : memref<1x4x10x18xf32, #tpu.memory_space<vmem>>, vector<1x4x1x16xf32>
    %79 = vector.shape_cast %78 : vector<1x4x1x16xf32> to vector<4x16xf32>
    %c12_143 = arith.constant 12 : index
    %c32_144 = arith.constant 32 : index
    %80 = vector.load %arg6[%c12_143, %c32_144] : memref<36x128xf32, #tpu.memory_space<vmem>>, vector<4x16xf32>
    tpu.vector_store %arg6[%c12_143, %c32_144], %79 {strides = array<i32>} : memref<36x128xf32, #tpu.memory_space<vmem>>, vector<4x16xf32>,
    %c0_145 = arith.constant 0 : index
    %c0_146 = arith.constant 0 : index
    %c4_147 = arith.constant 4 : index
    %c0_148 = arith.constant 0 : index
    %81 = vector.load %arg2[%c0_145, %c0_146, %c4_147, %c0_148] : memref<1x4x10x18xf32, #tpu.memory_space<vmem>>, vector<1x4x1x16xf32>
    %82 = vector.shape_cast %81 : vector<1x4x1x16xf32> to vector<4x16xf32>
    %c12_149 = arith.constant 12 : index
    %c48_150 = arith.constant 48 : index
    %83 = vector.load %arg6[%c12_149, %c48_150] : memref<36x128xf32, #tpu.memory_space<vmem>>, vector<4x16xf32>
    tpu.vector_store %arg6[%c12_149, %c48_150], %82 {strides = array<i32>} : memref<36x128xf32, #tpu.memory_space<vmem>>, vector<4x16xf32>,
    %c0_151 = arith.constant 0 : index
    %c0_152 = arith.constant 0 : index
    %c5_153 = arith.constant 5 : index
    %c0_154 = arith.constant 0 : index
    %84 = vector.load %arg2[%c0_151, %c0_152, %c5_153, %c0_154] : memref<1x4x10x18xf32, #tpu.memory_space<vmem>>, vector<1x4x1x16xf32>
    %85 = vector.shape_cast %84 : vector<1x4x1x16xf32> to vector<4x16xf32>
    %c12_155 = arith.constant 12 : index
    %c64_156 = arith.constant 64 : index
    %86 = vector.load %arg6[%c12_155, %c64_156] : memref<36x128xf32, #tpu.memory_space<vmem>>, vector<4x16xf32>
    tpu.vector_store %arg6[%c12_155, %c64_156], %85 {strides = array<i32>} : memref<36x128xf32, #tpu.memory_space<vmem>>, vector<4x16xf32>,
    %c0_157 = arith.constant 0 : index
    %c0_158 = arith.constant 0 : index
    %c6_159 = arith.constant 6 : index
    %c0_160 = arith.constant 0 : index
    %87 = vector.load %arg2[%c0_157, %c0_158, %c6_159, %c0_160] : memref<1x4x10x18xf32, #tpu.memory_space<vmem>>, vector<1x4x1x16xf32>
    %88 = vector.shape_cast %87 : vector<1x4x1x16xf32> to vector<4x16xf32>
    %c12_161 = arith.constant 12 : index
    %c80_162 = arith.constant 80 : index
    %89 = vector.load %arg6[%c12_161, %c80_162] : memref<36x128xf32, #tpu.memory_space<vmem>>, vector<4x16xf32>
    tpu.vector_store %arg6[%c12_161, %c80_162], %88 {strides = array<i32>} : memref<36x128xf32, #tpu.memory_space<vmem>>, vector<4x16xf32>,
    %c0_163 = arith.constant 0 : index
    %c0_164 = arith.constant 0 : index
    %c7_165 = arith.constant 7 : index
    %c0_166 = arith.constant 0 : index
    %90 = vector.load %arg2[%c0_163, %c0_164, %c7_165, %c0_166] : memref<1x4x10x18xf32, #tpu.memory_space<vmem>>, vector<1x4x1x16xf32>
    %91 = vector.shape_cast %90 : vector<1x4x1x16xf32> to vector<4x16xf32>
    %c12_167 = arith.constant 12 : index
    %c96_168 = arith.constant 96 : index
    %92 = vector.load %arg6[%c12_167, %c96_168] : memref<36x128xf32, #tpu.memory_space<vmem>>, vector<4x16xf32>
    tpu.vector_store %arg6[%c12_167, %c96_168], %91 {strides = array<i32>} : memref<36x128xf32, #tpu.memory_space<vmem>>, vector<4x16xf32>,
    %c0_169 = arith.constant 0 : index
    %c0_170 = arith.constant 0 : index
    %c8_171 = arith.constant 8 : index
    %c0_172 = arith.constant 0 : index
    %93 = vector.load %arg2[%c0_169, %c0_170, %c8_171, %c0_172] : memref<1x4x10x18xf32, #tpu.memory_space<vmem>>, vector<1x4x1x16xf32>
    %94 = vector.shape_cast %93 : vector<1x4x1x16xf32> to vector<4x16xf32>
    %c12_173 = arith.constant 12 : index
    %c112_174 = arith.constant 112 : index
    %95 = vector.load %arg6[%c12_173, %c112_174] : memref<36x128xf32, #tpu.memory_space<vmem>>, vector<4x16xf32>
    tpu.vector_store %arg6[%c12_173, %c112_174], %94 {strides = array<i32>} : memref<36x128xf32, #tpu.memory_space<vmem>>, vector<4x16xf32>,
    %c0_175 = arith.constant 0 : index
    %c0_176 = arith.constant 0 : index
    %c1_177 = arith.constant 1 : index
    %c1_178 = arith.constant 1 : index
    %96 = vector.load %arg2[%c0_175, %c0_176, %c1_177, %c1_178] : memref<1x4x10x18xf32, #tpu.memory_space<vmem>>, vector<1x4x1x16xf32>
    %97 = vector.shape_cast %96 : vector<1x4x1x16xf32> to vector<4x16xf32>
    %c16_179 = arith.constant 16 : index
    %c0_180 = arith.constant 0 : index
    %98 = vector.load %arg6[%c16_179, %c0_180] : memref<36x128xf32, #tpu.memory_space<vmem>>, vector<4x16xf32>
    tpu.vector_store %arg6[%c16_179, %c0_180], %97 {strides = array<i32>} : memref<36x128xf32, #tpu.memory_space<vmem>>, vector<4x16xf32>,
    %c0_181 = arith.constant 0 : index
    %c0_182 = arith.constant 0 : index
    %c2_183 = arith.constant 2 : index
    %c1_184 = arith.constant 1 : index
    %99 = vector.load %arg2[%c0_181, %c0_182, %c2_183, %c1_184] : memref<1x4x10x18xf32, #tpu.memory_space<vmem>>, vector<1x4x1x16xf32>
    %100 = vector.shape_cast %99 : vector<1x4x1x16xf32> to vector<4x16xf32>
    %c16_185 = arith.constant 16 : index
    %c16_186 = arith.constant 16 : index
    %101 = vector.load %arg6[%c16_185, %c16_186] : memref<36x128xf32, #tpu.memory_space<vmem>>, vector<4x16xf32>
    tpu.vector_store %arg6[%c16_185, %c16_186], %100 {strides = array<i32>} : memref<36x128xf32, #tpu.memory_space<vmem>>, vector<4x16xf32>,
    %c0_187 = arith.constant 0 : index
    %c0_188 = arith.constant 0 : index
    %c3_189 = arith.constant 3 : index
    %c1_190 = arith.constant 1 : index
    %102 = vector.load %arg2[%c0_187, %c0_188, %c3_189, %c1_190] : memref<1x4x10x18xf32, #tpu.memory_space<vmem>>, vector<1x4x1x16xf32>
    %103 = vector.shape_cast %102 : vector<1x4x1x16xf32> to vector<4x16xf32>
    %c16_191 = arith.constant 16 : index
    %c32_192 = arith.constant 32 : index
    %104 = vector.load %arg6[%c16_191, %c32_192] : memref<36x128xf32, #tpu.memory_space<vmem>>, vector<4x16xf32>
    tpu.vector_store %arg6[%c16_191, %c32_192], %103 {strides = array<i32>} : memref<36x128xf32, #tpu.memory_space<vmem>>, vector<4x16xf32>,
    %c0_193 = arith.constant 0 : index
    %c0_194 = arith.constant 0 : index
    %c4_195 = arith.constant 4 : index
    %c1_196 = arith.constant 1 : index
    %105 = vector.load %arg2[%c0_193, %c0_194, %c4_195, %c1_196] : memref<1x4x10x18xf32, #tpu.memory_space<vmem>>, vector<1x4x1x16xf32>
    %106 = vector.shape_cast %105 : vector<1x4x1x16xf32> to vector<4x16xf32>
    %c16_197 = arith.constant 16 : index
    %c48_198 = arith.constant 48 : index
    %107 = vector.load %arg6[%c16_197, %c48_198] : memref<36x128xf32, #tpu.memory_space<vmem>>, vector<4x16xf32>
    tpu.vector_store %arg6[%c16_197, %c48_198], %106 {strides = array<i32>} : memref<36x128xf32, #tpu.memory_space<vmem>>, vector<4x16xf32>,
    %c0_199 = arith.constant 0 : index
    %c0_200 = arith.constant 0 : index
    %c5_201 = arith.constant 5 : index
    %c1_202 = arith.constant 1 : index
    %108 = vector.load %arg2[%c0_199, %c0_200, %c5_201, %c1_202] : memref<1x4x10x18xf32, #tpu.memory_space<vmem>>, vector<1x4x1x16xf32>
    %109 = vector.shape_cast %108 : vector<1x4x1x16xf32> to vector<4x16xf32>
    %c16_203 = arith.constant 16 : index
    %c64_204 = arith.constant 64 : index
    %110 = vector.load %arg6[%c16_203, %c64_204] : memref<36x128xf32, #tpu.memory_space<vmem>>, vector<4x16xf32>
    tpu.vector_store %arg6[%c16_203, %c64_204], %109 {strides = array<i32>} : memref<36x128xf32, #tpu.memory_space<vmem>>, vector<4x16xf32>,
    %c0_205 = arith.constant 0 : index
    %c0_206 = arith.constant 0 : index
    %c6_207 = arith.constant 6 : index
    %c1_208 = arith.constant 1 : index
    %111 = vector.load %arg2[%c0_205, %c0_206, %c6_207, %c1_208] : memref<1x4x10x18xf32, #tpu.memory_space<vmem>>, vector<1x4x1x16xf32>
    %112 = vector.shape_cast %111 : vector<1x4x1x16xf32> to vector<4x16xf32>
    %c16_209 = arith.constant 16 : index
    %c80_210 = arith.constant 80 : index
    %113 = vector.load %arg6[%c16_209, %c80_210] : memref<36x128xf32, #tpu.memory_space<vmem>>, vector<4x16xf32>
    tpu.vector_store %arg6[%c16_209, %c80_210], %112 {strides = array<i32>} : memref<36x128xf32, #tpu.memory_space<vmem>>, vector<4x16xf32>,
    %c0_211 = arith.constant 0 : index
    %c0_212 = arith.constant 0 : index
    %c7_213 = arith.constant 7 : index
    %c1_214 = arith.constant 1 : index
    %114 = vector.load %arg2[%c0_211, %c0_212, %c7_213, %c1_214] : memref<1x4x10x18xf32, #tpu.memory_space<vmem>>, vector<1x4x1x16xf32>
    %115 = vector.shape_cast %114 : vector<1x4x1x16xf32> to vector<4x16xf32>
    %c16_215 = arith.constant 16 : index
    %c96_216 = arith.constant 96 : index
    %116 = vector.load %arg6[%c16_215, %c96_216] : memref<36x128xf32, #tpu.memory_space<vmem>>, vector<4x16xf32>
    tpu.vector_store %arg6[%c16_215, %c96_216], %115 {strides = array<i32>} : memref<36x128xf32, #tpu.memory_space<vmem>>, vector<4x16xf32>,
    %c0_217 = arith.constant 0 : index
    %c0_218 = arith.constant 0 : index
    %c8_219 = arith.constant 8 : index
    %c1_220 = arith.constant 1 : index
    %117 = vector.load %arg2[%c0_217, %c0_218, %c8_219, %c1_220] : memref<1x4x10x18xf32, #tpu.memory_space<vmem>>, vector<1x4x1x16xf32>
    %118 = vector.shape_cast %117 : vector<1x4x1x16xf32> to vector<4x16xf32>
    %c16_221 = arith.constant 16 : index
    %c112_222 = arith.constant 112 : index
    %119 = vector.load %arg6[%c16_221, %c112_222] : memref<36x128xf32, #tpu.memory_space<vmem>>, vector<4x16xf32>
    tpu.vector_store %arg6[%c16_221, %c112_222], %118 {strides = array<i32>} : memref<36x128xf32, #tpu.memory_space<vmem>>, vector<4x16xf32>,
    %c0_223 = arith.constant 0 : index
    %c0_224 = arith.constant 0 : index
    %c1_225 = arith.constant 1 : index
    %c2_226 = arith.constant 2 : index
    %120 = vector.load %arg2[%c0_223, %c0_224, %c1_225, %c2_226] : memref<1x4x10x18xf32, #tpu.memory_space<vmem>>, vector<1x4x1x16xf32>
    %121 = vector.shape_cast %120 : vector<1x4x1x16xf32> to vector<4x16xf32>
    %c20 = arith.constant 20 : index
    %c0_227 = arith.constant 0 : index
    %122 = vector.load %arg6[%c20, %c0_227] : memref<36x128xf32, #tpu.memory_space<vmem>>, vector<4x16xf32>
    tpu.vector_store %arg6[%c20, %c0_227], %121 {strides = array<i32>} : memref<36x128xf32, #tpu.memory_space<vmem>>, vector<4x16xf32>,
    %c0_228 = arith.constant 0 : index
    %c0_229 = arith.constant 0 : index
    %c2_230 = arith.constant 2 : index
    %c2_231 = arith.constant 2 : index
    %123 = vector.load %arg2[%c0_228, %c0_229, %c2_230, %c2_231] : memref<1x4x10x18xf32, #tpu.memory_space<vmem>>, vector<1x4x1x16xf32>
    %124 = vector.shape_cast %123 : vector<1x4x1x16xf32> to vector<4x16xf32>
    %c20_232 = arith.constant 20 : index
    %c16_233 = arith.constant 16 : index
    %125 = vector.load %arg6[%c20_232, %c16_233] : memref<36x128xf32, #tpu.memory_space<vmem>>, vector<4x16xf32>
    tpu.vector_store %arg6[%c20_232, %c16_233], %124 {strides = array<i32>} : memref<36x128xf32, #tpu.memory_space<vmem>>, vector<4x16xf32>,
    %c0_234 = arith.constant 0 : index
    %c0_235 = arith.constant 0 : index
    %c3_236 = arith.constant 3 : index
    %c2_237 = arith.constant 2 : index
    %126 = vector.load %arg2[%c0_234, %c0_235, %c3_236, %c2_237] : memref<1x4x10x18xf32, #tpu.memory_space<vmem>>, vector<1x4x1x16xf32>
    %127 = vector.shape_cast %126 : vector<1x4x1x16xf32> to vector<4x16xf32>
    %c20_238 = arith.constant 20 : index
    %c32_239 = arith.constant 32 : index
    %128 = vector.load %arg6[%c20_238, %c32_239] : memref<36x128xf32, #tpu.memory_space<vmem>>, vector<4x16xf32>
    tpu.vector_store %arg6[%c20_238, %c32_239], %127 {strides = array<i32>} : memref<36x128xf32, #tpu.memory_space<vmem>>, vector<4x16xf32>,
    %c0_240 = arith.constant 0 : index
    %c0_241 = arith.constant 0 : index
    %c4_242 = arith.constant 4 : index
    %c2_243 = arith.constant 2 : index
    %129 = vector.load %arg2[%c0_240, %c0_241, %c4_242, %c2_243] : memref<1x4x10x18xf32, #tpu.memory_space<vmem>>, vector<1x4x1x16xf32>
    %130 = vector.shape_cast %129 : vector<1x4x1x16xf32> to vector<4x16xf32>
    %c20_244 = arith.constant 20 : index
    %c48_245 = arith.constant 48 : index
    %131 = vector.load %arg6[%c20_244, %c48_245] : memref<36x128xf32, #tpu.memory_space<vmem>>, vector<4x16xf32>
    tpu.vector_store %arg6[%c20_244, %c48_245], %130 {strides = array<i32>} : memref<36x128xf32, #tpu.memory_space<vmem>>, vector<4x16xf32>,
    %c0_246 = arith.constant 0 : index
    %c0_247 = arith.constant 0 : index
    %c5_248 = arith.constant 5 : index
    %c2_249 = arith.constant 2 : index
    %132 = vector.load %arg2[%c0_246, %c0_247, %c5_248, %c2_249] : memref<1x4x10x18xf32, #tpu.memory_space<vmem>>, vector<1x4x1x16xf32>
    %133 = vector.shape_cast %132 : vector<1x4x1x16xf32> to vector<4x16xf32>
    %c20_250 = arith.constant 20 : index
    %c64_251 = arith.constant 64 : index
    %134 = vector.load %arg6[%c20_250, %c64_251] : memref<36x128xf32, #tpu.memory_space<vmem>>, vector<4x16xf32>
    tpu.vector_store %arg6[%c20_250, %c64_251], %133 {strides = array<i32>} : memref<36x128xf32, #tpu.memory_space<vmem>>, vector<4x16xf32>,
    %c0_252 = arith.constant 0 : index
    %c0_253 = arith.constant 0 : index
    %c6_254 = arith.constant 6 : index
    %c2_255 = arith.constant 2 : index
    %135 = vector.load %arg2[%c0_252, %c0_253, %c6_254, %c2_255] : memref<1x4x10x18xf32, #tpu.memory_space<vmem>>, vector<1x4x1x16xf32>
    %136 = vector.shape_cast %135 : vector<1x4x1x16xf32> to vector<4x16xf32>
    %c20_256 = arith.constant 20 : index
    %c80_257 = arith.constant 80 : index
    %137 = vector.load %arg6[%c20_256, %c80_257] : memref<36x128xf32, #tpu.memory_space<vmem>>, vector<4x16xf32>
    tpu.vector_store %arg6[%c20_256, %c80_257], %136 {strides = array<i32>} : memref<36x128xf32, #tpu.memory_space<vmem>>, vector<4x16xf32>,
    %c0_258 = arith.constant 0 : index
    %c0_259 = arith.constant 0 : index
    %c7_260 = arith.constant 7 : index
    %c2_261 = arith.constant 2 : index
    %138 = vector.load %arg2[%c0_258, %c0_259, %c7_260, %c2_261] : memref<1x4x10x18xf32, #tpu.memory_space<vmem>>, vector<1x4x1x16xf32>
    %139 = vector.shape_cast %138 : vector<1x4x1x16xf32> to vector<4x16xf32>
    %c20_262 = arith.constant 20 : index
    %c96_263 = arith.constant 96 : index
    %140 = vector.load %arg6[%c20_262, %c96_263] : memref<36x128xf32, #tpu.memory_space<vmem>>, vector<4x16xf32>
    tpu.vector_store %arg6[%c20_262, %c96_263], %139 {strides = array<i32>} : memref<36x128xf32, #tpu.memory_space<vmem>>, vector<4x16xf32>,
    %c0_264 = arith.constant 0 : index
    %c0_265 = arith.constant 0 : index
    %c8_266 = arith.constant 8 : index
    %c2_267 = arith.constant 2 : index
    %141 = vector.load %arg2[%c0_264, %c0_265, %c8_266, %c2_267] : memref<1x4x10x18xf32, #tpu.memory_space<vmem>>, vector<1x4x1x16xf32>
    %142 = vector.shape_cast %141 : vector<1x4x1x16xf32> to vector<4x16xf32>
    %c20_268 = arith.constant 20 : index
    %c112_269 = arith.constant 112 : index
    %143 = vector.load %arg6[%c20_268, %c112_269] : memref<36x128xf32, #tpu.memory_space<vmem>>, vector<4x16xf32>
    tpu.vector_store %arg6[%c20_268, %c112_269], %142 {strides = array<i32>} : memref<36x128xf32, #tpu.memory_space<vmem>>, vector<4x16xf32>,
    %c0_270 = arith.constant 0 : index
    %c0_271 = arith.constant 0 : index
    %c2_272 = arith.constant 2 : index
    %c0_273 = arith.constant 0 : index
    %144 = vector.load %arg2[%c0_270, %c0_271, %c2_272, %c0_273] : memref<1x4x10x18xf32, #tpu.memory_space<vmem>>, vector<1x4x1x16xf32>
    %145 = vector.shape_cast %144 : vector<1x4x1x16xf32> to vector<4x16xf32>
    %c24 = arith.constant 24 : index
    %c0_274 = arith.constant 0 : index
    %146 = vector.load %arg6[%c24, %c0_274] : memref<36x128xf32, #tpu.memory_space<vmem>>, vector<4x16xf32>
    tpu.vector_store %arg6[%c24, %c0_274], %145 {strides = array<i32>} : memref<36x128xf32, #tpu.memory_space<vmem>>, vector<4x16xf32>,
    %c0_275 = arith.constant 0 : index
    %c0_276 = arith.constant 0 : index
    %c3_277 = arith.constant 3 : index
    %c0_278 = arith.constant 0 : index
    %147 = vector.load %arg2[%c0_275, %c0_276, %c3_277, %c0_278] : memref<1x4x10x18xf32, #tpu.memory_space<vmem>>, vector<1x4x1x16xf32>
    %148 = vector.shape_cast %147 : vector<1x4x1x16xf32> to vector<4x16xf32>
    %c24_279 = arith.constant 24 : index
    %c16_280 = arith.constant 16 : index
    %149 = vector.load %arg6[%c24_279, %c16_280] : memref<36x128xf32, #tpu.memory_space<vmem>>, vector<4x16xf32>
    tpu.vector_store %arg6[%c24_279, %c16_280], %148 {strides = array<i32>} : memref<36x128xf32, #tpu.memory_space<vmem>>, vector<4x16xf32>,
    %c0_281 = arith.constant 0 : index
    %c0_282 = arith.constant 0 : index
    %c4_283 = arith.constant 4 : index
    %c0_284 = arith.constant 0 : index
    %150 = vector.load %arg2[%c0_281, %c0_282, %c4_283, %c0_284] : memref<1x4x10x18xf32, #tpu.memory_space<vmem>>, vector<1x4x1x16xf32>
    %151 = vector.shape_cast %150 : vector<1x4x1x16xf32> to vector<4x16xf32>
    %c24_285 = arith.constant 24 : index
    %c32_286 = arith.constant 32 : index
    %152 = vector.load %arg6[%c24_285, %c32_286] : memref<36x128xf32, #tpu.memory_space<vmem>>, vector<4x16xf32>
    tpu.vector_store %arg6[%c24_285, %c32_286], %151 {strides = array<i32>} : memref<36x128xf32, #tpu.memory_space<vmem>>, vector<4x16xf32>,
    %c0_287 = arith.constant 0 : index
    %c0_288 = arith.constant 0 : index
    %c5_289 = arith.constant 5 : index
    %c0_290 = arith.constant 0 : index
    %153 = vector.load %arg2[%c0_287, %c0_288, %c5_289, %c0_290] : memref<1x4x10x18xf32, #tpu.memory_space<vmem>>, vector<1x4x1x16xf32>
    %154 = vector.shape_cast %153 : vector<1x4x1x16xf32> to vector<4x16xf32>
    %c24_291 = arith.constant 24 : index
    %c48_292 = arith.constant 48 : index
    %155 = vector.load %arg6[%c24_291, %c48_292] : memref<36x128xf32, #tpu.memory_space<vmem>>, vector<4x16xf32>
    tpu.vector_store %arg6[%c24_291, %c48_292], %154 {strides = array<i32>} : memref<36x128xf32, #tpu.memory_space<vmem>>, vector<4x16xf32>,
    %c0_293 = arith.constant 0 : index
    %c0_294 = arith.constant 0 : index
    %c6_295 = arith.constant 6 : index
    %c0_296 = arith.constant 0 : index
    %156 = vector.load %arg2[%c0_293, %c0_294, %c6_295, %c0_296] : memref<1x4x10x18xf32, #tpu.memory_space<vmem>>, vector<1x4x1x16xf32>
    %157 = vector.shape_cast %156 : vector<1x4x1x16xf32> to vector<4x16xf32>
    %c24_297 = arith.constant 24 : index
    %c64_298 = arith.constant 64 : index
    %158 = vector.load %arg6[%c24_297, %c64_298] : memref<36x128xf32, #tpu.memory_space<vmem>>, vector<4x16xf32>
    tpu.vector_store %arg6[%c24_297, %c64_298], %157 {strides = array<i32>} : memref<36x128xf32, #tpu.memory_space<vmem>>, vector<4x16xf32>,
    %c0_299 = arith.constant 0 : index
    %c0_300 = arith.constant 0 : index
    %c7_301 = arith.constant 7 : index
    %c0_302 = arith.constant 0 : index
    %159 = vector.load %arg2[%c0_299, %c0_300, %c7_301, %c0_302] : memref<1x4x10x18xf32, #tpu.memory_space<vmem>>, vector<1x4x1x16xf32>
    %160 = vector.shape_cast %159 : vector<1x4x1x16xf32> to vector<4x16xf32>
    %c24_303 = arith.constant 24 : index
    %c80_304 = arith.constant 80 : index
    %161 = vector.load %arg6[%c24_303, %c80_304] : memref<36x128xf32, #tpu.memory_space<vmem>>, vector<4x16xf32>
    tpu.vector_store %arg6[%c24_303, %c80_304], %160 {strides = array<i32>} : memref<36x128xf32, #tpu.memory_space<vmem>>, vector<4x16xf32>,
    %c0_305 = arith.constant 0 : index
    %c0_306 = arith.constant 0 : index
    %c8_307 = arith.constant 8 : index
    %c0_308 = arith.constant 0 : index
    %162 = vector.load %arg2[%c0_305, %c0_306, %c8_307, %c0_308] : memref<1x4x10x18xf32, #tpu.memory_space<vmem>>, vector<1x4x1x16xf32>
    %163 = vector.shape_cast %162 : vector<1x4x1x16xf32> to vector<4x16xf32>
    %c24_309 = arith.constant 24 : index
    %c96_310 = arith.constant 96 : index
    %164 = vector.load %arg6[%c24_309, %c96_310] : memref<36x128xf32, #tpu.memory_space<vmem>>, vector<4x16xf32>
    tpu.vector_store %arg6[%c24_309, %c96_310], %163 {strides = array<i32>} : memref<36x128xf32, #tpu.memory_space<vmem>>, vector<4x16xf32>,
    %c0_311 = arith.constant 0 : index
    %c0_312 = arith.constant 0 : index
    %c9 = arith.constant 9 : index
    %c0_313 = arith.constant 0 : index
    %165 = vector.load %arg2[%c0_311, %c0_312, %c9, %c0_313] : memref<1x4x10x18xf32, #tpu.memory_space<vmem>>, vector<1x4x1x16xf32>
    %166 = vector.shape_cast %165 : vector<1x4x1x16xf32> to vector<4x16xf32>
    %c24_314 = arith.constant 24 : index
    %c112_315 = arith.constant 112 : index
    %167 = vector.load %arg6[%c24_314, %c112_315] : memref<36x128xf32, #tpu.memory_space<vmem>>, vector<4x16xf32>
    tpu.vector_store %arg6[%c24_314, %c112_315], %166 {strides = array<i32>} : memref<36x128xf32, #tpu.memory_space<vmem>>, vector<4x16xf32>,
    %c0_316 = arith.constant 0 : index
    %c0_317 = arith.constant 0 : index
    %c2_318 = arith.constant 2 : index
    %c1_319 = arith.constant 1 : index
    %168 = vector.load %arg2[%c0_316, %c0_317, %c2_318, %c1_319] : memref<1x4x10x18xf32, #tpu.memory_space<vmem>>, vector<1x4x1x16xf32>
    %169 = vector.shape_cast %168 : vector<1x4x1x16xf32> to vector<4x16xf32>
    %c28 = arith.constant 28 : index
    %c0_320 = arith.constant 0 : index
    %170 = vector.load %arg6[%c28, %c0_320] : memref<36x128xf32, #tpu.memory_space<vmem>>, vector<4x16xf32>
    tpu.vector_store %arg6[%c28, %c0_320], %169 {strides = array<i32>} : memref<36x128xf32, #tpu.memory_space<vmem>>, vector<4x16xf32>,
    %c0_321 = arith.constant 0 : index
    %c0_322 = arith.constant 0 : index
    %c3_323 = arith.constant 3 : index
    %c1_324 = arith.constant 1 : index
    %171 = vector.load %arg2[%c0_321, %c0_322, %c3_323, %c1_324] : memref<1x4x10x18xf32, #tpu.memory_space<vmem>>, vector<1x4x1x16xf32>
    %172 = vector.shape_cast %171 : vector<1x4x1x16xf32> to vector<4x16xf32>
    %c28_325 = arith.constant 28 : index
    %c16_326 = arith.constant 16 : index
    %173 = vector.load %arg6[%c28_325, %c16_326] : memref<36x128xf32, #tpu.memory_space<vmem>>, vector<4x16xf32>
    tpu.vector_store %arg6[%c28_325, %c16_326], %172 {strides = array<i32>} : memref<36x128xf32, #tpu.memory_space<vmem>>, vector<4x16xf32>,
    %c0_327 = arith.constant 0 : index
    %c0_328 = arith.constant 0 : index
    %c4_329 = arith.constant 4 : index
    %c1_330 = arith.constant 1 : index
    %174 = vector.load %arg2[%c0_327, %c0_328, %c4_329, %c1_330] : memref<1x4x10x18xf32, #tpu.memory_space<vmem>>, vector<1x4x1x16xf32>
    %175 = vector.shape_cast %174 : vector<1x4x1x16xf32> to vector<4x16xf32>
    %c28_331 = arith.constant 28 : index
    %c32_332 = arith.constant 32 : index
    %176 = vector.load %arg6[%c28_331, %c32_332] : memref<36x128xf32, #tpu.memory_space<vmem>>, vector<4x16xf32>
    tpu.vector_store %arg6[%c28_331, %c32_332], %175 {strides = array<i32>} : memref<36x128xf32, #tpu.memory_space<vmem>>, vector<4x16xf32>,
    %c0_333 = arith.constant 0 : index
    %c0_334 = arith.constant 0 : index
    %c5_335 = arith.constant 5 : index
    %c1_336 = arith.constant 1 : index
    %177 = vector.load %arg2[%c0_333, %c0_334, %c5_335, %c1_336] : memref<1x4x10x18xf32, #tpu.memory_space<vmem>>, vector<1x4x1x16xf32>
    %178 = vector.shape_cast %177 : vector<1x4x1x16xf32> to vector<4x16xf32>
    %c28_337 = arith.constant 28 : index
    %c48_338 = arith.constant 48 : index
    %179 = vector.load %arg6[%c28_337, %c48_338] : memref<36x128xf32, #tpu.memory_space<vmem>>, vector<4x16xf32>
    tpu.vector_store %arg6[%c28_337, %c48_338], %178 {strides = array<i32>} : memref<36x128xf32, #tpu.memory_space<vmem>>, vector<4x16xf32>,
    %c0_339 = arith.constant 0 : index
    %c0_340 = arith.constant 0 : index
    %c6_341 = arith.constant 6 : index
    %c1_342 = arith.constant 1 : index
    %180 = vector.load %arg2[%c0_339, %c0_340, %c6_341, %c1_342] : memref<1x4x10x18xf32, #tpu.memory_space<vmem>>, vector<1x4x1x16xf32>
    %181 = vector.shape_cast %180 : vector<1x4x1x16xf32> to vector<4x16xf32>
    %c28_343 = arith.constant 28 : index
    %c64_344 = arith.constant 64 : index
    %182 = vector.load %arg6[%c28_343, %c64_344] : memref<36x128xf32, #tpu.memory_space<vmem>>, vector<4x16xf32>
    tpu.vector_store %arg6[%c28_343, %c64_344], %181 {strides = array<i32>} : memref<36x128xf32, #tpu.memory_space<vmem>>, vector<4x16xf32>,
    %c0_345 = arith.constant 0 : index
    %c0_346 = arith.constant 0 : index
    %c7_347 = arith.constant 7 : index
    %c1_348 = arith.constant 1 : index
    %183 = vector.load %arg2[%c0_345, %c0_346, %c7_347, %c1_348] : memref<1x4x10x18xf32, #tpu.memory_space<vmem>>, vector<1x4x1x16xf32>
    %184 = vector.shape_cast %183 : vector<1x4x1x16xf32> to vector<4x16xf32>
    %c28_349 = arith.constant 28 : index
    %c80_350 = arith.constant 80 : index
    %185 = vector.load %arg6[%c28_349, %c80_350] : memref<36x128xf32, #tpu.memory_space<vmem>>, vector<4x16xf32>
    tpu.vector_store %arg6[%c28_349, %c80_350], %184 {strides = array<i32>} : memref<36x128xf32, #tpu.memory_space<vmem>>, vector<4x16xf32>,
    %c0_351 = arith.constant 0 : index
    %c0_352 = arith.constant 0 : index
    %c8_353 = arith.constant 8 : index
    %c1_354 = arith.constant 1 : index
    %186 = vector.load %arg2[%c0_351, %c0_352, %c8_353, %c1_354] : memref<1x4x10x18xf32, #tpu.memory_space<vmem>>, vector<1x4x1x16xf32>
    %187 = vector.shape_cast %186 : vector<1x4x1x16xf32> to vector<4x16xf32>
    %c28_355 = arith.constant 28 : index
    %c96_356 = arith.constant 96 : index
    %188 = vector.load %arg6[%c28_355, %c96_356] : memref<36x128xf32, #tpu.memory_space<vmem>>, vector<4x16xf32>
    tpu.vector_store %arg6[%c28_355, %c96_356], %187 {strides = array<i32>} : memref<36x128xf32, #tpu.memory_space<vmem>>, vector<4x16xf32>,
    %c0_357 = arith.constant 0 : index
    %c0_358 = arith.constant 0 : index
    %c9_359 = arith.constant 9 : index
    %c1_360 = arith.constant 1 : index
    %189 = vector.load %arg2[%c0_357, %c0_358, %c9_359, %c1_360] : memref<1x4x10x18xf32, #tpu.memory_space<vmem>>, vector<1x4x1x16xf32>
    %190 = vector.shape_cast %189 : vector<1x4x1x16xf32> to vector<4x16xf32>
    %c28_361 = arith.constant 28 : index
    %c112_362 = arith.constant 112 : index
    %191 = vector.load %arg6[%c28_361, %c112_362] : memref<36x128xf32, #tpu.memory_space<vmem>>, vector<4x16xf32>
    tpu.vector_store %arg6[%c28_361, %c112_362], %190 {strides = array<i32>} : memref<36x128xf32, #tpu.memory_space<vmem>>, vector<4x16xf32>,
    %c0_363 = arith.constant 0 : index
    %c0_364 = arith.constant 0 : index
    %c2_365 = arith.constant 2 : index
    %c2_366 = arith.constant 2 : index
    %192 = vector.load %arg2[%c0_363, %c0_364, %c2_365, %c2_366] : memref<1x4x10x18xf32, #tpu.memory_space<vmem>>, vector<1x4x1x16xf32>
    %193 = vector.shape_cast %192 : vector<1x4x1x16xf32> to vector<4x16xf32>
    %c32_367 = arith.constant 32 : index
    %c0_368 = arith.constant 0 : index
    %194 = vector.load %arg6[%c32_367, %c0_368] : memref<36x128xf32, #tpu.memory_space<vmem>>, vector<4x16xf32>
    tpu.vector_store %arg6[%c32_367, %c0_368], %193 {strides = array<i32>} : memref<36x128xf32, #tpu.memory_space<vmem>>, vector<4x16xf32>,
    %c0_369 = arith.constant 0 : index
    %c0_370 = arith.constant 0 : index
    %c3_371 = arith.constant 3 : index
    %c2_372 = arith.constant 2 : index
    %195 = vector.load %arg2[%c0_369, %c0_370, %c3_371, %c2_372] : memref<1x4x10x18xf32, #tpu.memory_space<vmem>>, vector<1x4x1x16xf32>
    %196 = vector.shape_cast %195 : vector<1x4x1x16xf32> to vector<4x16xf32>
    %c32_373 = arith.constant 32 : index
    %c16_374 = arith.constant 16 : index
    %197 = vector.load %arg6[%c32_373, %c16_374] : memref<36x128xf32, #tpu.memory_space<vmem>>, vector<4x16xf32>
    tpu.vector_store %arg6[%c32_373, %c16_374], %196 {strides = array<i32>} : memref<36x128xf32, #tpu.memory_space<vmem>>, vector<4x16xf32>,
    %c0_375 = arith.constant 0 : index
    %c0_376 = arith.constant 0 : index
    %c4_377 = arith.constant 4 : index
    %c2_378 = arith.constant 2 : index
    %198 = vector.load %arg2[%c0_375, %c0_376, %c4_377, %c2_378] : memref<1x4x10x18xf32, #tpu.memory_space<vmem>>, vector<1x4x1x16xf32>
    %199 = vector.shape_cast %198 : vector<1x4x1x16xf32> to vector<4x16xf32>
    %c32_379 = arith.constant 32 : index
    %c32_380 = arith.constant 32 : index
    %200 = vector.load %arg6[%c32_379, %c32_380] : memref<36x128xf32, #tpu.memory_space<vmem>>, vector<4x16xf32>
    tpu.vector_store %arg6[%c32_379, %c32_380], %199 {strides = array<i32>} : memref<36x128xf32, #tpu.memory_space<vmem>>, vector<4x16xf32>,
    %c0_381 = arith.constant 0 : index
    %c0_382 = arith.constant 0 : index
    %c5_383 = arith.constant 5 : index
    %c2_384 = arith.constant 2 : index
    %201 = vector.load %arg2[%c0_381, %c0_382, %c5_383, %c2_384] : memref<1x4x10x18xf32, #tpu.memory_space<vmem>>, vector<1x4x1x16xf32>
    %202 = vector.shape_cast %201 : vector<1x4x1x16xf32> to vector<4x16xf32>
    %c32_385 = arith.constant 32 : index
    %c48_386 = arith.constant 48 : index
    %203 = vector.load %arg6[%c32_385, %c48_386] : memref<36x128xf32, #tpu.memory_space<vmem>>, vector<4x16xf32>
    tpu.vector_store %arg6[%c32_385, %c48_386], %202 {strides = array<i32>} : memref<36x128xf32, #tpu.memory_space<vmem>>, vector<4x16xf32>,
    %c0_387 = arith.constant 0 : index
    %c0_388 = arith.constant 0 : index
    %c6_389 = arith.constant 6 : index
    %c2_390 = arith.constant 2 : index
    %204 = vector.load %arg2[%c0_387, %c0_388, %c6_389, %c2_390] : memref<1x4x10x18xf32, #tpu.memory_space<vmem>>, vector<1x4x1x16xf32>
    %205 = vector.shape_cast %204 : vector<1x4x1x16xf32> to vector<4x16xf32>
    %c32_391 = arith.constant 32 : index
    %c64_392 = arith.constant 64 : index
    %206 = vector.load %arg6[%c32_391, %c64_392] : memref<36x128xf32, #tpu.memory_space<vmem>>, vector<4x16xf32>
    tpu.vector_store %arg6[%c32_391, %c64_392], %205 {strides = array<i32>} : memref<36x128xf32, #tpu.memory_space<vmem>>, vector<4x16xf32>,
    %c0_393 = arith.constant 0 : index
    %c0_394 = arith.constant 0 : index
    %c7_395 = arith.constant 7 : index
    %c2_396 = arith.constant 2 : index
    %207 = vector.load %arg2[%c0_393, %c0_394, %c7_395, %c2_396] : memref<1x4x10x18xf32, #tpu.memory_space<vmem>>, vector<1x4x1x16xf32>
    %208 = vector.shape_cast %207 : vector<1x4x1x16xf32> to vector<4x16xf32>
    %c32_397 = arith.constant 32 : index
    %c80_398 = arith.constant 80 : index
    %209 = vector.load %arg6[%c32_397, %c80_398] : memref<36x128xf32, #tpu.memory_space<vmem>>, vector<4x16xf32>
    tpu.vector_store %arg6[%c32_397, %c80_398], %208 {strides = array<i32>} : memref<36x128xf32, #tpu.memory_space<vmem>>, vector<4x16xf32>,
    %c0_399 = arith.constant 0 : index
    %c0_400 = arith.constant 0 : index
    %c8_401 = arith.constant 8 : index
    %c2_402 = arith.constant 2 : index
    %210 = vector.load %arg2[%c0_399, %c0_400, %c8_401, %c2_402] : memref<1x4x10x18xf32, #tpu.memory_space<vmem>>, vector<1x4x1x16xf32>
    %211 = vector.shape_cast %210 : vector<1x4x1x16xf32> to vector<4x16xf32>
    %c32_403 = arith.constant 32 : index
    %c96_404 = arith.constant 96 : index
    %212 = vector.load %arg6[%c32_403, %c96_404] : memref<36x128xf32, #tpu.memory_space<vmem>>, vector<4x16xf32>
    tpu.vector_store %arg6[%c32_403, %c96_404], %211 {strides = array<i32>} : memref<36x128xf32, #tpu.memory_space<vmem>>, vector<4x16xf32>,
    %c0_405 = arith.constant 0 : index
    %c0_406 = arith.constant 0 : index
    %c9_407 = arith.constant 9 : index
    %c2_408 = arith.constant 2 : index
    %213 = vector.load %arg2[%c0_405, %c0_406, %c9_407, %c2_408] : memref<1x4x10x18xf32, #tpu.memory_space<vmem>>, vector<1x4x1x16xf32>
    %214 = vector.shape_cast %213 : vector<1x4x1x16xf32> to vector<4x16xf32>
    %c32_409 = arith.constant 32 : index
    %c112_410 = arith.constant 112 : index
    %215 = vector.load %arg6[%c32_409, %c112_410] : memref<36x128xf32, #tpu.memory_space<vmem>>, vector<4x16xf32>
    tpu.vector_store %arg6[%c32_409, %c112_410], %214 {strides = array<i32>} : memref<36x128xf32, #tpu.memory_space<vmem>>, vector<4x16xf32>,
    %c0_411 = arith.constant 0 : index
    %c0_412 = arith.constant 0 : index
    %216 = vector.load %arg3[%c0_411, %c0_412] : memref<8x36xf32, #tpu.memory_space<vmem>>, vector<8x36xf32>
    %c0_413 = arith.constant 0 : index
    %c0_414 = arith.constant 0 : index
    %217 = vector.load %arg6[%c0_413, %c0_414] : memref<36x128xf32, #tpu.memory_space<vmem>>, vector<36x128xf32>
    %cst = arith.constant dense<0.000000e+00> : vector<8x128xf32>
    %218 = tpu.matmul %216, %217, %cst {dimension_numbers = #tpu.dot_dimension_numbers<[1], [0], [0], [1], [0, 0, 1, 1], [], []>} : vector<8x36xf32>, vector<36x128xf32>, vector<8x128xf32> -> vector<8x128xf32>
    %cst_415 = arith.constant dense<0.000000e+00> : vector<8xf32>
    %219 = vector.multi_reduction <add>, %218, %cst_415 [1] : vector<8x128xf32> to vector<8xf32>
    %220 = vector.shape_cast %219 : vector<8xf32> to vector<8x1xf32>
    %c0_416 = arith.constant 0 : index
    %c0_417 = arith.constant 0 : index
    %c0_418 = arith.constant 0 : index
    %221 = vector.load %arg4[%c0_416, %c0_417, %c0_418] : memref<1x8x1xf32, #tpu.memory_space<vmem>>, vector<1x8x1xf32>
    %222 = vector.shape_cast %221 : vector<1x8x1xf32> to vector<8x1xf32>
    %223 = vector.shape_cast %220 : vector<8x1xf32> to vector<1x8x1xf32>
    tpu.vector_store %arg4[%c0_416, %c0_417, %c0_418], %223 {strides = array<i32>} : memref<1x8x1xf32, #tpu.memory_space<vmem>>, vector<1x8x1xf32>,
    %224 = arith.mulf %218, %218 : vector<8x128xf32>
    %cst_419 = arith.constant dense<0.000000e+00> : vector<8xf32>
    %225 = vector.multi_reduction <add>, %224, %cst_419 [1] : vector<8x128xf32> to vector<8xf32>
    %226 = vector.shape_cast %225 : vector<8xf32> to vector<8x1xf32>
    %c0_420 = arith.constant 0 : index
    %c0_421 = arith.constant 0 : index
    %c0_422 = arith.constant 0 : index
    %227 = vector.load %arg5[%c0_420, %c0_421, %c0_422] : memref<1x8x1xf32, #tpu.memory_space<vmem>>, vector<1x8x1xf32>
    %228 = vector.shape_cast %227 : vector<1x8x1xf32> to vector<8x1xf32>
    %229 = vector.shape_cast %226 : vector<8x1xf32> to vector<1x8x1xf32>
    tpu.vector_store %arg5[%c0_420, %c0_421, %c0_422], %229 {strides = array<i32>} : memref<1x8x1xf32, #tpu.memory_space<vmem>>, vector<1x8x1xf32>,
    return
  }
  func.func @transform_0(%arg0: i32, %arg1: i32) -> (i32, i32, i32, i32) {
    %c2_i32 = arith.constant 2 : i32
    %0 = arith.muli %arg0, %c2_i32 : i32
    %1 = arith.addi %0, %arg1 : i32
    %c0_i32 = arith.constant 0 : i32
    %c0_i32_0 = arith.constant 0 : i32
    %c0_i32_1 = arith.constant 0 : i32
    %c0_i32_2 = arith.constant 0 : i32
    return %1, %c0_i32, %c0_i32_0, %c0_i32_1 : i32, i32, i32, i32
  }
  func.func @transform_1(%arg0: i32, %arg1: i32) -> (i32, i32) {
    %c0_i32 = arith.constant 0 : i32
    %c0_i32_0 = arith.constant 0 : i32
    %c0_i32_1 = arith.constant 0 : i32
    return %c0_i32, %c0_i32_0 : i32, i32
  }
  func.func @transform_2(%arg0: i32, %arg1: i32) -> (i32, i32, i32) {
    %c2_i32 = arith.constant 2 : i32
    %0 = arith.muli %arg0, %c2_i32 : i32
    %1 = arith.addi %0, %arg1 : i32
    %c0_i32 = arith.constant 0 : i32
    %c0_i32_0 = arith.constant 0 : i32
    %c0_i32_1 = arith.constant 0 : i32
    return %1, %c0_i32, %c0_i32_0 : i32, i32, i32
  }
  func.func @transform_3(%arg0: i32, %arg1: i32) -> (i32, i32, i32) {
    %c2_i32 = arith.constant 2 : i32
    %0 = arith.muli %arg0, %c2_i32 : i32
    %1 = arith.addi %0, %arg1 : i32
    %c0_i32 = arith.constant 0 : i32
    %c0_i32_0 = arith.constant 0 : i32
    %c0_i32_1 = arith.constant 0 : i32
    return %1, %c0_i32, %c0_i32_0 : i32, i32, i32
  }
}

module attributes {stable_mosaic.version = 11 : i64} {
  func.func @_apply_kernel(%arg0: i32, %arg1: i32, %arg2: memref<1x4x10x18xf32, #tpu.memory_space<vmem>>, %arg3: memref<8x36xf32, #tpu.memory_space<vmem>>, %arg4: memref<8x1xf32, #tpu.memory_space<vmem>>, %arg5: memref<8x1xf32, #tpu.memory_space<vmem>>, %arg6: memref<1x8x128xf32, #tpu.memory_space<vmem>>, %arg7: memref<36x128xf32, #tpu.memory_space<vmem>>) attributes {dimension_semantics = [#tpu.dimension_semantics<parallel>, #tpu.dimension_semantics<parallel>], iteration_bounds = array<i64: 2, 2>, scalar_prefetch = 0 : i64, scratch_operands = 1 : i64, tpu.core_type = #tpu.core_type<tc>, window_params = [{transform_indices = @transform_0, window_bounds = array<i64: 1, 4, 10, 18>}, {pipeline_mode = #tpu.pipeline_mode<synchronous>, transform_indices = @transform_1, window_bounds = array<i64: 8, 36>}, {pipeline_mode = #tpu.pipeline_mode<synchronous>, transform_indices = @transform_2, window_bounds = array<i64: 8, 1>}, {pipeline_mode = #tpu.pipeline_mode<synchronous>, transform_indices = @transform_3, window_bounds = array<i64: 8, 1>}, {transform_indices = @transform_4, window_bounds = array<i64: 1, 8, 128>}]} {
    %c0 = arith.constant 0 : index
    %c0_0 = arith.constant 0 : index
    %c0_1 = arith.constant 0 : index
    %c0_2 = arith.constant 0 : index
    %0 = vector.load %arg2[%c0, %c0_0, %c0_1, %c0_2] : memref<1x4x10x18xf32, #tpu.memory_space<vmem>>, vector<1x4x1x16xf32>
    %1 = vector.shape_cast %0 : vector<1x4x1x16xf32> to vector<4x16xf32>
    %c0_3 = arith.constant 0 : index
    %c0_4 = arith.constant 0 : index
    %2 = vector.load %arg7[%c0_3, %c0_4] : memref<36x128xf32, #tpu.memory_space<vmem>>, vector<4x16xf32>
    tpu.vector_store %arg7[%c0_3, %c0_4], %1 {strides = array<i32>} : memref<36x128xf32, #tpu.memory_space<vmem>>, vector<4x16xf32>,
    %c0_5 = arith.constant 0 : index
    %c0_6 = arith.constant 0 : index
    %c1 = arith.constant 1 : index
    %c0_7 = arith.constant 0 : index
    %3 = vector.load %arg2[%c0_5, %c0_6, %c1, %c0_7] : memref<1x4x10x18xf32, #tpu.memory_space<vmem>>, vector<1x4x1x16xf32>
    %4 = vector.shape_cast %3 : vector<1x4x1x16xf32> to vector<4x16xf32>
    %c0_8 = arith.constant 0 : index
    %c16 = arith.constant 16 : index
    %5 = vector.load %arg7[%c0_8, %c16] : memref<36x128xf32, #tpu.memory_space<vmem>>, vector<4x16xf32>
    tpu.vector_store %arg7[%c0_8, %c16], %4 {strides = array<i32>} : memref<36x128xf32, #tpu.memory_space<vmem>>, vector<4x16xf32>,
    %c0_9 = arith.constant 0 : index
    %c0_10 = arith.constant 0 : index
    %c2 = arith.constant 2 : index
    %c0_11 = arith.constant 0 : index
    %6 = vector.load %arg2[%c0_9, %c0_10, %c2, %c0_11] : memref<1x4x10x18xf32, #tpu.memory_space<vmem>>, vector<1x4x1x16xf32>
    %7 = vector.shape_cast %6 : vector<1x4x1x16xf32> to vector<4x16xf32>
    %c0_12 = arith.constant 0 : index
    %c32 = arith.constant 32 : index
    %8 = vector.load %arg7[%c0_12, %c32] : memref<36x128xf32, #tpu.memory_space<vmem>>, vector<4x16xf32>
    tpu.vector_store %arg7[%c0_12, %c32], %7 {strides = array<i32>} : memref<36x128xf32, #tpu.memory_space<vmem>>, vector<4x16xf32>,
    %c0_13 = arith.constant 0 : index
    %c0_14 = arith.constant 0 : index
    %c3 = arith.constant 3 : index
    %c0_15 = arith.constant 0 : index
    %9 = vector.load %arg2[%c0_13, %c0_14, %c3, %c0_15] : memref<1x4x10x18xf32, #tpu.memory_space<vmem>>, vector<1x4x1x16xf32>
    %10 = vector.shape_cast %9 : vector<1x4x1x16xf32> to vector<4x16xf32>
    %c0_16 = arith.constant 0 : index
    %c48 = arith.constant 48 : index
    %11 = vector.load %arg7[%c0_16, %c48] : memref<36x128xf32, #tpu.memory_space<vmem>>, vector<4x16xf32>
    tpu.vector_store %arg7[%c0_16, %c48], %10 {strides = array<i32>} : memref<36x128xf32, #tpu.memory_space<vmem>>, vector<4x16xf32>,
    %c0_17 = arith.constant 0 : index
    %c0_18 = arith.constant 0 : index
    %c4 = arith.constant 4 : index
    %c0_19 = arith.constant 0 : index
    %12 = vector.load %arg2[%c0_17, %c0_18, %c4, %c0_19] : memref<1x4x10x18xf32, #tpu.memory_space<vmem>>, vector<1x4x1x16xf32>
    %13 = vector.shape_cast %12 : vector<1x4x1x16xf32> to vector<4x16xf32>
    %c0_20 = arith.constant 0 : index
    %c64 = arith.constant 64 : index
    %14 = vector.load %arg7[%c0_20, %c64] : memref<36x128xf32, #tpu.memory_space<vmem>>, vector<4x16xf32>
    tpu.vector_store %arg7[%c0_20, %c64], %13 {strides = array<i32>} : memref<36x128xf32, #tpu.memory_space<vmem>>, vector<4x16xf32>,
    %c0_21 = arith.constant 0 : index
    %c0_22 = arith.constant 0 : index
    %c5 = arith.constant 5 : index
    %c0_23 = arith.constant 0 : index
    %15 = vector.load %arg2[%c0_21, %c0_22, %c5, %c0_23] : memref<1x4x10x18xf32, #tpu.memory_space<vmem>>, vector<1x4x1x16xf32>
    %16 = vector.shape_cast %15 : vector<1x4x1x16xf32> to vector<4x16xf32>
    %c0_24 = arith.constant 0 : index
    %c80 = arith.constant 80 : index
    %17 = vector.load %arg7[%c0_24, %c80] : memref<36x128xf32, #tpu.memory_space<vmem>>, vector<4x16xf32>
    tpu.vector_store %arg7[%c0_24, %c80], %16 {strides = array<i32>} : memref<36x128xf32, #tpu.memory_space<vmem>>, vector<4x16xf32>,
    %c0_25 = arith.constant 0 : index
    %c0_26 = arith.constant 0 : index
    %c6 = arith.constant 6 : index
    %c0_27 = arith.constant 0 : index
    %18 = vector.load %arg2[%c0_25, %c0_26, %c6, %c0_27] : memref<1x4x10x18xf32, #tpu.memory_space<vmem>>, vector<1x4x1x16xf32>
    %19 = vector.shape_cast %18 : vector<1x4x1x16xf32> to vector<4x16xf32>
    %c0_28 = arith.constant 0 : index
    %c96 = arith.constant 96 : index
    %20 = vector.load %arg7[%c0_28, %c96] : memref<36x128xf32, #tpu.memory_space<vmem>>, vector<4x16xf32>
    tpu.vector_store %arg7[%c0_28, %c96], %19 {strides = array<i32>} : memref<36x128xf32, #tpu.memory_space<vmem>>, vector<4x16xf32>,
    %c0_29 = arith.constant 0 : index
    %c0_30 = arith.constant 0 : index
    %c7 = arith.constant 7 : index
    %c0_31 = arith.constant 0 : index
    %21 = vector.load %arg2[%c0_29, %c0_30, %c7, %c0_31] : memref<1x4x10x18xf32, #tpu.memory_space<vmem>>, vector<1x4x1x16xf32>
    %22 = vector.shape_cast %21 : vector<1x4x1x16xf32> to vector<4x16xf32>
    %c0_32 = arith.constant 0 : index
    %c112 = arith.constant 112 : index
    %23 = vector.load %arg7[%c0_32, %c112] : memref<36x128xf32, #tpu.memory_space<vmem>>, vector<4x16xf32>
    tpu.vector_store %arg7[%c0_32, %c112], %22 {strides = array<i32>} : memref<36x128xf32, #tpu.memory_space<vmem>>, vector<4x16xf32>,
    %c0_33 = arith.constant 0 : index
    %c0_34 = arith.constant 0 : index
    %c0_35 = arith.constant 0 : index
    %c1_36 = arith.constant 1 : index
    %24 = vector.load %arg2[%c0_33, %c0_34, %c0_35, %c1_36] : memref<1x4x10x18xf32, #tpu.memory_space<vmem>>, vector<1x4x1x16xf32>
    %25 = vector.shape_cast %24 : vector<1x4x1x16xf32> to vector<4x16xf32>
    %c4_37 = arith.constant 4 : index
    %c0_38 = arith.constant 0 : index
    %26 = vector.load %arg7[%c4_37, %c0_38] : memref<36x128xf32, #tpu.memory_space<vmem>>, vector<4x16xf32>
    tpu.vector_store %arg7[%c4_37, %c0_38], %25 {strides = array<i32>} : memref<36x128xf32, #tpu.memory_space<vmem>>, vector<4x16xf32>,
    %c0_39 = arith.constant 0 : index
    %c0_40 = arith.constant 0 : index
    %c1_41 = arith.constant 1 : index
    %c1_42 = arith.constant 1 : index
    %27 = vector.load %arg2[%c0_39, %c0_40, %c1_41, %c1_42] : memref<1x4x10x18xf32, #tpu.memory_space<vmem>>, vector<1x4x1x16xf32>
    %28 = vector.shape_cast %27 : vector<1x4x1x16xf32> to vector<4x16xf32>
    %c4_43 = arith.constant 4 : index
    %c16_44 = arith.constant 16 : index
    %29 = vector.load %arg7[%c4_43, %c16_44] : memref<36x128xf32, #tpu.memory_space<vmem>>, vector<4x16xf32>
    tpu.vector_store %arg7[%c4_43, %c16_44], %28 {strides = array<i32>} : memref<36x128xf32, #tpu.memory_space<vmem>>, vector<4x16xf32>,
    %c0_45 = arith.constant 0 : index
    %c0_46 = arith.constant 0 : index
    %c2_47 = arith.constant 2 : index
    %c1_48 = arith.constant 1 : index
    %30 = vector.load %arg2[%c0_45, %c0_46, %c2_47, %c1_48] : memref<1x4x10x18xf32, #tpu.memory_space<vmem>>, vector<1x4x1x16xf32>
    %31 = vector.shape_cast %30 : vector<1x4x1x16xf32> to vector<4x16xf32>
    %c4_49 = arith.constant 4 : index
    %c32_50 = arith.constant 32 : index
    %32 = vector.load %arg7[%c4_49, %c32_50] : memref<36x128xf32, #tpu.memory_space<vmem>>, vector<4x16xf32>
    tpu.vector_store %arg7[%c4_49, %c32_50], %31 {strides = array<i32>} : memref<36x128xf32, #tpu.memory_space<vmem>>, vector<4x16xf32>,
    %c0_51 = arith.constant 0 : index
    %c0_52 = arith.constant 0 : index
    %c3_53 = arith.constant 3 : index
    %c1_54 = arith.constant 1 : index
    %33 = vector.load %arg2[%c0_51, %c0_52, %c3_53, %c1_54] : memref<1x4x10x18xf32, #tpu.memory_space<vmem>>, vector<1x4x1x16xf32>
    %34 = vector.shape_cast %33 : vector<1x4x1x16xf32> to vector<4x16xf32>
    %c4_55 = arith.constant 4 : index
    %c48_56 = arith.constant 48 : index
    %35 = vector.load %arg7[%c4_55, %c48_56] : memref<36x128xf32, #tpu.memory_space<vmem>>, vector<4x16xf32>
    tpu.vector_store %arg7[%c4_55, %c48_56], %34 {strides = array<i32>} : memref<36x128xf32, #tpu.memory_space<vmem>>, vector<4x16xf32>,
    %c0_57 = arith.constant 0 : index
    %c0_58 = arith.constant 0 : index
    %c4_59 = arith.constant 4 : index
    %c1_60 = arith.constant 1 : index
    %36 = vector.load %arg2[%c0_57, %c0_58, %c4_59, %c1_60] : memref<1x4x10x18xf32, #tpu.memory_space<vmem>>, vector<1x4x1x16xf32>
    %37 = vector.shape_cast %36 : vector<1x4x1x16xf32> to vector<4x16xf32>
    %c4_61 = arith.constant 4 : index
    %c64_62 = arith.constant 64 : index
    %38 = vector.load %arg7[%c4_61, %c64_62] : memref<36x128xf32, #tpu.memory_space<vmem>>, vector<4x16xf32>
    tpu.vector_store %arg7[%c4_61, %c64_62], %37 {strides = array<i32>} : memref<36x128xf32, #tpu.memory_space<vmem>>, vector<4x16xf32>,
    %c0_63 = arith.constant 0 : index
    %c0_64 = arith.constant 0 : index
    %c5_65 = arith.constant 5 : index
    %c1_66 = arith.constant 1 : index
    %39 = vector.load %arg2[%c0_63, %c0_64, %c5_65, %c1_66] : memref<1x4x10x18xf32, #tpu.memory_space<vmem>>, vector<1x4x1x16xf32>
    %40 = vector.shape_cast %39 : vector<1x4x1x16xf32> to vector<4x16xf32>
    %c4_67 = arith.constant 4 : index
    %c80_68 = arith.constant 80 : index
    %41 = vector.load %arg7[%c4_67, %c80_68] : memref<36x128xf32, #tpu.memory_space<vmem>>, vector<4x16xf32>
    tpu.vector_store %arg7[%c4_67, %c80_68], %40 {strides = array<i32>} : memref<36x128xf32, #tpu.memory_space<vmem>>, vector<4x16xf32>,
    %c0_69 = arith.constant 0 : index
    %c0_70 = arith.constant 0 : index
    %c6_71 = arith.constant 6 : index
    %c1_72 = arith.constant 1 : index
    %42 = vector.load %arg2[%c0_69, %c0_70, %c6_71, %c1_72] : memref<1x4x10x18xf32, #tpu.memory_space<vmem>>, vector<1x4x1x16xf32>
    %43 = vector.shape_cast %42 : vector<1x4x1x16xf32> to vector<4x16xf32>
    %c4_73 = arith.constant 4 : index
    %c96_74 = arith.constant 96 : index
    %44 = vector.load %arg7[%c4_73, %c96_74] : memref<36x128xf32, #tpu.memory_space<vmem>>, vector<4x16xf32>
    tpu.vector_store %arg7[%c4_73, %c96_74], %43 {strides = array<i32>} : memref<36x128xf32, #tpu.memory_space<vmem>>, vector<4x16xf32>,
    %c0_75 = arith.constant 0 : index
    %c0_76 = arith.constant 0 : index
    %c7_77 = arith.constant 7 : index
    %c1_78 = arith.constant 1 : index
    %45 = vector.load %arg2[%c0_75, %c0_76, %c7_77, %c1_78] : memref<1x4x10x18xf32, #tpu.memory_space<vmem>>, vector<1x4x1x16xf32>
    %46 = vector.shape_cast %45 : vector<1x4x1x16xf32> to vector<4x16xf32>
    %c4_79 = arith.constant 4 : index
    %c112_80 = arith.constant 112 : index
    %47 = vector.load %arg7[%c4_79, %c112_80] : memref<36x128xf32, #tpu.memory_space<vmem>>, vector<4x16xf32>
    tpu.vector_store %arg7[%c4_79, %c112_80], %46 {strides = array<i32>} : memref<36x128xf32, #tpu.memory_space<vmem>>, vector<4x16xf32>,
    %c0_81 = arith.constant 0 : index
    %c0_82 = arith.constant 0 : index
    %c0_83 = arith.constant 0 : index
    %c2_84 = arith.constant 2 : index
    %48 = vector.load %arg2[%c0_81, %c0_82, %c0_83, %c2_84] : memref<1x4x10x18xf32, #tpu.memory_space<vmem>>, vector<1x4x1x16xf32>
    %49 = vector.shape_cast %48 : vector<1x4x1x16xf32> to vector<4x16xf32>
    %c8 = arith.constant 8 : index
    %c0_85 = arith.constant 0 : index
    %50 = vector.load %arg7[%c8, %c0_85] : memref<36x128xf32, #tpu.memory_space<vmem>>, vector<4x16xf32>
    tpu.vector_store %arg7[%c8, %c0_85], %49 {strides = array<i32>} : memref<36x128xf32, #tpu.memory_space<vmem>>, vector<4x16xf32>,
    %c0_86 = arith.constant 0 : index
    %c0_87 = arith.constant 0 : index
    %c1_88 = arith.constant 1 : index
    %c2_89 = arith.constant 2 : index
    %51 = vector.load %arg2[%c0_86, %c0_87, %c1_88, %c2_89] : memref<1x4x10x18xf32, #tpu.memory_space<vmem>>, vector<1x4x1x16xf32>
    %52 = vector.shape_cast %51 : vector<1x4x1x16xf32> to vector<4x16xf32>
    %c8_90 = arith.constant 8 : index
    %c16_91 = arith.constant 16 : index
    %53 = vector.load %arg7[%c8_90, %c16_91] : memref<36x128xf32, #tpu.memory_space<vmem>>, vector<4x16xf32>
    tpu.vector_store %arg7[%c8_90, %c16_91], %52 {strides = array<i32>} : memref<36x128xf32, #tpu.memory_space<vmem>>, vector<4x16xf32>,
    %c0_92 = arith.constant 0 : index
    %c0_93 = arith.constant 0 : index
    %c2_94 = arith.constant 2 : index
    %c2_95 = arith.constant 2 : index
    %54 = vector.load %arg2[%c0_92, %c0_93, %c2_94, %c2_95] : memref<1x4x10x18xf32, #tpu.memory_space<vmem>>, vector<1x4x1x16xf32>
    %55 = vector.shape_cast %54 : vector<1x4x1x16xf32> to vector<4x16xf32>
    %c8_96 = arith.constant 8 : index
    %c32_97 = arith.constant 32 : index
    %56 = vector.load %arg7[%c8_96, %c32_97] : memref<36x128xf32, #tpu.memory_space<vmem>>, vector<4x16xf32>
    tpu.vector_store %arg7[%c8_96, %c32_97], %55 {strides = array<i32>} : memref<36x128xf32, #tpu.memory_space<vmem>>, vector<4x16xf32>,
    %c0_98 = arith.constant 0 : index
    %c0_99 = arith.constant 0 : index
    %c3_100 = arith.constant 3 : index
    %c2_101 = arith.constant 2 : index
    %57 = vector.load %arg2[%c0_98, %c0_99, %c3_100, %c2_101] : memref<1x4x10x18xf32, #tpu.memory_space<vmem>>, vector<1x4x1x16xf32>
    %58 = vector.shape_cast %57 : vector<1x4x1x16xf32> to vector<4x16xf32>
    %c8_102 = arith.constant 8 : index
    %c48_103 = arith.constant 48 : index
    %59 = vector.load %arg7[%c8_102, %c48_103] : memref<36x128xf32, #tpu.memory_space<vmem>>, vector<4x16xf32>
    tpu.vector_store %arg7[%c8_102, %c48_103], %58 {strides = array<i32>} : memref<36x128xf32, #tpu.memory_space<vmem>>, vector<4x16xf32>,
    %c0_104 = arith.constant 0 : index
    %c0_105 = arith.constant 0 : index
    %c4_106 = arith.constant 4 : index
    %c2_107 = arith.constant 2 : index
    %60 = vector.load %arg2[%c0_104, %c0_105, %c4_106, %c2_107] : memref<1x4x10x18xf32, #tpu.memory_space<vmem>>, vector<1x4x1x16xf32>
    %61 = vector.shape_cast %60 : vector<1x4x1x16xf32> to vector<4x16xf32>
    %c8_108 = arith.constant 8 : index
    %c64_109 = arith.constant 64 : index
    %62 = vector.load %arg7[%c8_108, %c64_109] : memref<36x128xf32, #tpu.memory_space<vmem>>, vector<4x16xf32>
    tpu.vector_store %arg7[%c8_108, %c64_109], %61 {strides = array<i32>} : memref<36x128xf32, #tpu.memory_space<vmem>>, vector<4x16xf32>,
    %c0_110 = arith.constant 0 : index
    %c0_111 = arith.constant 0 : index
    %c5_112 = arith.constant 5 : index
    %c2_113 = arith.constant 2 : index
    %63 = vector.load %arg2[%c0_110, %c0_111, %c5_112, %c2_113] : memref<1x4x10x18xf32, #tpu.memory_space<vmem>>, vector<1x4x1x16xf32>
    %64 = vector.shape_cast %63 : vector<1x4x1x16xf32> to vector<4x16xf32>
    %c8_114 = arith.constant 8 : index
    %c80_115 = arith.constant 80 : index
    %65 = vector.load %arg7[%c8_114, %c80_115] : memref<36x128xf32, #tpu.memory_space<vmem>>, vector<4x16xf32>
    tpu.vector_store %arg7[%c8_114, %c80_115], %64 {strides = array<i32>} : memref<36x128xf32, #tpu.memory_space<vmem>>, vector<4x16xf32>,
    %c0_116 = arith.constant 0 : index
    %c0_117 = arith.constant 0 : index
    %c6_118 = arith.constant 6 : index
    %c2_119 = arith.constant 2 : index
    %66 = vector.load %arg2[%c0_116, %c0_117, %c6_118, %c2_119] : memref<1x4x10x18xf32, #tpu.memory_space<vmem>>, vector<1x4x1x16xf32>
    %67 = vector.shape_cast %66 : vector<1x4x1x16xf32> to vector<4x16xf32>
    %c8_120 = arith.constant 8 : index
    %c96_121 = arith.constant 96 : index
    %68 = vector.load %arg7[%c8_120, %c96_121] : memref<36x128xf32, #tpu.memory_space<vmem>>, vector<4x16xf32>
    tpu.vector_store %arg7[%c8_120, %c96_121], %67 {strides = array<i32>} : memref<36x128xf32, #tpu.memory_space<vmem>>, vector<4x16xf32>,
    %c0_122 = arith.constant 0 : index
    %c0_123 = arith.constant 0 : index
    %c7_124 = arith.constant 7 : index
    %c2_125 = arith.constant 2 : index
    %69 = vector.load %arg2[%c0_122, %c0_123, %c7_124, %c2_125] : memref<1x4x10x18xf32, #tpu.memory_space<vmem>>, vector<1x4x1x16xf32>
    %70 = vector.shape_cast %69 : vector<1x4x1x16xf32> to vector<4x16xf32>
    %c8_126 = arith.constant 8 : index
    %c112_127 = arith.constant 112 : index
    %71 = vector.load %arg7[%c8_126, %c112_127] : memref<36x128xf32, #tpu.memory_space<vmem>>, vector<4x16xf32>
    tpu.vector_store %arg7[%c8_126, %c112_127], %70 {strides = array<i32>} : memref<36x128xf32, #tpu.memory_space<vmem>>, vector<4x16xf32>,
    %c0_128 = arith.constant 0 : index
    %c0_129 = arith.constant 0 : index
    %c1_130 = arith.constant 1 : index
    %c0_131 = arith.constant 0 : index
    %72 = vector.load %arg2[%c0_128, %c0_129, %c1_130, %c0_131] : memref<1x4x10x18xf32, #tpu.memory_space<vmem>>, vector<1x4x1x16xf32>
    %73 = vector.shape_cast %72 : vector<1x4x1x16xf32> to vector<4x16xf32>
    %c12 = arith.constant 12 : index
    %c0_132 = arith.constant 0 : index
    %74 = vector.load %arg7[%c12, %c0_132] : memref<36x128xf32, #tpu.memory_space<vmem>>, vector<4x16xf32>
    tpu.vector_store %arg7[%c12, %c0_132], %73 {strides = array<i32>} : memref<36x128xf32, #tpu.memory_space<vmem>>, vector<4x16xf32>,
    %c0_133 = arith.constant 0 : index
    %c0_134 = arith.constant 0 : index
    %c2_135 = arith.constant 2 : index
    %c0_136 = arith.constant 0 : index
    %75 = vector.load %arg2[%c0_133, %c0_134, %c2_135, %c0_136] : memref<1x4x10x18xf32, #tpu.memory_space<vmem>>, vector<1x4x1x16xf32>
    %76 = vector.shape_cast %75 : vector<1x4x1x16xf32> to vector<4x16xf32>
    %c12_137 = arith.constant 12 : index
    %c16_138 = arith.constant 16 : index
    %77 = vector.load %arg7[%c12_137, %c16_138] : memref<36x128xf32, #tpu.memory_space<vmem>>, vector<4x16xf32>
    tpu.vector_store %arg7[%c12_137, %c16_138], %76 {strides = array<i32>} : memref<36x128xf32, #tpu.memory_space<vmem>>, vector<4x16xf32>,
    %c0_139 = arith.constant 0 : index
    %c0_140 = arith.constant 0 : index
    %c3_141 = arith.constant 3 : index
    %c0_142 = arith.constant 0 : index
    %78 = vector.load %arg2[%c0_139, %c0_140, %c3_141, %c0_142] : memref<1x4x10x18xf32, #tpu.memory_space<vmem>>, vector<1x4x1x16xf32>
    %79 = vector.shape_cast %78 : vector<1x4x1x16xf32> to vector<4x16xf32>
    %c12_143 = arith.constant 12 : index
    %c32_144 = arith.constant 32 : index
    %80 = vector.load %arg7[%c12_143, %c32_144] : memref<36x128xf32, #tpu.memory_space<vmem>>, vector<4x16xf32>
    tpu.vector_store %arg7[%c12_143, %c32_144], %79 {strides = array<i32>} : memref<36x128xf32, #tpu.memory_space<vmem>>, vector<4x16xf32>,
    %c0_145 = arith.constant 0 : index
    %c0_146 = arith.constant 0 : index
    %c4_147 = arith.constant 4 : index
    %c0_148 = arith.constant 0 : index
    %81 = vector.load %arg2[%c0_145, %c0_146, %c4_147, %c0_148] : memref<1x4x10x18xf32, #tpu.memory_space<vmem>>, vector<1x4x1x16xf32>
    %82 = vector.shape_cast %81 : vector<1x4x1x16xf32> to vector<4x16xf32>
    %c12_149 = arith.constant 12 : index
    %c48_150 = arith.constant 48 : index
    %83 = vector.load %arg7[%c12_149, %c48_150] : memref<36x128xf32, #tpu.memory_space<vmem>>, vector<4x16xf32>
    tpu.vector_store %arg7[%c12_149, %c48_150], %82 {strides = array<i32>} : memref<36x128xf32, #tpu.memory_space<vmem>>, vector<4x16xf32>,
    %c0_151 = arith.constant 0 : index
    %c0_152 = arith.constant 0 : index
    %c5_153 = arith.constant 5 : index
    %c0_154 = arith.constant 0 : index
    %84 = vector.load %arg2[%c0_151, %c0_152, %c5_153, %c0_154] : memref<1x4x10x18xf32, #tpu.memory_space<vmem>>, vector<1x4x1x16xf32>
    %85 = vector.shape_cast %84 : vector<1x4x1x16xf32> to vector<4x16xf32>
    %c12_155 = arith.constant 12 : index
    %c64_156 = arith.constant 64 : index
    %86 = vector.load %arg7[%c12_155, %c64_156] : memref<36x128xf32, #tpu.memory_space<vmem>>, vector<4x16xf32>
    tpu.vector_store %arg7[%c12_155, %c64_156], %85 {strides = array<i32>} : memref<36x128xf32, #tpu.memory_space<vmem>>, vector<4x16xf32>,
    %c0_157 = arith.constant 0 : index
    %c0_158 = arith.constant 0 : index
    %c6_159 = arith.constant 6 : index
    %c0_160 = arith.constant 0 : index
    %87 = vector.load %arg2[%c0_157, %c0_158, %c6_159, %c0_160] : memref<1x4x10x18xf32, #tpu.memory_space<vmem>>, vector<1x4x1x16xf32>
    %88 = vector.shape_cast %87 : vector<1x4x1x16xf32> to vector<4x16xf32>
    %c12_161 = arith.constant 12 : index
    %c80_162 = arith.constant 80 : index
    %89 = vector.load %arg7[%c12_161, %c80_162] : memref<36x128xf32, #tpu.memory_space<vmem>>, vector<4x16xf32>
    tpu.vector_store %arg7[%c12_161, %c80_162], %88 {strides = array<i32>} : memref<36x128xf32, #tpu.memory_space<vmem>>, vector<4x16xf32>,
    %c0_163 = arith.constant 0 : index
    %c0_164 = arith.constant 0 : index
    %c7_165 = arith.constant 7 : index
    %c0_166 = arith.constant 0 : index
    %90 = vector.load %arg2[%c0_163, %c0_164, %c7_165, %c0_166] : memref<1x4x10x18xf32, #tpu.memory_space<vmem>>, vector<1x4x1x16xf32>
    %91 = vector.shape_cast %90 : vector<1x4x1x16xf32> to vector<4x16xf32>
    %c12_167 = arith.constant 12 : index
    %c96_168 = arith.constant 96 : index
    %92 = vector.load %arg7[%c12_167, %c96_168] : memref<36x128xf32, #tpu.memory_space<vmem>>, vector<4x16xf32>
    tpu.vector_store %arg7[%c12_167, %c96_168], %91 {strides = array<i32>} : memref<36x128xf32, #tpu.memory_space<vmem>>, vector<4x16xf32>,
    %c0_169 = arith.constant 0 : index
    %c0_170 = arith.constant 0 : index
    %c8_171 = arith.constant 8 : index
    %c0_172 = arith.constant 0 : index
    %93 = vector.load %arg2[%c0_169, %c0_170, %c8_171, %c0_172] : memref<1x4x10x18xf32, #tpu.memory_space<vmem>>, vector<1x4x1x16xf32>
    %94 = vector.shape_cast %93 : vector<1x4x1x16xf32> to vector<4x16xf32>
    %c12_173 = arith.constant 12 : index
    %c112_174 = arith.constant 112 : index
    %95 = vector.load %arg7[%c12_173, %c112_174] : memref<36x128xf32, #tpu.memory_space<vmem>>, vector<4x16xf32>
    tpu.vector_store %arg7[%c12_173, %c112_174], %94 {strides = array<i32>} : memref<36x128xf32, #tpu.memory_space<vmem>>, vector<4x16xf32>,
    %c0_175 = arith.constant 0 : index
    %c0_176 = arith.constant 0 : index
    %c1_177 = arith.constant 1 : index
    %c1_178 = arith.constant 1 : index
    %96 = vector.load %arg2[%c0_175, %c0_176, %c1_177, %c1_178] : memref<1x4x10x18xf32, #tpu.memory_space<vmem>>, vector<1x4x1x16xf32>
    %97 = vector.shape_cast %96 : vector<1x4x1x16xf32> to vector<4x16xf32>
    %c16_179 = arith.constant 16 : index
    %c0_180 = arith.constant 0 : index
    %98 = vector.load %arg7[%c16_179, %c0_180] : memref<36x128xf32, #tpu.memory_space<vmem>>, vector<4x16xf32>
    tpu.vector_store %arg7[%c16_179, %c0_180], %97 {strides = array<i32>} : memref<36x128xf32, #tpu.memory_space<vmem>>, vector<4x16xf32>,
    %c0_181 = arith.constant 0 : index
    %c0_182 = arith.constant 0 : index
    %c2_183 = arith.constant 2 : index
    %c1_184 = arith.constant 1 : index
    %99 = vector.load %arg2[%c0_181, %c0_182, %c2_183, %c1_184] : memref<1x4x10x18xf32, #tpu.memory_space<vmem>>, vector<1x4x1x16xf32>
    %100 = vector.shape_cast %99 : vector<1x4x1x16xf32> to vector<4x16xf32>
    %c16_185 = arith.constant 16 : index
    %c16_186 = arith.constant 16 : index
    %101 = vector.load %arg7[%c16_185, %c16_186] : memref<36x128xf32, #tpu.memory_space<vmem>>, vector<4x16xf32>
    tpu.vector_store %arg7[%c16_185, %c16_186], %100 {strides = array<i32>} : memref<36x128xf32, #tpu.memory_space<vmem>>, vector<4x16xf32>,
    %c0_187 = arith.constant 0 : index
    %c0_188 = arith.constant 0 : index
    %c3_189 = arith.constant 3 : index
    %c1_190 = arith.constant 1 : index
    %102 = vector.load %arg2[%c0_187, %c0_188, %c3_189, %c1_190] : memref<1x4x10x18xf32, #tpu.memory_space<vmem>>, vector<1x4x1x16xf32>
    %103 = vector.shape_cast %102 : vector<1x4x1x16xf32> to vector<4x16xf32>
    %c16_191 = arith.constant 16 : index
    %c32_192 = arith.constant 32 : index
    %104 = vector.load %arg7[%c16_191, %c32_192] : memref<36x128xf32, #tpu.memory_space<vmem>>, vector<4x16xf32>
    tpu.vector_store %arg7[%c16_191, %c32_192], %103 {strides = array<i32>} : memref<36x128xf32, #tpu.memory_space<vmem>>, vector<4x16xf32>,
    %c0_193 = arith.constant 0 : index
    %c0_194 = arith.constant 0 : index
    %c4_195 = arith.constant 4 : index
    %c1_196 = arith.constant 1 : index
    %105 = vector.load %arg2[%c0_193, %c0_194, %c4_195, %c1_196] : memref<1x4x10x18xf32, #tpu.memory_space<vmem>>, vector<1x4x1x16xf32>
    %106 = vector.shape_cast %105 : vector<1x4x1x16xf32> to vector<4x16xf32>
    %c16_197 = arith.constant 16 : index
    %c48_198 = arith.constant 48 : index
    %107 = vector.load %arg7[%c16_197, %c48_198] : memref<36x128xf32, #tpu.memory_space<vmem>>, vector<4x16xf32>
    tpu.vector_store %arg7[%c16_197, %c48_198], %106 {strides = array<i32>} : memref<36x128xf32, #tpu.memory_space<vmem>>, vector<4x16xf32>,
    %c0_199 = arith.constant 0 : index
    %c0_200 = arith.constant 0 : index
    %c5_201 = arith.constant 5 : index
    %c1_202 = arith.constant 1 : index
    %108 = vector.load %arg2[%c0_199, %c0_200, %c5_201, %c1_202] : memref<1x4x10x18xf32, #tpu.memory_space<vmem>>, vector<1x4x1x16xf32>
    %109 = vector.shape_cast %108 : vector<1x4x1x16xf32> to vector<4x16xf32>
    %c16_203 = arith.constant 16 : index
    %c64_204 = arith.constant 64 : index
    %110 = vector.load %arg7[%c16_203, %c64_204] : memref<36x128xf32, #tpu.memory_space<vmem>>, vector<4x16xf32>
    tpu.vector_store %arg7[%c16_203, %c64_204], %109 {strides = array<i32>} : memref<36x128xf32, #tpu.memory_space<vmem>>, vector<4x16xf32>,
    %c0_205 = arith.constant 0 : index
    %c0_206 = arith.constant 0 : index
    %c6_207 = arith.constant 6 : index
    %c1_208 = arith.constant 1 : index
    %111 = vector.load %arg2[%c0_205, %c0_206, %c6_207, %c1_208] : memref<1x4x10x18xf32, #tpu.memory_space<vmem>>, vector<1x4x1x16xf32>
    %112 = vector.shape_cast %111 : vector<1x4x1x16xf32> to vector<4x16xf32>
    %c16_209 = arith.constant 16 : index
    %c80_210 = arith.constant 80 : index
    %113 = vector.load %arg7[%c16_209, %c80_210] : memref<36x128xf32, #tpu.memory_space<vmem>>, vector<4x16xf32>
    tpu.vector_store %arg7[%c16_209, %c80_210], %112 {strides = array<i32>} : memref<36x128xf32, #tpu.memory_space<vmem>>, vector<4x16xf32>,
    %c0_211 = arith.constant 0 : index
    %c0_212 = arith.constant 0 : index
    %c7_213 = arith.constant 7 : index
    %c1_214 = arith.constant 1 : index
    %114 = vector.load %arg2[%c0_211, %c0_212, %c7_213, %c1_214] : memref<1x4x10x18xf32, #tpu.memory_space<vmem>>, vector<1x4x1x16xf32>
    %115 = vector.shape_cast %114 : vector<1x4x1x16xf32> to vector<4x16xf32>
    %c16_215 = arith.constant 16 : index
    %c96_216 = arith.constant 96 : index
    %116 = vector.load %arg7[%c16_215, %c96_216] : memref<36x128xf32, #tpu.memory_space<vmem>>, vector<4x16xf32>
    tpu.vector_store %arg7[%c16_215, %c96_216], %115 {strides = array<i32>} : memref<36x128xf32, #tpu.memory_space<vmem>>, vector<4x16xf32>,
    %c0_217 = arith.constant 0 : index
    %c0_218 = arith.constant 0 : index
    %c8_219 = arith.constant 8 : index
    %c1_220 = arith.constant 1 : index
    %117 = vector.load %arg2[%c0_217, %c0_218, %c8_219, %c1_220] : memref<1x4x10x18xf32, #tpu.memory_space<vmem>>, vector<1x4x1x16xf32>
    %118 = vector.shape_cast %117 : vector<1x4x1x16xf32> to vector<4x16xf32>
    %c16_221 = arith.constant 16 : index
    %c112_222 = arith.constant 112 : index
    %119 = vector.load %arg7[%c16_221, %c112_222] : memref<36x128xf32, #tpu.memory_space<vmem>>, vector<4x16xf32>
    tpu.vector_store %arg7[%c16_221, %c112_222], %118 {strides = array<i32>} : memref<36x128xf32, #tpu.memory_space<vmem>>, vector<4x16xf32>,
    %c0_223 = arith.constant 0 : index
    %c0_224 = arith.constant 0 : index
    %c1_225 = arith.constant 1 : index
    %c2_226 = arith.constant 2 : index
    %120 = vector.load %arg2[%c0_223, %c0_224, %c1_225, %c2_226] : memref<1x4x10x18xf32, #tpu.memory_space<vmem>>, vector<1x4x1x16xf32>
    %121 = vector.shape_cast %120 : vector<1x4x1x16xf32> to vector<4x16xf32>
    %c20 = arith.constant 20 : index
    %c0_227 = arith.constant 0 : index
    %122 = vector.load %arg7[%c20, %c0_227] : memref<36x128xf32, #tpu.memory_space<vmem>>, vector<4x16xf32>
    tpu.vector_store %arg7[%c20, %c0_227], %121 {strides = array<i32>} : memref<36x128xf32, #tpu.memory_space<vmem>>, vector<4x16xf32>,
    %c0_228 = arith.constant 0 : index
    %c0_229 = arith.constant 0 : index
    %c2_230 = arith.constant 2 : index
    %c2_231 = arith.constant 2 : index
    %123 = vector.load %arg2[%c0_228, %c0_229, %c2_230, %c2_231] : memref<1x4x10x18xf32, #tpu.memory_space<vmem>>, vector<1x4x1x16xf32>
    %124 = vector.shape_cast %123 : vector<1x4x1x16xf32> to vector<4x16xf32>
    %c20_232 = arith.constant 20 : index
    %c16_233 = arith.constant 16 : index
    %125 = vector.load %arg7[%c20_232, %c16_233] : memref<36x128xf32, #tpu.memory_space<vmem>>, vector<4x16xf32>
    tpu.vector_store %arg7[%c20_232, %c16_233], %124 {strides = array<i32>} : memref<36x128xf32, #tpu.memory_space<vmem>>, vector<4x16xf32>,
    %c0_234 = arith.constant 0 : index
    %c0_235 = arith.constant 0 : index
    %c3_236 = arith.constant 3 : index
    %c2_237 = arith.constant 2 : index
    %126 = vector.load %arg2[%c0_234, %c0_235, %c3_236, %c2_237] : memref<1x4x10x18xf32, #tpu.memory_space<vmem>>, vector<1x4x1x16xf32>
    %127 = vector.shape_cast %126 : vector<1x4x1x16xf32> to vector<4x16xf32>
    %c20_238 = arith.constant 20 : index
    %c32_239 = arith.constant 32 : index
    %128 = vector.load %arg7[%c20_238, %c32_239] : memref<36x128xf32, #tpu.memory_space<vmem>>, vector<4x16xf32>
    tpu.vector_store %arg7[%c20_238, %c32_239], %127 {strides = array<i32>} : memref<36x128xf32, #tpu.memory_space<vmem>>, vector<4x16xf32>,
    %c0_240 = arith.constant 0 : index
    %c0_241 = arith.constant 0 : index
    %c4_242 = arith.constant 4 : index
    %c2_243 = arith.constant 2 : index
    %129 = vector.load %arg2[%c0_240, %c0_241, %c4_242, %c2_243] : memref<1x4x10x18xf32, #tpu.memory_space<vmem>>, vector<1x4x1x16xf32>
    %130 = vector.shape_cast %129 : vector<1x4x1x16xf32> to vector<4x16xf32>
    %c20_244 = arith.constant 20 : index
    %c48_245 = arith.constant 48 : index
    %131 = vector.load %arg7[%c20_244, %c48_245] : memref<36x128xf32, #tpu.memory_space<vmem>>, vector<4x16xf32>
    tpu.vector_store %arg7[%c20_244, %c48_245], %130 {strides = array<i32>} : memref<36x128xf32, #tpu.memory_space<vmem>>, vector<4x16xf32>,
    %c0_246 = arith.constant 0 : index
    %c0_247 = arith.constant 0 : index
    %c5_248 = arith.constant 5 : index
    %c2_249 = arith.constant 2 : index
    %132 = vector.load %arg2[%c0_246, %c0_247, %c5_248, %c2_249] : memref<1x4x10x18xf32, #tpu.memory_space<vmem>>, vector<1x4x1x16xf32>
    %133 = vector.shape_cast %132 : vector<1x4x1x16xf32> to vector<4x16xf32>
    %c20_250 = arith.constant 20 : index
    %c64_251 = arith.constant 64 : index
    %134 = vector.load %arg7[%c20_250, %c64_251] : memref<36x128xf32, #tpu.memory_space<vmem>>, vector<4x16xf32>
    tpu.vector_store %arg7[%c20_250, %c64_251], %133 {strides = array<i32>} : memref<36x128xf32, #tpu.memory_space<vmem>>, vector<4x16xf32>,
    %c0_252 = arith.constant 0 : index
    %c0_253 = arith.constant 0 : index
    %c6_254 = arith.constant 6 : index
    %c2_255 = arith.constant 2 : index
    %135 = vector.load %arg2[%c0_252, %c0_253, %c6_254, %c2_255] : memref<1x4x10x18xf32, #tpu.memory_space<vmem>>, vector<1x4x1x16xf32>
    %136 = vector.shape_cast %135 : vector<1x4x1x16xf32> to vector<4x16xf32>
    %c20_256 = arith.constant 20 : index
    %c80_257 = arith.constant 80 : index
    %137 = vector.load %arg7[%c20_256, %c80_257] : memref<36x128xf32, #tpu.memory_space<vmem>>, vector<4x16xf32>
    tpu.vector_store %arg7[%c20_256, %c80_257], %136 {strides = array<i32>} : memref<36x128xf32, #tpu.memory_space<vmem>>, vector<4x16xf32>,
    %c0_258 = arith.constant 0 : index
    %c0_259 = arith.constant 0 : index
    %c7_260 = arith.constant 7 : index
    %c2_261 = arith.constant 2 : index
    %138 = vector.load %arg2[%c0_258, %c0_259, %c7_260, %c2_261] : memref<1x4x10x18xf32, #tpu.memory_space<vmem>>, vector<1x4x1x16xf32>
    %139 = vector.shape_cast %138 : vector<1x4x1x16xf32> to vector<4x16xf32>
    %c20_262 = arith.constant 20 : index
    %c96_263 = arith.constant 96 : index
    %140 = vector.load %arg7[%c20_262, %c96_263] : memref<36x128xf32, #tpu.memory_space<vmem>>, vector<4x16xf32>
    tpu.vector_store %arg7[%c20_262, %c96_263], %139 {strides = array<i32>} : memref<36x128xf32, #tpu.memory_space<vmem>>, vector<4x16xf32>,
    %c0_264 = arith.constant 0 : index
    %c0_265 = arith.constant 0 : index
    %c8_266 = arith.constant 8 : index
    %c2_267 = arith.constant 2 : index
    %141 = vector.load %arg2[%c0_264, %c0_265, %c8_266, %c2_267] : memref<1x4x10x18xf32, #tpu.memory_space<vmem>>, vector<1x4x1x16xf32>
    %142 = vector.shape_cast %141 : vector<1x4x1x16xf32> to vector<4x16xf32>
    %c20_268 = arith.constant 20 : index
    %c112_269 = arith.constant 112 : index
    %143 = vector.load %arg7[%c20_268, %c112_269] : memref<36x128xf32, #tpu.memory_space<vmem>>, vector<4x16xf32>
    tpu.vector_store %arg7[%c20_268, %c112_269], %142 {strides = array<i32>} : memref<36x128xf32, #tpu.memory_space<vmem>>, vector<4x16xf32>,
    %c0_270 = arith.constant 0 : index
    %c0_271 = arith.constant 0 : index
    %c2_272 = arith.constant 2 : index
    %c0_273 = arith.constant 0 : index
    %144 = vector.load %arg2[%c0_270, %c0_271, %c2_272, %c0_273] : memref<1x4x10x18xf32, #tpu.memory_space<vmem>>, vector<1x4x1x16xf32>
    %145 = vector.shape_cast %144 : vector<1x4x1x16xf32> to vector<4x16xf32>
    %c24 = arith.constant 24 : index
    %c0_274 = arith.constant 0 : index
    %146 = vector.load %arg7[%c24, %c0_274] : memref<36x128xf32, #tpu.memory_space<vmem>>, vector<4x16xf32>
    tpu.vector_store %arg7[%c24, %c0_274], %145 {strides = array<i32>} : memref<36x128xf32, #tpu.memory_space<vmem>>, vector<4x16xf32>,
    %c0_275 = arith.constant 0 : index
    %c0_276 = arith.constant 0 : index
    %c3_277 = arith.constant 3 : index
    %c0_278 = arith.constant 0 : index
    %147 = vector.load %arg2[%c0_275, %c0_276, %c3_277, %c0_278] : memref<1x4x10x18xf32, #tpu.memory_space<vmem>>, vector<1x4x1x16xf32>
    %148 = vector.shape_cast %147 : vector<1x4x1x16xf32> to vector<4x16xf32>
    %c24_279 = arith.constant 24 : index
    %c16_280 = arith.constant 16 : index
    %149 = vector.load %arg7[%c24_279, %c16_280] : memref<36x128xf32, #tpu.memory_space<vmem>>, vector<4x16xf32>
    tpu.vector_store %arg7[%c24_279, %c16_280], %148 {strides = array<i32>} : memref<36x128xf32, #tpu.memory_space<vmem>>, vector<4x16xf32>,
    %c0_281 = arith.constant 0 : index
    %c0_282 = arith.constant 0 : index
    %c4_283 = arith.constant 4 : index
    %c0_284 = arith.constant 0 : index
    %150 = vector.load %arg2[%c0_281, %c0_282, %c4_283, %c0_284] : memref<1x4x10x18xf32, #tpu.memory_space<vmem>>, vector<1x4x1x16xf32>
    %151 = vector.shape_cast %150 : vector<1x4x1x16xf32> to vector<4x16xf32>
    %c24_285 = arith.constant 24 : index
    %c32_286 = arith.constant 32 : index
    %152 = vector.load %arg7[%c24_285, %c32_286] : memref<36x128xf32, #tpu.memory_space<vmem>>, vector<4x16xf32>
    tpu.vector_store %arg7[%c24_285, %c32_286], %151 {strides = array<i32>} : memref<36x128xf32, #tpu.memory_space<vmem>>, vector<4x16xf32>,
    %c0_287 = arith.constant 0 : index
    %c0_288 = arith.constant 0 : index
    %c5_289 = arith.constant 5 : index
    %c0_290 = arith.constant 0 : index
    %153 = vector.load %arg2[%c0_287, %c0_288, %c5_289, %c0_290] : memref<1x4x10x18xf32, #tpu.memory_space<vmem>>, vector<1x4x1x16xf32>
    %154 = vector.shape_cast %153 : vector<1x4x1x16xf32> to vector<4x16xf32>
    %c24_291 = arith.constant 24 : index
    %c48_292 = arith.constant 48 : index
    %155 = vector.load %arg7[%c24_291, %c48_292] : memref<36x128xf32, #tpu.memory_space<vmem>>, vector<4x16xf32>
    tpu.vector_store %arg7[%c24_291, %c48_292], %154 {strides = array<i32>} : memref<36x128xf32, #tpu.memory_space<vmem>>, vector<4x16xf32>,
    %c0_293 = arith.constant 0 : index
    %c0_294 = arith.constant 0 : index
    %c6_295 = arith.constant 6 : index
    %c0_296 = arith.constant 0 : index
    %156 = vector.load %arg2[%c0_293, %c0_294, %c6_295, %c0_296] : memref<1x4x10x18xf32, #tpu.memory_space<vmem>>, vector<1x4x1x16xf32>
    %157 = vector.shape_cast %156 : vector<1x4x1x16xf32> to vector<4x16xf32>
    %c24_297 = arith.constant 24 : index
    %c64_298 = arith.constant 64 : index
    %158 = vector.load %arg7[%c24_297, %c64_298] : memref<36x128xf32, #tpu.memory_space<vmem>>, vector<4x16xf32>
    tpu.vector_store %arg7[%c24_297, %c64_298], %157 {strides = array<i32>} : memref<36x128xf32, #tpu.memory_space<vmem>>, vector<4x16xf32>,
    %c0_299 = arith.constant 0 : index
    %c0_300 = arith.constant 0 : index
    %c7_301 = arith.constant 7 : index
    %c0_302 = arith.constant 0 : index
    %159 = vector.load %arg2[%c0_299, %c0_300, %c7_301, %c0_302] : memref<1x4x10x18xf32, #tpu.memory_space<vmem>>, vector<1x4x1x16xf32>
    %160 = vector.shape_cast %159 : vector<1x4x1x16xf32> to vector<4x16xf32>
    %c24_303 = arith.constant 24 : index
    %c80_304 = arith.constant 80 : index
    %161 = vector.load %arg7[%c24_303, %c80_304] : memref<36x128xf32, #tpu.memory_space<vmem>>, vector<4x16xf32>
    tpu.vector_store %arg7[%c24_303, %c80_304], %160 {strides = array<i32>} : memref<36x128xf32, #tpu.memory_space<vmem>>, vector<4x16xf32>,
    %c0_305 = arith.constant 0 : index
    %c0_306 = arith.constant 0 : index
    %c8_307 = arith.constant 8 : index
    %c0_308 = arith.constant 0 : index
    %162 = vector.load %arg2[%c0_305, %c0_306, %c8_307, %c0_308] : memref<1x4x10x18xf32, #tpu.memory_space<vmem>>, vector<1x4x1x16xf32>
    %163 = vector.shape_cast %162 : vector<1x4x1x16xf32> to vector<4x16xf32>
    %c24_309 = arith.constant 24 : index
    %c96_310 = arith.constant 96 : index
    %164 = vector.load %arg7[%c24_309, %c96_310] : memref<36x128xf32, #tpu.memory_space<vmem>>, vector<4x16xf32>
    tpu.vector_store %arg7[%c24_309, %c96_310], %163 {strides = array<i32>} : memref<36x128xf32, #tpu.memory_space<vmem>>, vector<4x16xf32>,
    %c0_311 = arith.constant 0 : index
    %c0_312 = arith.constant 0 : index
    %c9 = arith.constant 9 : index
    %c0_313 = arith.constant 0 : index
    %165 = vector.load %arg2[%c0_311, %c0_312, %c9, %c0_313] : memref<1x4x10x18xf32, #tpu.memory_space<vmem>>, vector<1x4x1x16xf32>
    %166 = vector.shape_cast %165 : vector<1x4x1x16xf32> to vector<4x16xf32>
    %c24_314 = arith.constant 24 : index
    %c112_315 = arith.constant 112 : index
    %167 = vector.load %arg7[%c24_314, %c112_315] : memref<36x128xf32, #tpu.memory_space<vmem>>, vector<4x16xf32>
    tpu.vector_store %arg7[%c24_314, %c112_315], %166 {strides = array<i32>} : memref<36x128xf32, #tpu.memory_space<vmem>>, vector<4x16xf32>,
    %c0_316 = arith.constant 0 : index
    %c0_317 = arith.constant 0 : index
    %c2_318 = arith.constant 2 : index
    %c1_319 = arith.constant 1 : index
    %168 = vector.load %arg2[%c0_316, %c0_317, %c2_318, %c1_319] : memref<1x4x10x18xf32, #tpu.memory_space<vmem>>, vector<1x4x1x16xf32>
    %169 = vector.shape_cast %168 : vector<1x4x1x16xf32> to vector<4x16xf32>
    %c28 = arith.constant 28 : index
    %c0_320 = arith.constant 0 : index
    %170 = vector.load %arg7[%c28, %c0_320] : memref<36x128xf32, #tpu.memory_space<vmem>>, vector<4x16xf32>
    tpu.vector_store %arg7[%c28, %c0_320], %169 {strides = array<i32>} : memref<36x128xf32, #tpu.memory_space<vmem>>, vector<4x16xf32>,
    %c0_321 = arith.constant 0 : index
    %c0_322 = arith.constant 0 : index
    %c3_323 = arith.constant 3 : index
    %c1_324 = arith.constant 1 : index
    %171 = vector.load %arg2[%c0_321, %c0_322, %c3_323, %c1_324] : memref<1x4x10x18xf32, #tpu.memory_space<vmem>>, vector<1x4x1x16xf32>
    %172 = vector.shape_cast %171 : vector<1x4x1x16xf32> to vector<4x16xf32>
    %c28_325 = arith.constant 28 : index
    %c16_326 = arith.constant 16 : index
    %173 = vector.load %arg7[%c28_325, %c16_326] : memref<36x128xf32, #tpu.memory_space<vmem>>, vector<4x16xf32>
    tpu.vector_store %arg7[%c28_325, %c16_326], %172 {strides = array<i32>} : memref<36x128xf32, #tpu.memory_space<vmem>>, vector<4x16xf32>,
    %c0_327 = arith.constant 0 : index
    %c0_328 = arith.constant 0 : index
    %c4_329 = arith.constant 4 : index
    %c1_330 = arith.constant 1 : index
    %174 = vector.load %arg2[%c0_327, %c0_328, %c4_329, %c1_330] : memref<1x4x10x18xf32, #tpu.memory_space<vmem>>, vector<1x4x1x16xf32>
    %175 = vector.shape_cast %174 : vector<1x4x1x16xf32> to vector<4x16xf32>
    %c28_331 = arith.constant 28 : index
    %c32_332 = arith.constant 32 : index
    %176 = vector.load %arg7[%c28_331, %c32_332] : memref<36x128xf32, #tpu.memory_space<vmem>>, vector<4x16xf32>
    tpu.vector_store %arg7[%c28_331, %c32_332], %175 {strides = array<i32>} : memref<36x128xf32, #tpu.memory_space<vmem>>, vector<4x16xf32>,
    %c0_333 = arith.constant 0 : index
    %c0_334 = arith.constant 0 : index
    %c5_335 = arith.constant 5 : index
    %c1_336 = arith.constant 1 : index
    %177 = vector.load %arg2[%c0_333, %c0_334, %c5_335, %c1_336] : memref<1x4x10x18xf32, #tpu.memory_space<vmem>>, vector<1x4x1x16xf32>
    %178 = vector.shape_cast %177 : vector<1x4x1x16xf32> to vector<4x16xf32>
    %c28_337 = arith.constant 28 : index
    %c48_338 = arith.constant 48 : index
    %179 = vector.load %arg7[%c28_337, %c48_338] : memref<36x128xf32, #tpu.memory_space<vmem>>, vector<4x16xf32>
    tpu.vector_store %arg7[%c28_337, %c48_338], %178 {strides = array<i32>} : memref<36x128xf32, #tpu.memory_space<vmem>>, vector<4x16xf32>,
    %c0_339 = arith.constant 0 : index
    %c0_340 = arith.constant 0 : index
    %c6_341 = arith.constant 6 : index
    %c1_342 = arith.constant 1 : index
    %180 = vector.load %arg2[%c0_339, %c0_340, %c6_341, %c1_342] : memref<1x4x10x18xf32, #tpu.memory_space<vmem>>, vector<1x4x1x16xf32>
    %181 = vector.shape_cast %180 : vector<1x4x1x16xf32> to vector<4x16xf32>
    %c28_343 = arith.constant 28 : index
    %c64_344 = arith.constant 64 : index
    %182 = vector.load %arg7[%c28_343, %c64_344] : memref<36x128xf32, #tpu.memory_space<vmem>>, vector<4x16xf32>
    tpu.vector_store %arg7[%c28_343, %c64_344], %181 {strides = array<i32>} : memref<36x128xf32, #tpu.memory_space<vmem>>, vector<4x16xf32>,
    %c0_345 = arith.constant 0 : index
    %c0_346 = arith.constant 0 : index
    %c7_347 = arith.constant 7 : index
    %c1_348 = arith.constant 1 : index
    %183 = vector.load %arg2[%c0_345, %c0_346, %c7_347, %c1_348] : memref<1x4x10x18xf32, #tpu.memory_space<vmem>>, vector<1x4x1x16xf32>
    %184 = vector.shape_cast %183 : vector<1x4x1x16xf32> to vector<4x16xf32>
    %c28_349 = arith.constant 28 : index
    %c80_350 = arith.constant 80 : index
    %185 = vector.load %arg7[%c28_349, %c80_350] : memref<36x128xf32, #tpu.memory_space<vmem>>, vector<4x16xf32>
    tpu.vector_store %arg7[%c28_349, %c80_350], %184 {strides = array<i32>} : memref<36x128xf32, #tpu.memory_space<vmem>>, vector<4x16xf32>,
    %c0_351 = arith.constant 0 : index
    %c0_352 = arith.constant 0 : index
    %c8_353 = arith.constant 8 : index
    %c1_354 = arith.constant 1 : index
    %186 = vector.load %arg2[%c0_351, %c0_352, %c8_353, %c1_354] : memref<1x4x10x18xf32, #tpu.memory_space<vmem>>, vector<1x4x1x16xf32>
    %187 = vector.shape_cast %186 : vector<1x4x1x16xf32> to vector<4x16xf32>
    %c28_355 = arith.constant 28 : index
    %c96_356 = arith.constant 96 : index
    %188 = vector.load %arg7[%c28_355, %c96_356] : memref<36x128xf32, #tpu.memory_space<vmem>>, vector<4x16xf32>
    tpu.vector_store %arg7[%c28_355, %c96_356], %187 {strides = array<i32>} : memref<36x128xf32, #tpu.memory_space<vmem>>, vector<4x16xf32>,
    %c0_357 = arith.constant 0 : index
    %c0_358 = arith.constant 0 : index
    %c9_359 = arith.constant 9 : index
    %c1_360 = arith.constant 1 : index
    %189 = vector.load %arg2[%c0_357, %c0_358, %c9_359, %c1_360] : memref<1x4x10x18xf32, #tpu.memory_space<vmem>>, vector<1x4x1x16xf32>
    %190 = vector.shape_cast %189 : vector<1x4x1x16xf32> to vector<4x16xf32>
    %c28_361 = arith.constant 28 : index
    %c112_362 = arith.constant 112 : index
    %191 = vector.load %arg7[%c28_361, %c112_362] : memref<36x128xf32, #tpu.memory_space<vmem>>, vector<4x16xf32>
    tpu.vector_store %arg7[%c28_361, %c112_362], %190 {strides = array<i32>} : memref<36x128xf32, #tpu.memory_space<vmem>>, vector<4x16xf32>,
    %c0_363 = arith.constant 0 : index
    %c0_364 = arith.constant 0 : index
    %c2_365 = arith.constant 2 : index
    %c2_366 = arith.constant 2 : index
    %192 = vector.load %arg2[%c0_363, %c0_364, %c2_365, %c2_366] : memref<1x4x10x18xf32, #tpu.memory_space<vmem>>, vector<1x4x1x16xf32>
    %193 = vector.shape_cast %192 : vector<1x4x1x16xf32> to vector<4x16xf32>
    %c32_367 = arith.constant 32 : index
    %c0_368 = arith.constant 0 : index
    %194 = vector.load %arg7[%c32_367, %c0_368] : memref<36x128xf32, #tpu.memory_space<vmem>>, vector<4x16xf32>
    tpu.vector_store %arg7[%c32_367, %c0_368], %193 {strides = array<i32>} : memref<36x128xf32, #tpu.memory_space<vmem>>, vector<4x16xf32>,
    %c0_369 = arith.constant 0 : index
    %c0_370 = arith.constant 0 : index
    %c3_371 = arith.constant 3 : index
    %c2_372 = arith.constant 2 : index
    %195 = vector.load %arg2[%c0_369, %c0_370, %c3_371, %c2_372] : memref<1x4x10x18xf32, #tpu.memory_space<vmem>>, vector<1x4x1x16xf32>
    %196 = vector.shape_cast %195 : vector<1x4x1x16xf32> to vector<4x16xf32>
    %c32_373 = arith.constant 32 : index
    %c16_374 = arith.constant 16 : index
    %197 = vector.load %arg7[%c32_373, %c16_374] : memref<36x128xf32, #tpu.memory_space<vmem>>, vector<4x16xf32>
    tpu.vector_store %arg7[%c32_373, %c16_374], %196 {strides = array<i32>} : memref<36x128xf32, #tpu.memory_space<vmem>>, vector<4x16xf32>,
    %c0_375 = arith.constant 0 : index
    %c0_376 = arith.constant 0 : index
    %c4_377 = arith.constant 4 : index
    %c2_378 = arith.constant 2 : index
    %198 = vector.load %arg2[%c0_375, %c0_376, %c4_377, %c2_378] : memref<1x4x10x18xf32, #tpu.memory_space<vmem>>, vector<1x4x1x16xf32>
    %199 = vector.shape_cast %198 : vector<1x4x1x16xf32> to vector<4x16xf32>
    %c32_379 = arith.constant 32 : index
    %c32_380 = arith.constant 32 : index
    %200 = vector.load %arg7[%c32_379, %c32_380] : memref<36x128xf32, #tpu.memory_space<vmem>>, vector<4x16xf32>
    tpu.vector_store %arg7[%c32_379, %c32_380], %199 {strides = array<i32>} : memref<36x128xf32, #tpu.memory_space<vmem>>, vector<4x16xf32>,
    %c0_381 = arith.constant 0 : index
    %c0_382 = arith.constant 0 : index
    %c5_383 = arith.constant 5 : index
    %c2_384 = arith.constant 2 : index
    %201 = vector.load %arg2[%c0_381, %c0_382, %c5_383, %c2_384] : memref<1x4x10x18xf32, #tpu.memory_space<vmem>>, vector<1x4x1x16xf32>
    %202 = vector.shape_cast %201 : vector<1x4x1x16xf32> to vector<4x16xf32>
    %c32_385 = arith.constant 32 : index
    %c48_386 = arith.constant 48 : index
    %203 = vector.load %arg7[%c32_385, %c48_386] : memref<36x128xf32, #tpu.memory_space<vmem>>, vector<4x16xf32>
    tpu.vector_store %arg7[%c32_385, %c48_386], %202 {strides = array<i32>} : memref<36x128xf32, #tpu.memory_space<vmem>>, vector<4x16xf32>,
    %c0_387 = arith.constant 0 : index
    %c0_388 = arith.constant 0 : index
    %c6_389 = arith.constant 6 : index
    %c2_390 = arith.constant 2 : index
    %204 = vector.load %arg2[%c0_387, %c0_388, %c6_389, %c2_390] : memref<1x4x10x18xf32, #tpu.memory_space<vmem>>, vector<1x4x1x16xf32>
    %205 = vector.shape_cast %204 : vector<1x4x1x16xf32> to vector<4x16xf32>
    %c32_391 = arith.constant 32 : index
    %c64_392 = arith.constant 64 : index
    %206 = vector.load %arg7[%c32_391, %c64_392] : memref<36x128xf32, #tpu.memory_space<vmem>>, vector<4x16xf32>
    tpu.vector_store %arg7[%c32_391, %c64_392], %205 {strides = array<i32>} : memref<36x128xf32, #tpu.memory_space<vmem>>, vector<4x16xf32>,
    %c0_393 = arith.constant 0 : index
    %c0_394 = arith.constant 0 : index
    %c7_395 = arith.constant 7 : index
    %c2_396 = arith.constant 2 : index
    %207 = vector.load %arg2[%c0_393, %c0_394, %c7_395, %c2_396] : memref<1x4x10x18xf32, #tpu.memory_space<vmem>>, vector<1x4x1x16xf32>
    %208 = vector.shape_cast %207 : vector<1x4x1x16xf32> to vector<4x16xf32>
    %c32_397 = arith.constant 32 : index
    %c80_398 = arith.constant 80 : index
    %209 = vector.load %arg7[%c32_397, %c80_398] : memref<36x128xf32, #tpu.memory_space<vmem>>, vector<4x16xf32>
    tpu.vector_store %arg7[%c32_397, %c80_398], %208 {strides = array<i32>} : memref<36x128xf32, #tpu.memory_space<vmem>>, vector<4x16xf32>,
    %c0_399 = arith.constant 0 : index
    %c0_400 = arith.constant 0 : index
    %c8_401 = arith.constant 8 : index
    %c2_402 = arith.constant 2 : index
    %210 = vector.load %arg2[%c0_399, %c0_400, %c8_401, %c2_402] : memref<1x4x10x18xf32, #tpu.memory_space<vmem>>, vector<1x4x1x16xf32>
    %211 = vector.shape_cast %210 : vector<1x4x1x16xf32> to vector<4x16xf32>
    %c32_403 = arith.constant 32 : index
    %c96_404 = arith.constant 96 : index
    %212 = vector.load %arg7[%c32_403, %c96_404] : memref<36x128xf32, #tpu.memory_space<vmem>>, vector<4x16xf32>
    tpu.vector_store %arg7[%c32_403, %c96_404], %211 {strides = array<i32>} : memref<36x128xf32, #tpu.memory_space<vmem>>, vector<4x16xf32>,
    %c0_405 = arith.constant 0 : index
    %c0_406 = arith.constant 0 : index
    %c9_407 = arith.constant 9 : index
    %c2_408 = arith.constant 2 : index
    %213 = vector.load %arg2[%c0_405, %c0_406, %c9_407, %c2_408] : memref<1x4x10x18xf32, #tpu.memory_space<vmem>>, vector<1x4x1x16xf32>
    %214 = vector.shape_cast %213 : vector<1x4x1x16xf32> to vector<4x16xf32>
    %c32_409 = arith.constant 32 : index
    %c112_410 = arith.constant 112 : index
    %215 = vector.load %arg7[%c32_409, %c112_410] : memref<36x128xf32, #tpu.memory_space<vmem>>, vector<4x16xf32>
    tpu.vector_store %arg7[%c32_409, %c112_410], %214 {strides = array<i32>} : memref<36x128xf32, #tpu.memory_space<vmem>>, vector<4x16xf32>,
    %c0_411 = arith.constant 0 : index
    %c0_412 = arith.constant 0 : index
    %216 = vector.load %arg3[%c0_411, %c0_412] : memref<8x36xf32, #tpu.memory_space<vmem>>, vector<8x36xf32>
    %c0_413 = arith.constant 0 : index
    %c0_414 = arith.constant 0 : index
    %217 = vector.load %arg7[%c0_413, %c0_414] : memref<36x128xf32, #tpu.memory_space<vmem>>, vector<36x128xf32>
    %cst = arith.constant dense<0.000000e+00> : vector<8x128xf32>
    %218 = tpu.matmul %216, %217, %cst {dimension_numbers = #tpu.dot_dimension_numbers<[1], [0], [0], [1], [0, 0, 1, 1], [], []>} : vector<8x36xf32>, vector<36x128xf32>, vector<8x128xf32> -> vector<8x128xf32>
    %c0_415 = arith.constant 0 : index
    %c0_416 = arith.constant 0 : index
    %219 = vector.load %arg4[%c0_415, %c0_416] : memref<8x1xf32, #tpu.memory_space<vmem>>, vector<8x1xf32>
    %220 = vector.broadcast %219 : vector<8x1xf32> to vector<8x128xf32>
    %221 = arith.mulf %218, %220 : vector<8x128xf32>
    %c0_417 = arith.constant 0 : index
    %c0_418 = arith.constant 0 : index
    %222 = vector.load %arg5[%c0_417, %c0_418] : memref<8x1xf32, #tpu.memory_space<vmem>>, vector<8x1xf32>
    %223 = vector.broadcast %222 : vector<8x1xf32> to vector<8x128xf32>
    %224 = arith.addf %221, %223 : vector<8x128xf32>
    %cst_419 = arith.constant 0.000000e+00 : f32
    %225 = vector.broadcast %cst_419 : f32 to vector<8x128xf32>
    %226 = arith.maximumf %224, %225 : vector<8x128xf32>
    %c0_420 = arith.constant 0 : index
    %c0_421 = arith.constant 0 : index
    %c0_422 = arith.constant 0 : index
    %227 = vector.load %arg6[%c0_420, %c0_421, %c0_422] : memref<1x8x128xf32, #tpu.memory_space<vmem>>, vector<1x8x128xf32>
    %228 = vector.shape_cast %227 : vector<1x8x128xf32> to vector<8x128xf32>
    %229 = vector.shape_cast %226 : vector<8x128xf32> to vector<1x8x128xf32>
    tpu.vector_store %arg6[%c0_420, %c0_421, %c0_422], %229 {strides = array<i32>} : memref<1x8x128xf32, #tpu.memory_space<vmem>>, vector<1x8x128xf32>,
    return
  }
  func.func @transform_0(%arg0: i32, %arg1: i32) -> (i32, i32, i32, i32) {
    %c2_i32 = arith.constant 2 : i32
    %0 = arith.muli %arg0, %c2_i32 : i32
    %1 = arith.addi %0, %arg1 : i32
    %c0_i32 = arith.constant 0 : i32
    %c0_i32_0 = arith.constant 0 : i32
    %c0_i32_1 = arith.constant 0 : i32
    %c0_i32_2 = arith.constant 0 : i32
    return %1, %c0_i32, %c0_i32_0, %c0_i32_1 : i32, i32, i32, i32
  }
  func.func @transform_1(%arg0: i32, %arg1: i32) -> (i32, i32) {
    %c0_i32 = arith.constant 0 : i32
    %c0_i32_0 = arith.constant 0 : i32
    %c0_i32_1 = arith.constant 0 : i32
    return %c0_i32, %c0_i32_0 : i32, i32
  }
  func.func @transform_2(%arg0: i32, %arg1: i32) -> (i32, i32) {
    %c0_i32 = arith.constant 0 : i32
    %c0_i32_0 = arith.constant 0 : i32
    %c0_i32_1 = arith.constant 0 : i32
    return %c0_i32, %c0_i32_0 : i32, i32
  }
  func.func @transform_3(%arg0: i32, %arg1: i32) -> (i32, i32) {
    %c0_i32 = arith.constant 0 : i32
    %c0_i32_0 = arith.constant 0 : i32
    %c0_i32_1 = arith.constant 0 : i32
    return %c0_i32, %c0_i32_0 : i32, i32
  }
  func.func @transform_4(%arg0: i32, %arg1: i32) -> (i32, i32, i32) {
    %c0_i32 = arith.constant 0 : i32
    %c0_i32_0 = arith.constant 0 : i32
    return %arg0, %c0_i32, %arg1 : i32, i32, i32
  }
}

</mosaic_0001>

<bundles_post_ra>
// kernel: conv_block_pallas.3
= control target key start
LH: loop header
LB: loop body
LE: loop exit
PB: predicated region body
PF: predicated region fallthrough
CT: control target
= control target key end

     0   :  { %s1908_s15 = smov 0   ;;  %s1910_s16 = smov 0   ;;  %s2631_s0 = inlined_call_operand.vmem [shape: f32[4,4,10,18], index: 0, kind: input, shape index: {}]   ;;  %s2632_s1 = inlined_call_operand.vmem [shape: f32[8,36], index: 1, kind: input, shape index: {}]   ;;  %s2633_s2 = inlined_call_operand.vmem [shape: f32[8,1], index: 2, kind: input, shape index: {}]   ;;  %s2634_s3 = inlined_call_operand.vmem [shape: f32[8,1], index: 3, kind: input, shape index: {}]   ;;  %s2635_s4 = inlined_call_operand.vmem [shape: f32[2,8,256], index: 4, kind: output, shape index: {}]  }
   0x1   :  { %s1912_s17 = smov 0   ;;  %s1914_s18 = smov 0  }
   0x2   :  { %s1916_s19 = smov 0  }
   0x3 LB: > { %s23_s20 = sadd.s32 1, %s1847_s17  ;;  %s26_s21 = sadd.s32 1, %s1851_s18  ;;  %s1855_s19 = sphi %s1916_s19, %s14_s19   ;;  %s1851_s18 = sphi %s1914_s18, %s2639_s18   ;;  %s1847_s17 = sphi %s1912_s17, %s2638_s17   ;;  %s1843_s16 = sphi %s1910_s16, %s2637_s16   ;;  %s1839_s15 = sphi %s1908_s15, %s2636_s15  }
   0x4   : > { %p24_p0 = scmp.ge.s32.totalorder %s23_s20, 2  ;;  %p1719_p1 = scmp.ge.s32.totalorder %s1855_s19, 1 }
   0x5   : > { %p184_p2 = scmp.lt.s32.totalorder %s1855_s19, 5 }
   0x6   : > { %s2641_s20 = smov (%p24_p0, %s23_s20), 0  ;;  %s2643_s21 = smov (!%p24_p0, %s26_s21), %s1851_s18 }
   0x7   : > { %p185_p3 = pnand %p1719_p1, %p184_p2  ;;  %p28_p4 = scmp.ge.s32.totalorder %s2643_s21, 2 }
   0x8   : > { %s1720_s22 = sshll.u32 (!%p185_p3), %s1843_s16, 1  ;;  %s1857_s28 = smov (!%p185_p3), 126  }
   0x9   : > { %s2645_s21 = smov (%p28_p4, %s2643_s21), 0  ;;  %188 = sbr.rel (%p185_p3) target bundleno = 488 (0x1e8), region = 36 }
   0xa   : > { %s216_s23 = sadd.s32 (!%p185_p3), %s1839_s15, %s1720_s22  ;;  %s1858_s29 = smov (!%p185_p3), 14  }
   0xb   : > { %p217_p5 = scmp.lt.s32.totalorder (!%p185_p3), %s216_s23, 3  ;;  %s1859_s30 = smov (!%p185_p3), 127  }
   0xc   : > { %s1860_s5 = smov (!%p185_p3), 30   ;;  %s1861_s6 = smov (!%p185_p3), 16  }
   0xd   : > { %s1862_s7 = smov (!%p185_p3), 15   ;;  %s1863_s8 = smov (!%p185_p3), 46  }
   0xe   : > { %s2647_s23 = smov (!%p217_p5, %s216_s23), 3  ;;  %vm241_vm0 = vcmask 1041409   ;;  %vm244_vm1 = vcmask 1042434   ;;  %vm247_vm2 = vcmask 1043459   ;;  %s1864_s9 = smov 31   ;;  %vm250_vm3 = vcmask 125952  }
   0xf   : > { %s1729_s24 = sshll.u32 %s2647_s23, 6  ;;  %s1865_s10 = smov 32   ;;  %vm269_vm4 = vcmask 257152   ;;  %vm288_vm5 = vcmask 388352   ;;  %vm307_vm6 = vcmask 519552   ;;  %vm1881_vm7 = vmmov 0  }
  0x10   : > { %s1947_s27 = scalar_lea.vmem %s2631_s0, %s1729_s24  ;;  %s1866_s11 = smov 62   ;;  %vm326_vm8 = vcmask 650752   ;;  %vm345_vm9 = vcmask 781952   ;;  %vm364_vm10 = vcmask 913152   ;;  %vm383_vm11 = vcmask 1044352  }
  0x11   : > { %v1389_v0 = vld [vmem:[%s1947_s27 + $0x2] sm:$0x1]  ;;  %v1390_v1 = vld [vmem:[%s1947_s27 + $0x12] sm:$0x1]  ;;  %v1407_v6 = vld [vmem:[%s1947_s27 + $0x3] sm:$0x1] }
  0x12   : > { %v1391_v2 = vld [vmem:[%s1947_s27 + $0x22] sm:$0x1]  ;;  %v1392_v3 = vld [vmem:[%s1947_s27 + $0x32] sm:$0x1]  ;;  %v1397_v4 = vrot.slane %v1390_v1, 7  ;;  %s1867_s12 = smov 48  }
  0x13   : > { %v1399_v5 = vrot.slane %v1391_v2, 6  ;;  %v1401_v7 = vrot.slane %v1392_v3, 5  ;;  %v1408_v8 = vld [vmem:[%s1947_s27 + $0x13] sm:$0x1]  ;;  %v1409_v9 = vld [vmem:[%s1947_s27 + $0x23] sm:$0x1] }
  0x14   : > { %v1398_v10 = vsel %vm241_vm0, %v1397_v4, %v1389_v0  ;;  %v1410_v11 = vld [vmem:[%s1947_s27 + $0x33] sm:$0x1]  ;;  %v1415_v12 = vrot.slane %v1408_v8, 7  ;;  %v1417_v13 = vrot.slane %v1409_v9, 6  ;;  %v1245_v14 = vld [vmem:[%s1947_s27 + $0x2] sm:$0x1] }
  0x15   : > { %v1400_v15 = vsel %vm244_vm1, %v1399_v5, %v1398_v10  ;;  %v1419_v16 = vrot.slane %v1410_v11, 5  ;;  %v1246_v17 = vld [vmem:[%s1947_s27 + $0x12] sm:$0x1]  ;;  %v1247_v18 = vld [vmem:[%s1947_s27 + $0x22] sm:$0x1]  ;;  %s1868_s13 = smov 78  }
  0x16   : > { %v1402_v19 = vsel %vm247_vm2, %v1401_v7, %v1400_v15  ;;  %v1416_v20 = vsel %vm241_vm0, %v1415_v12, %v1407_v6  ;;  %v1248_v21 = vld [vmem:[%s1947_s27 + $0x32] sm:$0x1]  ;;  %v1253_v22 = vrot.slane %v1246_v17, 7  ;;  %v1255_v23 = vrot.slane %v1247_v18, 6  ;;  %v1425_v24 = vld [vmem:[%s1947_s27 + $0x4] sm:$0x1] }
  0x17   : > { %1403 = vrot.lane.b32.xlu0 %v1402_v19, %s1857_s28  ;;  %v1418_v25 = vsel %vm244_vm1, %v1417_v13, %v1416_v20  ;;  %v1257_v26 = vrot.slane %v1248_v21, 5  ;;  %v1426_v27 = vld [vmem:[%s1947_s27 + $0x14] sm:$0x1]  ;;  %v1427_v28 = vld [vmem:[%s1947_s27 + $0x24] sm:$0x1]  ;;  %s1869_s14 = smov 47  }
  0x18   : > { %v1420_v29 = vsel %vm247_vm2, %v1419_v16, %v1418_v25  ;;  %v1254_v30 = vsel %vm241_vm0, %v1253_v22, %v1245_v14  ;;  %v1428_v31 = vld [vmem:[%s1947_s27 + $0x34] sm:$0x1]  ;;  %v1433_v32 = vrot.slane %v1426_v27, 7  ;;  %v1435_v33 = vrot.slane %v1427_v28, 6  ;;  %v1119_v34 = vld [vmem:[%s1947_s27 + $0x3] sm:$0x1] }
  0x19   : > { %v1256_v35 = vsel %vm244_vm1, %v1255_v23, %v1254_v30  ;;  %v1437_v36 = vrot.slane %v1428_v31, 5  ;;  %v1120_v37 = vld [vmem:[%s1947_s27 + $0x13] sm:$0x1]  ;;  %v1121_v38 = vld [vmem:[%s1947_s27 + $0x23] sm:$0x1]  ;;  %s1870_s22 = smov 64  }
  0x1a   : > { %v1258_v39 = vsel %vm247_vm2, %v1257_v26, %v1256_v35  ;;  %v1434_v40 = vsel %vm241_vm0, %v1433_v32, %v1425_v24  ;;  %v1122_v41 = vld [vmem:[%s1947_s27 + $0x33] sm:$0x1]  ;;  %v1127_v42 = vrot.slane %v1120_v37, 7  ;;  %v1129_v43 = vrot.slane %v1121_v38, 6  ;;  %v1263_v44 = vld [vmem:[%s1947_s27 + $0x3] sm:$0x1] }
  0x1b   : > { %1421 = vrot.lane.b32.xlu0 %v1420_v29, %s1858_s29  ;;  %1259 = vrot.lane.b32.xlu1 %v1258_v39, %s1859_s30  ;;  %v1436_v45 = vsel %vm244_vm1, %v1435_v33, %v1434_v40  ;;  %v1131_v46 = vrot.slane %v1122_v41, 5  ;;  %v1264_v47 = vld [vmem:[%s1947_s27 + $0x13] sm:$0x1]  ;;  %v1265_v48 = vld [vmem:[%s1947_s27 + $0x23] sm:$0x1]  ;;  %s1871_s23 = smov 94  }
  0x1c   : > { %v1438_v49 = vsel %vm247_vm2, %v1437_v36, %v1436_v45  ;;  %v1128_v50 = vsel %vm241_vm0, %v1127_v42, %v1119_v34  ;;  %v1266_v51 = vld [vmem:[%s1947_s27 + $0x33] sm:$0x1]  ;;  %v1271_v52 = vrot.slane %v1264_v47, 7  ;;  %v1273_v53 = vrot.slane %v1265_v48, 6  ;;  %v1443_v54 = vld [vmem:[%s1947_s27 + $0x5] sm:$0x1] }
  0x1d   : > { %v1130_v55 = vsel %vm244_vm1, %v1129_v43, %v1128_v50  ;;  %v1275_v56 = vrot.slane %v1266_v51, 5  ;;  %v1444_v57 = vld [vmem:[%s1947_s27 + $0x15] sm:$0x1]  ;;  %v1445_v58 = vld [vmem:[%s1947_s27 + $0x25] sm:$0x1]  ;;  %s1872_s24 = smov 63  }
  0x1e   : > { %v1132_v59 = vsel %vm247_vm2, %v1131_v46, %v1130_v55  ;;  %v1272_v60 = vsel %vm241_vm0, %v1271_v52, %v1263_v44  ;;  %v1446_v61 = vld [vmem:[%s1947_s27 + $0x35] sm:$0x1]  ;;  %v1451_v62 = vrot.slane %v1444_v57, 7  ;;  %v1453_v63 = vrot.slane %v1445_v58, 6  ;;  %v959_v0 = vld [vmem:[%s1947_s27 + $0x1] sm:$0x1] }
  0x1f   : > { %1439 = vrot.lane.b32.xlu1 %v1438_v49, %s1860_s5  ;;  %1133 = vrot.lane.b32.xlu0 %v1132_v59, %s1861_s6  ;;  %v1274_v1 = vsel %vm244_vm1, %v1273_v53, %v1272_v60  ;;  %v1455_v2 = vrot.slane %v1446_v61, 5  ;;  %v960_v3 = vld [vmem:[%s1947_s27 + $0x11] sm:$0x1]  ;;  %v961_v4 = vld [vmem:[%s1947_s27 + $0x21] sm:$0x1]  ;;  %s1874_s25 = smov 79  }
  0x20   : > { %v1276_v5 = vsel %vm247_vm2, %v1275_v56, %v1274_v1  ;;  %v1452_v6 = vsel %vm241_vm0, %v1451_v62, %v1443_v54  ;;  %v962_v7 = vld [vmem:[%s1947_s27 + $0x31] sm:$0x1]  ;;  %v967_v8 = vrot.slane %v960_v3, 7  ;;  %v969_v9 = vrot.slane %v961_v4, 6  ;;  %v815_v10 = vld [vmem:[%s1947_s27 + $0x1] sm:$0x1] }
  0x21   : > { %v1454_v11 = vsel %vm244_vm1, %v1453_v63, %v1452_v6  ;;  %v971_v12 = vrot.slane %v962_v7, 5  ;;  %v816_v13 = vld [vmem:[%s1947_s27 + $0x11] sm:$0x1]  ;;  %v817_v14 = vld [vmem:[%s1947_s27 + $0x21] sm:$0x1]  ;;  %s1875_s26 = smov 80  }
  0x22   : > { %v1456_v15 = vsel %vm247_vm2, %v1455_v2, %v1454_v11  ;;  %v968_v16 = vsel %vm241_vm0, %v967_v8, %v959_v0  ;;  %v818_v17 = vld [vmem:[%s1947_s27 + $0x31] sm:$0x1]  ;;  %v823_v18 = vrot.slane %v816_v13, 7  ;;  %v825_v19 = vrot.slane %v817_v14, 6  ;;  %v1281_v20 = vld [vmem:[%s1947_s27 + $0x4] sm:$0x1] }
  0x23   : > { %1277 = vrot.lane.b32.xlu1 %v1276_v5, %s1862_s7  ;;  %1457 = vrot.lane.b32.xlu0 %v1456_v15, %s1863_s8  ;;  %v970_v21 = vsel %vm244_vm1, %v969_v9, %v968_v16  ;;  %v827_v22 = vrot.slane %v818_v17, 5  ;;  %v1282_v23 = vld [vmem:[%s1947_s27 + $0x14] sm:$0x1]  ;;  %v1283_v24 = vld [vmem:[%s1947_s27 + $0x24] sm:$0x1]  ;;  %vm1543_vm12 = vcmask 1043456  }
  0x24   : > { %v972_v25 = vsel %vm247_vm2, %v971_v12, %v970_v21  ;;  %v824_v26 = vsel %vm241_vm0, %v823_v18, %v815_v10  ;;  %v1284_v27 = vld [vmem:[%s1947_s27 + $0x34] sm:$0x1]  ;;  %v1289_v28 = vrot.slane %v1282_v23, 7  ;;  %v1291_v29 = vrot.slane %v1283_v24, 6  ;;  %v1137_v30 = vld [vmem:[%s1947_s27 + $0x4] sm:$0x1] }
  0x25   : > { %v826_v31 = vsel %vm244_vm1, %v825_v19, %v824_v26  ;;  %v1293_v32 = vrot.slane %v1284_v27, 5  ;;  %v1138_v33 = vld [vmem:[%s1947_s27 + $0x14] sm:$0x1]  ;;  %v1139_v34 = vld [vmem:[%s1947_s27 + $0x24] sm:$0x1]  ;;  %vm1539_vm13 = vcmask 293888  }
  0x26   : > { %v828_v35 = vsel %vm247_vm2, %v827_v22, %v826_v31  ;;  %v1290_v36 = vsel %vm241_vm0, %v1289_v28, %v1281_v20  ;;  %v1140_v37 = vld [vmem:[%s1947_s27 + $0x34] sm:$0x1]  ;;  %v1145_v38 = vrot.slane %v1138_v33, 7  ;;  %v1147_v39 = vrot.slane %v1139_v34, 6  ;;  %v833_v40 = vld [vmem:[%s1947_s27 + $0x2] sm:$0x1] }
  0x27   : > { %973 = vrot.lane.b32.xlu0 %v972_v25, %s1857_s28  ;;  %829 = vrot.lane.b32.xlu1 %v828_v35, %s1859_s30  ;;  %v1292_v41 = vsel %vm244_vm1, %v1291_v29, %v1290_v36  ;;  %v1149_v42 = vrot.slane %v1140_v37, 5  ;;  %v834_v43 = vld [vmem:[%s1947_s27 + $0x12] sm:$0x1]  ;;  %v835_v44 = vld [vmem:[%s1947_s27 + $0x22] sm:$0x1]  ;;  %p224_p6 = scmp.lt.s32.totalorder %s1843_s16, 1 }
  0x28   : > { %v1294_v45 = vsel %vm247_vm2, %v1293_v32, %v1292_v41  ;;  %v1146_v46 = vsel %vm241_vm0, %v1145_v38, %v1137_v30  ;;  %v836_v47 = vld [vmem:[%s1947_s27 + $0x32] sm:$0x1]  ;;  %v841_v48 = vrot.slane %v834_v43, 7  ;;  %v843_v49 = vrot.slane %v835_v44, 6  ;;  %v1461_v50 = vld [vmem:[%s1947_s27 + $0x6] sm:$0x1] }
  0x29   : > { %v1148_v51 = vsel %vm244_vm1, %v1147_v39, %v1146_v46  ;;  %v845_v52 = vrot.slane %v836_v47, 5  ;;  %v1462_v53 = vld [vmem:[%s1947_s27 + $0x16] sm:$0x1]  ;;  %v1463_v54 = vld [vmem:[%s1947_s27 + $0x26] sm:$0x1]  ;;  %p226_p7 = scmp.lt.s32.totalorder %s1839_s15, 1 }
  0x2a   : > { %v1150_v55 = vsel %vm247_vm2, %v1149_v42, %v1148_v51  ;;  %v842_v56 = vsel %vm241_vm0, %v841_v48, %v833_v40  ;;  %v1464_v57 = vld [vmem:[%s1947_s27 + $0x36] sm:$0x1]  ;;  %v1469_v58 = vrot.slane %v1462_v53, 7  ;;  %v1471_v59 = vrot.slane %v1463_v54, 6  ;;  %v1155_v60 = vld [vmem:[%s1947_s27 + $0x5] sm:$0x1] }
  0x2b   : > { %1295 = vrot.lane.b32.xlu0 %v1294_v45, %s1864_s9  ;;  %1151 = vrot.lane.b32.xlu1 %v1150_v55, %s1865_s10  ;;  %v844_v61 = vsel %vm244_vm1, %v843_v49, %v842_v56  ;;  %v1473_v62 = vrot.slane %v1464_v57, 5  ;;  %v1156_v63 = vld [vmem:[%s1947_s27 + $0x15] sm:$0x1]  ;;  %v1157_v0 = vld [vmem:[%s1947_s27 + $0x25] sm:$0x1]  ;;  %s2649_s16 = smov (!%p224_p6, %s1843_s16), 1 }
  0x2c   : > { %v846_v1 = vsel %vm247_vm2, %v845_v52, %v844_v61  ;;  %v1470_v2 = vsel %vm241_vm0, %v1469_v58, %v1461_v50  ;;  %v1158_v3 = vld [vmem:[%s1947_s27 + $0x35] sm:$0x1]  ;;  %v1163_v4 = vrot.slane %v1156_v63, 7  ;;  %v1165_v5 = vrot.slane %v1157_v0, 6  ;;  %v977_v6 = vld [vmem:[%s1947_s27 + $0x2] sm:$0x1] }
  0x2d   : > { %v1472_v7 = vsel %vm244_vm1, %v1471_v59, %v1470_v2  ;;  %v1167_v8 = vrot.slane %v1158_v3, 5  ;;  %v978_v9 = vld [vmem:[%s1947_s27 + $0x12] sm:$0x1]  ;;  %v979_v10 = vld [vmem:[%s1947_s27 + $0x22] sm:$0x1]  ;;  %s2651_s15 = smov (!%p226_p7, %s1839_s15), 1 }
  0x2e   : > { %v1474_v11 = vsel %vm247_vm2, %v1473_v62, %v1472_v7  ;;  %v1164_v12 = vsel %vm241_vm0, %v1163_v4, %v1155_v60  ;;  %v980_v13 = vld [vmem:[%s1947_s27 + $0x32] sm:$0x1]  ;;  %v985_v14 = vrot.slane %v978_v9, 7  ;;  %v987_v15 = vrot.slane %v979_v10, 6  ;;  %v1479_v16 = vld [vmem:[%s1947_s27 + $0x7] sm:$0x1] }
  0x2f   : > { %847 = vrot.lane.b32.xlu0 %v846_v1, %s1862_s7  ;;  %1475 = vrot.lane.b32.xlu1 %v1474_v11, %s1866_s11  ;;  %v1166_v17 = vsel %vm244_vm1, %v1165_v5, %v1164_v12  ;;  %v989_v18 = vrot.slane %v980_v13, 5  ;;  %v1480_v19 = vld [vmem:[%s1947_s27 + $0x17] sm:$0x1]  ;;  %v1481_v20 = vld [vmem:[%s1947_s27 + $0x27] sm:$0x1] }
  0x30   : > { %v1168_v21 = vsel %vm247_vm2, %v1167_v8, %v1166_v17  ;;  %v986_v22 = vsel %vm241_vm0, %v985_v14, %v977_v6  ;;  %v1482_v23 = vld [vmem:[%s1947_s27 + $0x37] sm:$0x1]  ;;  %v1487_v24 = vrot.slane %v1480_v19, 7  ;;  %v1489_v25 = vrot.slane %v1481_v20, 6  ;;  %v1299_v26 = vld [vmem:[%s1947_s27 + $0x5] sm:$0x1] }
  0x31   : > { %v988_v27 = vsel %vm244_vm1, %v987_v15, %v986_v22  ;;  %v1491_v28 = vrot.slane %v1482_v23, 5  ;;  %v1300_v29 = vld [vmem:[%s1947_s27 + $0x15] sm:$0x1]  ;;  %v1301_v30 = vld [vmem:[%s1947_s27 + $0x25] sm:$0x1] }
  0x32   : > { %v990_v31 = vsel %vm247_vm2, %v989_v18, %v988_v27  ;;  %v1488_v32 = vsel %vm241_vm0, %v1487_v24, %v1479_v16  ;;  %v1302_v33 = vld [vmem:[%s1947_s27 + $0x35] sm:$0x1]  ;;  %v1307_v34 = vrot.slane %v1300_v29, 7  ;;  %v1309_v35 = vrot.slane %v1301_v30, 6  ;;  %v851_v36 = vld [vmem:[%s1947_s27 + $0x3] sm:$0x1] }
  0x33   : > { %1169 = vrot.lane.b32.xlu0 %v1168_v21, %s1867_s12  ;;  %991 = vrot.lane.b32.xlu1 %v990_v31, %s1858_s29  ;;  %v1490_v37 = vsel %vm244_vm1, %v1489_v25, %v1488_v32  ;;  %v1311_v38 = vrot.slane %v1302_v33, 5  ;;  %v852_v39 = vld [vmem:[%s1947_s27 + $0x13] sm:$0x1]  ;;  %v853_v40 = vld [vmem:[%s1947_s27 + $0x23] sm:$0x1] }
  0x34   : > { %v1492_v41 = vsel %vm247_vm2, %v1491_v28, %v1490_v37  ;;  %v1308_v42 = vsel %vm241_vm0, %v1307_v34, %v1299_v26  ;;  %v854_v43 = vld [vmem:[%s1947_s27 + $0x33] sm:$0x1]  ;;  %v859_v44 = vrot.slane %v852_v39, 7  ;;  %v861_v45 = vrot.slane %v853_v40, 6  ;;  %v529_v46 = vld [vmem:[%s1947_s27] sm:$0x1] }
  0x35   : > { %v1310_v47 = vsel %vm244_vm1, %v1309_v35, %v1308_v42  ;;  %v863_v48 = vrot.slane %v854_v43, 5  ;;  %v530_v49 = vld [vmem:[%s1947_s27 + $0x10] sm:$0x1]  ;;  %v531_v50 = vld [vmem:[%s1947_s27 + $0x20] sm:$0x1] }
  0x36   : > { %v1312_v51 = vsel %vm247_vm2, %v1311_v38, %v1310_v47  ;;  %v860_v52 = vsel %vm241_vm0, %v859_v44, %v851_v36  ;;  %v532_v53 = vld [vmem:[%s1947_s27 + $0x30] sm:$0x1]  ;;  %v537_v54 = vrot.slane %v530_v49, 7  ;;  %v539_v55 = vrot.slane %v531_v50, 6  ;;  %v1173_v56 = vld [vmem:[%s1947_s27 + $0x6] sm:$0x1] }
  0x37   : > { %1493 = vrot.lane.b32.xlu0 %v1492_v41, %s1868_s13  ;;  %1313 = vrot.lane.b32.xlu1 %v1312_v51, %s1869_s14  ;;  %v862_v57 = vsel %vm244_vm1, %v861_v45, %v860_v52  ;;  %v541_v58 = vrot.slane %v532_v53, 5  ;;  %v1174_v59 = vld [vmem:[%s1947_s27 + $0x16] sm:$0x1]  ;;  %v1175_v60 = vld [vmem:[%s1947_s27 + $0x26] sm:$0x1] }
  0x38   : > { %v864_v61 = vsel %vm247_vm2, %v863_v48, %v862_v57  ;;  %v538_v62 = vsel %vm241_vm0, %v537_v54, %v529_v46  ;;  %v1176_v63 = vld [vmem:[%s1947_s27 + $0x36] sm:$0x1]  ;;  %v1181_v0 = vrot.slane %v1174_v59, 7  ;;  %v1183_v1 = vrot.slane %v1175_v60, 6  ;;  %v995_v2 = vld [vmem:[%s1947_s27 + $0x3] sm:$0x1] }
  0x39   : > { %v540_v3 = vsel %vm244_vm1, %v539_v55, %v538_v62  ;;  %v1185_v4 = vrot.slane %v1176_v63, 5  ;;  %v996_v5 = vld [vmem:[%s1947_s27 + $0x13] sm:$0x1]  ;;  %v997_v6 = vld [vmem:[%s1947_s27 + $0x23] sm:$0x1] }
  0x3a   : > { %v542_v7 = vsel %vm247_vm2, %v541_v58, %v540_v3  ;;  %v1182_v8 = vsel %vm241_vm0, %v1181_v0, %v1173_v56  ;;  %v998_v9 = vld [vmem:[%s1947_s27 + $0x33] sm:$0x1]  ;;  %v1003_v10 = vrot.slane %v996_v5, 7  ;;  %v1005_v11 = vrot.slane %v997_v6, 6  ;;  %v1497_v12 = vld [vmem:[%s1947_s27 + $0x8] sm:$0x1] }
  0x3b   : > { %865 = vrot.lane.b32.xlu0 %v864_v61, %s1864_s9  ;;  %543 = vrot.lane.b32.xlu1 %v542_v7, %s1857_s28  ;;  %v1184_v13 = vsel %vm244_vm1, %v1183_v1, %v1182_v8  ;;  %v1007_v14 = vrot.slane %v998_v9, 5  ;;  %v1498_v15 = vld [vmem:[%s1947_s27 + $0x18] sm:$0x1]  ;;  %v1499_v16 = vld [vmem:[%s1947_s27 + $0x28] sm:$0x1]  ;;  %s1876_s28 = smov 110  }
  0x3c   : > { %v1186_v17 = vsel %vm247_vm2, %v1185_v4, %v1184_v13  ;;  %v1004_v18 = vsel %vm241_vm0, %v1003_v10, %v995_v2  ;;  %v1500_v19 = vld [vmem:[%s1947_s27 + $0x38] sm:$0x1]  ;;  %v1505_v20 = vrot.slane %v1498_v15, 7  ;;  %v1507_v21 = vrot.slane %v1499_v16, 6  ;;  %v1317_v22 = vld [vmem:[%s1947_s27 + $0x6] sm:$0x1] }
  0x3d   : > { %v1006_v23 = vsel %vm244_vm1, %v1005_v11, %v1004_v18  ;;  %v1509_v24 = vrot.slane %v1500_v19, 5  ;;  %v1318_v25 = vld [vmem:[%s1947_s27 + $0x16] sm:$0x1]  ;;  %v1319_v26 = vld [vmem:[%s1947_s27 + $0x26] sm:$0x1] }
  0x3e   : > { %v1008_v27 = vsel %vm247_vm2, %v1007_v14, %v1006_v23  ;;  %v1506_v28 = vsel %vm241_vm0, %v1505_v20, %v1497_v12  ;;  %v1320_v29 = vld [vmem:[%s1947_s27 + $0x36] sm:$0x1]  ;;  %v1325_v30 = vrot.slane %v1318_v25, 7  ;;  %v1327_v31 = vrot.slane %v1319_v26, 6  ;;  %v689_v32 = vld [vmem:[%s1947_s27 + $0x2] sm:$0x1] }
  0x3f   : > { %1187 = vrot.lane.b32.xlu0 %v1186_v17, %s1870_s22  ;;  %1009 = vrot.lane.b32.xlu1 %v1008_v27, %s1860_s5  ;;  %v1508_v33 = vsel %vm244_vm1, %v1507_v21, %v1506_v28  ;;  %v1329_v34 = vrot.slane %v1320_v29, 5  ;;  %v690_v35 = vld [vmem:[%s1947_s27 + $0x12] sm:$0x1]  ;;  %v691_v36 = vld [vmem:[%s1947_s27 + $0x22] sm:$0x1] }
  0x40   : > { %v1510_v37 = vsel %vm247_vm2, %v1509_v24, %v1508_v33  ;;  %v1326_v38 = vsel %vm241_vm0, %v1325_v30, %v1317_v22  ;;  %v692_v39 = vld [vmem:[%s1947_s27 + $0x32] sm:$0x1]  ;;  %v697_v40 = vrot.slane %v690_v35, 7  ;;  %v699_v41 = vrot.slane %v691_v36, 6  ;;  %v547_v42 = vld [vmem:[%s1947_s27 + $0x1] sm:$0x1] }
  0x41   : > { %v1328_v43 = vsel %vm244_vm1, %v1327_v31, %v1326_v38  ;;  %v701_v44 = vrot.slane %v692_v39, 5  ;;  %v548_v45 = vld [vmem:[%s1947_s27 + $0x11] sm:$0x1]  ;;  %v549_v46 = vld [vmem:[%s1947_s27 + $0x21] sm:$0x1]  ;;  %v1873_v39 = vmov 0.0  }
  0x42   : > { %v1330_v47 = vsel %vm247_vm2, %v1329_v34, %v1328_v43  ;;  %v698_v48 = vsel %vm241_vm0, %v697_v40, %v689_v32  ;;  %v550_v49 = vld [vmem:[%s1947_s27 + $0x31] sm:$0x1]  ;;  %v555_v50 = vrot.slane %v548_v45, 7  ;;  %v557_v51 = vrot.slane %v549_v46, 6  ;;  %v1013_v52 = vld [vmem:[%s1947_s27 + $0x4] sm:$0x1]  ;;  %1736 = vmatprep.subr.mxu0 %v1873_v39  ;;  %1746 = vmatprep.mubr.msk.f32.mxu0 %vm1881_vm7, %v1873_v39 }
  0x43   : > { %1511 = vrot.lane.b32.xlu0 %v1510_v37, %s1871_s23  ;;  %1331 = vrot.lane.b32.xlu1 %v1330_v47, %s1872_s24  ;;  %v700_v53 = vsel %vm244_vm1, %v699_v41, %v698_v48  ;;  %v559_v54 = vrot.slane %v550_v49, 5  ;;  %v1014_v55 = vld [vmem:[%s1947_s27 + $0x14] sm:$0x1]  ;;  %v1015_v56 = vld [vmem:[%s1947_s27 + $0x24] sm:$0x1] }
  0x44   : > { %v702_v57 = vsel %vm247_vm2, %v701_v44, %v700_v53  ;;  %v556_v58 = vsel %vm241_vm0, %v555_v50, %v547_v42  ;;  %v1016_v59 = vld [vmem:[%s1947_s27 + $0x34] sm:$0x1]  ;;  %v1021_v60 = vrot.slane %v1014_v55, 7  ;;  %v1023_v61 = vrot.slane %v1015_v56, 6  ;;  %v869_v62 = vld [vmem:[%s1947_s27 + $0x4] sm:$0x1] }
  0x45   : > { %v558_v63 = vsel %vm244_vm1, %v557_v51, %v556_v58  ;;  %v1025_v0 = vrot.slane %v1016_v59, 5  ;;  %v870_v1 = vld [vmem:[%s1947_s27 + $0x14] sm:$0x1]  ;;  %v871_v2 = vld [vmem:[%s1947_s27 + $0x24] sm:$0x1] }
  0x46   : > { %v560_v3 = vsel %vm247_vm2, %v559_v54, %v558_v63  ;;  %v1022_v4 = vsel %vm241_vm0, %v1021_v60, %v1013_v52  ;;  %v872_v5 = vld [vmem:[%s1947_s27 + $0x34] sm:$0x1]  ;;  %v877_v6 = vrot.slane %v870_v1, 7  ;;  %v879_v7 = vrot.slane %v871_v2, 6  ;;  %v1335_v8 = vld [vmem:[%s1947_s27 + $0x7] sm:$0x1] }
  0x47   : > { %703 = vrot.lane.b32.xlu0 %v702_v57, %s1861_s6  ;;  %561 = vrot.lane.b32.xlu1 %v560_v3, %s1858_s29  ;;  %v1024_v9 = vsel %vm244_vm1, %v1023_v61, %v1022_v4  ;;  %v881_v10 = vrot.slane %v872_v5, 5  ;;  %v1336_v11 = vld [vmem:[%s1947_s27 + $0x17] sm:$0x1]  ;;  %v1337_v12 = vld [vmem:[%s1947_s27 + $0x27] sm:$0x1]  ;;  %s1877_s29 = smov 96  }
  0x48   : > { %v1026_v13 = vsel %vm247_vm2, %v1025_v0, %v1024_v9  ;;  %v878_v14 = vsel %vm241_vm0, %v877_v6, %v869_v62  ;;  %v1338_v15 = vld [vmem:[%s1947_s27 + $0x37] sm:$0x1]  ;;  %v1343_v16 = vrot.slane %v1336_v11, 7  ;;  %v1345_v17 = vrot.slane %v1337_v12, 6  ;;  %v1191_v18 = vld [vmem:[%s1947_s27 + $0x7] sm:$0x1] }
  0x49   : > { %v880_v19 = vsel %vm244_vm1, %v879_v7, %v878_v14  ;;  %v1347_v20 = vrot.slane %v1338_v15, 5  ;;  %v1192_v21 = vld [vmem:[%s1947_s27 + $0x17] sm:$0x1]  ;;  %v1193_v22 = vld [vmem:[%s1947_s27 + $0x27] sm:$0x1] }
  0x4a   : > { %v882_v23 = vsel %vm247_vm2, %v881_v10, %v880_v19  ;;  %v1344_v24 = vsel %vm241_vm0, %v1343_v16, %v1335_v8  ;;  %v1194_v25 = vld [vmem:[%s1947_s27 + $0x37] sm:$0x1]  ;;  %v1199_v26 = vrot.slane %v1192_v21, 7  ;;  %v1201_v27 = vrot.slane %v1193_v22, 6  ;;  %v1515_v28 = vld [vmem:[%s1947_s27 + $0x9] sm:$0x1] }
  0x4b   : > { %1027 = vrot.lane.b32.xlu0 %v1026_v13, %s1863_s8  ;;  %883 = vrot.lane.b32.xlu1 %v882_v23, %s1869_s14  ;;  %v1346_v29 = vsel %vm244_vm1, %v1345_v17, %v1344_v24  ;;  %v1203_v30 = vrot.slane %v1194_v25, 5  ;;  %v1516_v31 = vld [vmem:[%s1947_s27 + $0x19] sm:$0x1]  ;;  %v1517_v32 = vld [vmem:[%s1947_s27 + $0x29] sm:$0x1] }
  0x4c   : > { %v1348_v33 = vsel %vm247_vm2, %v1347_v20, %v1346_v29  ;;  %v1200_v34 = vsel %vm241_vm0, %v1199_v26, %v1191_v18  ;;  %v1518_v35 = vld [vmem:[%s1947_s27 + $0x39] sm:$0x1]  ;;  %v1523_v36 = vrot.slane %v1516_v31, 7  ;;  %v1525_v37 = vrot.slane %v1517_v32, 6  ;;  %v385_v38 = vld [vmem:[%s1947_s27] sm:$0x1] }
  0x4d   : > { %v1202_v40 = vsel %vm244_vm1, %v1201_v27, %v1200_v34  ;;  %v1527_v41 = vrot.slane %v1518_v35, 5  ;;  %v386_v42 = vld [vmem:[%s1947_s27 + $0x10] sm:$0x1]  ;;  %v387_v43 = vld [vmem:[%s1947_s27 + $0x20] sm:$0x1] }
  0x4e   : > { %v1204_v44 = vsel %vm247_vm2, %v1203_v30, %v1202_v40  ;;  %v1524_v45 = vsel %vm241_vm0, %v1523_v36, %v1515_v28  ;;  %v388_v46 = vld [vmem:[%s1947_s27 + $0x30] sm:$0x1]  ;;  %v393_v47 = vrot.slane %v386_v42, 7  ;;  %v395_v48 = vrot.slane %v387_v43, 6  ;;  %v565_v49 = vld [vmem:[%s1947_s27 + $0x2] sm:$0x1] }
  0x4f   : > { %1349 = vrot.lane.b32.xlu0 %v1348_v33, %s1874_s25  ;;  %1205 = vrot.lane.b32.xlu1 %v1204_v44, %s1875_s26  ;;  %v1526_v50 = vsel %vm244_vm1, %v1525_v37, %v1524_v45  ;;  %v397_v51 = vrot.slane %v388_v46, 5  ;;  %v566_v52 = vld [vmem:[%s1947_s27 + $0x12] sm:$0x1]  ;;  %v567_v53 = vld [vmem:[%s1947_s27 + $0x22] sm:$0x1] }
  0x50   : > { %v1528_v54 = vsel %vm247_vm2, %v1527_v41, %v1526_v50  ;;  %v394_v55 = vsel %vm241_vm0, %v393_v47, %v385_v38  ;;  %v568_v56 = vld [vmem:[%s1947_s27 + $0x32] sm:$0x1]  ;;  %v573_v57 = vrot.slane %v566_v52, 7  ;;  %v575_v58 = vrot.slane %v567_v53, 6  ;;  %v707_v59 = vld [vmem:[%s1947_s27 + $0x3] sm:$0x1] }
  0x51   : > { %v396_v60 = vsel %vm244_vm1, %v395_v48, %v394_v55  ;;  %v577_v61 = vrot.slane %v568_v56, 5  ;;  %v708_v62 = vld [vmem:[%s1947_s27 + $0x13] sm:$0x1]  ;;  %v709_v63 = vld [vmem:[%s1947_s27 + $0x23] sm:$0x1] }
  0x52   : > { %v398_v0 = vsel %vm247_vm2, %v397_v51, %v396_v60  ;;  %v574_v1 = vsel %vm241_vm0, %v573_v57, %v565_v49  ;;  %v710_v2 = vld [vmem:[%s1947_s27 + $0x33] sm:$0x1]  ;;  %v715_v3 = vrot.slane %v708_v62, 7  ;;  %v717_v4 = vrot.slane %v709_v63, 6  ;;  %v887_v5 = vld [vmem:[%s1947_s27 + $0x5] sm:$0x1] }
  0x53   : > { %1529 = vrot.lane.b32.xlu1 %v1528_v54, %s1876_s28  ;;  %399 = vrot.lane.b32.xlu0 %v398_v0, %s1859_s30  ;;  %v576_v6 = vsel %vm244_vm1, %v575_v58, %v574_v1  ;;  %v719_v7 = vrot.slane %v710_v2, 5  ;;  %v888_v8 = vld [vmem:[%s1947_s27 + $0x15] sm:$0x1]  ;;  %v889_v9 = vld [vmem:[%s1947_s27 + $0x25] sm:$0x1]  ;;  %s1878_s30 = smov 95  }
  0x54   : > { %v578_v10 = vsel %vm247_vm2, %v577_v61, %v576_v6  ;;  %v716_v11 = vsel %vm241_vm0, %v715_v3, %v707_v59  ;;  %v890_v12 = vld [vmem:[%s1947_s27 + $0x35] sm:$0x1]  ;;  %v895_v13 = vrot.slane %v888_v8, 7  ;;  %v897_v14 = vrot.slane %v889_v9, 6  ;;  %v1031_v15 = vld [vmem:[%s1947_s27 + $0x5] sm:$0x1] }
  0x55   : > { %v718_v16 = vsel %vm244_vm1, %v717_v4, %v716_v11  ;;  %v899_v17 = vrot.slane %v890_v12, 5  ;;  %v1032_v18 = vld [vmem:[%s1947_s27 + $0x15] sm:$0x1]  ;;  %v1033_v19 = vld [vmem:[%s1947_s27 + $0x25] sm:$0x1] }
  0x56   : > { %v720_v20 = vsel %vm247_vm2, %v719_v7, %v718_v16  ;;  %v896_v21 = vsel %vm241_vm0, %v895_v13, %v887_v5  ;;  %v1034_v22 = vld [vmem:[%s1947_s27 + $0x35] sm:$0x1]  ;;  %v1039_v23 = vrot.slane %v1032_v18, 7  ;;  %v1041_v24 = vrot.slane %v1033_v19, 6  ;;  %v1209_v25 = vld [vmem:[%s1947_s27 + $0x8] sm:$0x1] }
  0x57   : > { %579 = vrot.lane.b32.xlu1 %v578_v10, %s1860_s5  ;;  %721 = vrot.lane.b32.xlu0 %v720_v20, %s1865_s10  ;;  %v898_v26 = vsel %vm244_vm1, %v897_v14, %v896_v21  ;;  %v1043_v27 = vrot.slane %v1034_v22, 5  ;;  %v1210_v28 = vld [vmem:[%s1947_s27 + $0x18] sm:$0x1]  ;;  %v1211_v29 = vld [vmem:[%s1947_s27 + $0x28] sm:$0x1]  ;;  %s1879_s5 = smov 111  }
  0x58   : > { %v900_v30 = vsel %vm247_vm2, %v899_v17, %v898_v26  ;;  %v1040_v31 = vsel %vm241_vm0, %v1039_v23, %v1031_v15  ;;  %v1212_v32 = vld [vmem:[%s1947_s27 + $0x38] sm:$0x1]  ;;  %v1217_v33 = vrot.slane %v1210_v28, 7  ;;  %v1219_v34 = vrot.slane %v1211_v29, 6  ;;  %v1353_v35 = vld [vmem:[%s1947_s27 + $0x8] sm:$0x1] }
  0x59   : > { %v1042_v36 = vsel %vm244_vm1, %v1041_v24, %v1040_v31  ;;  %v1221_v37 = vrot.slane %v1212_v32, 5  ;;  %v1354_v38 = vld [vmem:[%s1947_s27 + $0x18] sm:$0x1]  ;;  %v1355_v40 = vld [vmem:[%s1947_s27 + $0x28] sm:$0x1] }
  0x5a   : > { %v1044_v41 = vsel %vm247_vm2, %v1043_v27, %v1042_v36  ;;  %v1218_v42 = vsel %vm241_vm0, %v1217_v33, %v1209_v25  ;;  %v1356_v43 = vld [vmem:[%s1947_s27 + $0x38] sm:$0x1]  ;;  %v1361_v44 = vrot.slane %v1354_v38, 7  ;;  %v1363_v45 = vrot.slane %v1355_v40, 6  ;;  %v403_v46 = vld [vmem:[%s1947_s27 + $0x1] sm:$0x1] }
  0x5b   : > { %901 = vrot.lane.b32.xlu1 %v900_v30, %s1872_s24  ;;  %1045 = vrot.lane.b32.xlu0 %v1044_v41, %s1866_s11  ;;  %v1220_v47 = vsel %vm244_vm1, %v1219_v34, %v1218_v42  ;;  %v1365_v48 = vrot.slane %v1356_v43, 5  ;;  %v404_v49 = vld [vmem:[%s1947_s27 + $0x11] sm:$0x1]  ;;  %v405_v50 = vld [vmem:[%s1947_s27 + $0x21] sm:$0x1] }
  0x5c   : > { %v1222_v51 = vsel %vm247_vm2, %v1221_v37, %v1220_v47  ;;  %v1362_v52 = vsel %vm241_vm0, %v1361_v44, %v1353_v35  ;;  %v406_v53 = vld [vmem:[%s1947_s27 + $0x31] sm:$0x1]  ;;  %v411_v54 = vrot.slane %v404_v49, 7  ;;  %v413_v55 = vrot.slane %v405_v50, 6  ;;  %v252_v56 = vld [vmem:[%s1947_s27 + $0x1] sm:$0x1] }
  0x5d   : > { %v1364_v57 = vsel %vm244_vm1, %v1363_v45, %v1362_v52  ;;  %v415_v58 = vrot.slane %v406_v53, 5  ;;  %v253_v59 = vld [vmem:[%s1947_s27 + $0x11] sm:$0x1]  ;;  %v254_v60 = vld [vmem:[%s1947_s27 + $0x21] sm:$0x1] }
  0x5e   : > { %v1366_v61 = vsel %vm247_vm2, %v1365_v48, %v1364_v57  ;;  %v412_v62 = vsel %vm241_vm0, %v411_v54, %v403_v46  ;;  %v255_v63 = vld [vmem:[%s1947_s27 + $0x31] sm:$0x1]  ;;  %v260_v0 = vrot.slane %v253_v59, 7  ;;  %v262_v1 = vrot.slane %v254_v60, 6  ;;  %v725_v2 = vld [vmem:[%s1947_s27 + $0x4] sm:$0x1] }
  0x5f   : > { %1223 = vrot.lane.b32.xlu1 %v1222_v51, %s1877_s29  ;;  %1367 = vrot.lane.b32.xlu0 %v1366_v61, %s1878_s30  ;;  %v414_v3 = vsel %vm244_vm1, %v413_v55, %v412_v62  ;;  %v264_v4 = vrot.slane %v255_v63, 5  ;;  %v726_v5 = vld [vmem:[%s1947_s27 + $0x14] sm:$0x1]  ;;  %v727_v6 = vld [vmem:[%s1947_s27 + $0x24] sm:$0x1] }
  0x60   : > { %v416_v7 = vsel %vm247_vm2, %v415_v58, %v414_v3  ;;  %v261_v8 = vsel %vm241_vm0, %v260_v0, %v252_v56  ;;  %v728_v9 = vld [vmem:[%s1947_s27 + $0x34] sm:$0x1]  ;;  %v733_v10 = vrot.slane %v726_v5, 7  ;;  %v735_v11 = vrot.slane %v727_v6, 6  ;;  %v583_v12 = vld [vmem:[%s1947_s27 + $0x3] sm:$0x1] }
  0x61   : > { %v263_v13 = vsel %vm244_vm1, %v262_v1, %v261_v8  ;;  %v737_v14 = vrot.slane %v728_v9, 5  ;;  %v584_v15 = vld [vmem:[%s1947_s27 + $0x13] sm:$0x1]  ;;  %v585_v16 = vld [vmem:[%s1947_s27 + $0x23] sm:$0x1] }
  0x62   : > { %v265_v17 = vsel %vm247_vm2, %v264_v4, %v263_v13  ;;  %v734_v18 = vsel %vm241_vm0, %v733_v10, %v725_v2  ;;  %v586_v19 = vld [vmem:[%s1947_s27 + $0x33] sm:$0x1]  ;;  %v591_v20 = vrot.slane %v584_v15, 7  ;;  %v593_v21 = vrot.slane %v585_v16, 6  ;;  %v1049_v22 = vld [vmem:[%s1947_s27 + $0x6] sm:$0x1] }
  0x63   : > { %417 = vrot.lane.b32.xlu0 %v416_v7, %s1862_s7  ;;  %266 = vrot.lane.b32.xlu1 %v265_v17, %s1861_s6  ;;  %v736_v23 = vsel %vm244_vm1, %v735_v11, %v734_v18  ;;  %v595_v24 = vrot.slane %v586_v19, 5  ;;  %v1050_v25 = vld [vmem:[%s1947_s27 + $0x16] sm:$0x1]  ;;  %v1051_v26 = vld [vmem:[%s1947_s27 + $0x26] sm:$0x1]  ;;  %s1880_s6 = smov 112  }
  0x64   : > { %v738_v27 = vsel %vm247_vm2, %v737_v14, %v736_v23  ;;  %v592_v28 = vsel %vm241_vm0, %v591_v20, %v583_v12  ;;  %v1052_v29 = vld [vmem:[%s1947_s27 + $0x36] sm:$0x1]  ;;  %v1057_v30 = vrot.slane %v1050_v25, 7  ;;  %v1059_v31 = vrot.slane %v1051_v26, 6  ;;  %v905_v32 = vld [vmem:[%s1947_s27 + $0x6] sm:$0x1] }
  0x65   : > { %v594_v33 = vsel %vm244_vm1, %v593_v21, %v592_v28  ;;  %v1061_v34 = vrot.slane %v1052_v29, 5  ;;  %v906_v35 = vld [vmem:[%s1947_s27 + $0x16] sm:$0x1]  ;;  %v907_v36 = vld [vmem:[%s1947_s27 + $0x26] sm:$0x1] }
  0x66   : > { %v596_v37 = vsel %vm247_vm2, %v595_v24, %v594_v33  ;;  %v1058_v38 = vsel %vm241_vm0, %v1057_v30, %v1049_v22  ;;  %v908_v40 = vld [vmem:[%s1947_s27 + $0x36] sm:$0x1]  ;;  %v913_v41 = vrot.slane %v906_v35, 7  ;;  %v915_v42 = vrot.slane %v907_v36, 6  ;;  %v1371_v43 = vld [vmem:[%s1947_s27 + $0x9] sm:$0x1] }
  0x67   : > { %739 = vrot.lane.b32.xlu0 %v738_v27, %s1867_s12  ;;  %597 = vrot.lane.b32.xlu1 %v596_v37, %s1863_s8  ;;  %v1060_v44 = vsel %vm244_vm1, %v1059_v31, %v1058_v38  ;;  %v917_v45 = vrot.slane %v908_v40, 5  ;;  %v1372_v46 = vld [vmem:[%s1947_s27 + $0x19] sm:$0x1]  ;;  %v1373_v47 = vld [vmem:[%s1947_s27 + $0x29] sm:$0x1] }
  0x68   : > { %v1062_v48 = vsel %vm247_vm2, %v1061_v34, %v1060_v44  ;;  %v914_v49 = vsel %vm241_vm0, %v913_v41, %v905_v32  ;;  %v1374_v50 = vld [vmem:[%s1947_s27 + $0x39] sm:$0x1]  ;;  %v1379_v51 = vrot.slane %v1372_v46, 7  ;;  %v1381_v52 = vrot.slane %v1373_v47, 6  ;;  %v1227_v53 = vld [vmem:[%s1947_s27 + $0x9] sm:$0x1] }
  0x69   : > { %v916_v54 = vsel %vm244_vm1, %v915_v42, %v914_v49  ;;  %v1383_v55 = vrot.slane %v1374_v50, 5  ;;  %v1228_v56 = vld [vmem:[%s1947_s27 + $0x19] sm:$0x1]  ;;  %v1229_v57 = vld [vmem:[%s1947_s27 + $0x29] sm:$0x1] }
  0x6a   : > { %v918_v58 = vsel %vm247_vm2, %v917_v45, %v916_v54  ;;  %v1380_v59 = vsel %vm241_vm0, %v1379_v51, %v1371_v43  ;;  %v1230_v60 = vld [vmem:[%s1947_s27 + $0x39] sm:$0x1]  ;;  %v1235_v61 = vrot.slane %v1228_v56, 7  ;;  %v1237_v62 = vrot.slane %v1229_v57, 6  ;;  %v421_v63 = vld [vmem:[%s1947_s27 + $0x2] sm:$0x1] }
  0x6b   : > { %1063 = vrot.lane.b32.xlu0 %v1062_v48, %s1868_s13  ;;  %919 = vrot.lane.b32.xlu1 %v918_v58, %s1874_s25  ;;  %v1382_v0 = vsel %vm244_vm1, %v1381_v52, %v1380_v59  ;;  %v1239_v1 = vrot.slane %v1230_v60, 5  ;;  %v422_v2 = vld [vmem:[%s1947_s27 + $0x12] sm:$0x1]  ;;  %v423_v3 = vld [vmem:[%s1947_s27 + $0x22] sm:$0x1] }
  0x6c   : > { %v1384_v4 = vsel %vm247_vm2, %v1383_v55, %v1382_v0  ;;  %v1236_v5 = vsel %vm241_vm0, %v1235_v61, %v1227_v53  ;;  %v424_v6 = vld [vmem:[%s1947_s27 + $0x32] sm:$0x1]  ;;  %v429_v7 = vrot.slane %v422_v2, 7  ;;  %v431_v8 = vrot.slane %v423_v3, 6  ;;  %v271_v9 = vld [vmem:[%s1947_s27 + $0x2] sm:$0x1] }
  0x6d   : > { %v1238_v10 = vsel %vm244_vm1, %v1237_v62, %v1236_v5  ;;  %v433_v11 = vrot.slane %v424_v6, 5  ;;  %v272_v12 = vld [vmem:[%s1947_s27 + $0x12] sm:$0x1]  ;;  %v273_v13 = vld [vmem:[%s1947_s27 + $0x22] sm:$0x1] }
  0x6e   : > { %v1240_v14 = vsel %vm247_vm2, %v1239_v1, %v1238_v10  ;;  %v430_v15 = vsel %vm241_vm0, %v429_v7, %v421_v63  ;;  %v274_v16 = vld [vmem:[%s1947_s27 + $0x32] sm:$0x1]  ;;  %v279_v17 = vrot.slane %v272_v12, 7  ;;  %v281_v18 = vrot.slane %v273_v13, 6  ;;  %v743_v19 = vld [vmem:[%s1947_s27 + $0x5] sm:$0x1] }
  0x6f   : > { %1385 = vrot.lane.b32.xlu0 %v1384_v4, %s1879_s5  ;;  %1241 = vrot.lane.b32.xlu1 %v1240_v14, %s1880_s6  ;;  %v432_v20 = vsel %vm244_vm1, %v431_v8, %v430_v15  ;;  %v283_v21 = vrot.slane %v274_v16, 5  ;;  %v744_v22 = vld [vmem:[%s1947_s27 + $0x15] sm:$0x1]  ;;  %v745_v23 = vld [vmem:[%s1947_s27 + $0x25] sm:$0x1] }
  0x70   : > { %v434_v24 = vsel %vm247_vm2, %v433_v11, %v432_v20  ;;  %v280_v25 = vsel %vm241_vm0, %v279_v17, %v271_v9  ;;  %v746_v26 = vld [vmem:[%s1947_s27 + $0x35] sm:$0x1]  ;;  %v751_v27 = vrot.slane %v744_v22, 7  ;;  %v753_v28 = vrot.slane %v745_v23, 6  ;;  %v601_v29 = vld [vmem:[%s1947_s27 + $0x4] sm:$0x1] }
  0x71   : > { %v282_v30 = vsel %vm244_vm1, %v281_v18, %v280_v25  ;;  %v755_v31 = vrot.slane %v746_v26, 5  ;;  %v602_v32 = vld [vmem:[%s1947_s27 + $0x14] sm:$0x1]  ;;  %v603_v33 = vld [vmem:[%s1947_s27 + $0x24] sm:$0x1] }
  0x72   : > { %v284_v34 = vsel %vm247_vm2, %v283_v21, %v282_v30  ;;  %v752_v35 = vsel %vm241_vm0, %v751_v27, %v743_v19  ;;  %v604_v36 = vld [vmem:[%s1947_s27 + $0x34] sm:$0x1]  ;;  %v609_v37 = vrot.slane %v602_v32, 7  ;;  %v611_v38 = vrot.slane %v603_v33, 6  ;;  %v1067_v40 = vld [vmem:[%s1947_s27 + $0x7] sm:$0x1] }
  0x73   : > { %435 = vrot.lane.b32.xlu0 %v434_v24, %s1864_s9  ;;  %285 = vrot.lane.b32.xlu1 %v284_v34, %s1865_s10  ;;  %v754_v41 = vsel %vm244_vm1, %v753_v28, %v752_v35  ;;  %v613_v42 = vrot.slane %v604_v36, 5  ;;  %v1068_v43 = vld [vmem:[%s1947_s27 + $0x17] sm:$0x1]  ;;  %v1069_v44 = vld [vmem:[%s1947_s27 + $0x27] sm:$0x1] }
  0x74   : > { %v756_v45 = vsel %vm247_vm2, %v755_v31, %v754_v41  ;;  %v610_v46 = vsel %vm241_vm0, %v609_v37, %v601_v29  ;;  %v1070_v47 = vld [vmem:[%s1947_s27 + $0x37] sm:$0x1]  ;;  %v1075_v48 = vrot.slane %v1068_v43, 7  ;;  %v1077_v49 = vrot.slane %v1069_v44, 6  ;;  %v923_v50 = vld [vmem:[%s1947_s27 + $0x7] sm:$0x1] }
  0x75   : > { %v612_v51 = vsel %vm244_vm1, %v611_v38, %v610_v46  ;;  %v1079_v52 = vrot.slane %v1070_v47, 5  ;;  %v924_v53 = vld [vmem:[%s1947_s27 + $0x17] sm:$0x1]  ;;  %v925_v54 = vld [vmem:[%s1947_s27 + $0x27] sm:$0x1] }
  0x76   : > { %v614_v55 = vsel %vm247_vm2, %v613_v42, %v612_v51  ;;  %v1076_v56 = vsel %vm241_vm0, %v1075_v48, %v1067_v40  ;;  %v926_v57 = vld [vmem:[%s1947_s27 + $0x37] sm:$0x1]  ;;  %v931_v58 = vrot.slane %v924_v53, 7  ;;  %v933_v59 = vrot.slane %v925_v54, 6  ;;  %v439_v60 = vld [vmem:[%s1947_s27 + $0x3] sm:$0x1] }
  0x77   : > { %757 = vrot.lane.b32.xlu0 %v756_v45, %s1870_s22  ;;  %615 = vrot.lane.b32.xlu1 %v614_v55, %s1866_s11  ;;  %v1078_v61 = vsel %vm244_vm1, %v1077_v49, %v1076_v56  ;;  %v935_v62 = vrot.slane %v926_v57, 5  ;;  %v440_v63 = vld [vmem:[%s1947_s27 + $0x13] sm:$0x1]  ;;  %v441_v0 = vld [vmem:[%s1947_s27 + $0x23] sm:$0x1] }
  0x78   : > { %v1080_v1 = vsel %vm247_vm2, %v1079_v52, %v1078_v61  ;;  %v932_v2 = vsel %vm241_vm0, %v931_v58, %v923_v50  ;;  %v442_v3 = vld [vmem:[%s1947_s27 + $0x33] sm:$0x1]  ;;  %v447_v4 = vrot.slane %v440_v63, 7  ;;  %v449_v5 = vrot.slane %v441_v0, 6  ;;  %v290_v6 = vld [vmem:[%s1947_s27 + $0x3] sm:$0x1] }
  0x79   : > { %v934_v7 = vsel %vm244_vm1, %v933_v59, %v932_v2  ;;  %v451_v8 = vrot.slane %v442_v3, 5  ;;  %v291_v9 = vld [vmem:[%s1947_s27 + $0x13] sm:$0x1]  ;;  %v292_v10 = vld [vmem:[%s1947_s27 + $0x23] sm:$0x1] }
  0x7a   : > { %v936_v11 = vsel %vm247_vm2, %v935_v62, %v934_v7  ;;  %v448_v12 = vsel %vm241_vm0, %v447_v4, %v439_v60  ;;  %v293_v13 = vld [vmem:[%s1947_s27 + $0x33] sm:$0x1]  ;;  %v298_v14 = vrot.slane %v291_v9, 7  ;;  %v300_v15 = vrot.slane %v292_v10, 6  ;;  %v761_v16 = vld [vmem:[%s1947_s27 + $0x6] sm:$0x1] }
  0x7b   : > { %1081 = vrot.lane.b32.xlu0 %v1080_v1, %s1871_s23  ;;  %937 = vrot.lane.b32.xlu1 %v936_v11, %s1878_s30  ;;  %v450_v17 = vsel %vm244_vm1, %v449_v5, %v448_v12  ;;  %v302_v18 = vrot.slane %v293_v13, 5  ;;  %v762_v19 = vld [vmem:[%s1947_s27 + $0x16] sm:$0x1]  ;;  %v763_v20 = vld [vmem:[%s1947_s27 + $0x26] sm:$0x1] }
  0x7c   : > { %v452_v21 = vsel %vm247_vm2, %v451_v8, %v450_v17  ;;  %v299_v22 = vsel %vm241_vm0, %v298_v14, %v290_v6  ;;  %v764_v23 = vld [vmem:[%s1947_s27 + $0x36] sm:$0x1]  ;;  %v769_v24 = vrot.slane %v762_v19, 7  ;;  %v771_v25 = vrot.slane %v763_v20, 6  ;;  %v619_v26 = vld [vmem:[%s1947_s27 + $0x5] sm:$0x1] }
  0x7d   : > { %v301_v27 = vsel %vm244_vm1, %v300_v15, %v299_v22  ;;  %v773_v28 = vrot.slane %v764_v23, 5  ;;  %v620_v29 = vld [vmem:[%s1947_s27 + $0x15] sm:$0x1]  ;;  %v621_v30 = vld [vmem:[%s1947_s27 + $0x25] sm:$0x1] }
  0x7e   : > { %v303_v31 = vsel %vm247_vm2, %v302_v18, %v301_v27  ;;  %v770_v32 = vsel %vm241_vm0, %v769_v24, %v761_v16  ;;  %v622_v33 = vld [vmem:[%s1947_s27 + $0x35] sm:$0x1]  ;;  %v627_v34 = vrot.slane %v620_v29, 7  ;;  %v629_v35 = vrot.slane %v621_v30, 6  ;;  %v1085_v36 = vld [vmem:[%s1947_s27 + $0x8] sm:$0x1] }
  0x7f   : > { %453 = vrot.lane.b32.xlu0 %v452_v21, %s1869_s14  ;;  %304 = vrot.lane.b32.xlu1 %v303_v31, %s1867_s12  ;;  %v772_v37 = vsel %vm244_vm1, %v771_v25, %v770_v32  ;;  %v631_v38 = vrot.slane %v622_v33, 5  ;;  %v1086_v40 = vld [vmem:[%s1947_s27 + $0x18] sm:$0x1]  ;;  %v1087_v41 = vld [vmem:[%s1947_s27 + $0x28] sm:$0x1]  ;;  %s1723_s12 = sshll.u32 %s2649_s16, 1 }
  0x80   : > { %v774_v42 = vsel %vm247_vm2, %v773_v28, %v772_v37  ;;  %v628_v43 = vsel %vm241_vm0, %v627_v34, %v619_v26  ;;  %v1088_v44 = vld [vmem:[%s1947_s27 + $0x38] sm:$0x1]  ;;  %v1093_v45 = vrot.slane %v1086_v40, 7  ;;  %v1095_v46 = vrot.slane %v1087_v41, 6  ;;  %v941_v47 = vld [vmem:[%s1947_s27 + $0x8] sm:$0x1] }
  0x81   : > { %v630_v48 = vsel %vm244_vm1, %v629_v35, %v628_v43  ;;  %v1097_v49 = vrot.slane %v1088_v44, 5  ;;  %v942_v50 = vld [vmem:[%s1947_s27 + $0x18] sm:$0x1]  ;;  %v943_v51 = vld [vmem:[%s1947_s27 + $0x28] sm:$0x1] }
  0x82   : > { %v632_v52 = vsel %vm247_vm2, %v631_v38, %v630_v48  ;;  %v1094_v53 = vsel %vm241_vm0, %v1093_v45, %v1085_v36  ;;  %v944_v54 = vld [vmem:[%s1947_s27 + $0x38] sm:$0x1]  ;;  %v949_v55 = vrot.slane %v942_v50, 7  ;;  %v951_v56 = vrot.slane %v943_v51, 6  ;;  %v457_v57 = vld [vmem:[%s1947_s27 + $0x4] sm:$0x1] }
  0x83   : > { %775 = vrot.lane.b32.xlu0 %v774_v42, %s1875_s26  ;;  %633 = vrot.lane.b32.xlu1 %v632_v52, %s1868_s13  ;;  %v1096_v58 = vsel %vm244_vm1, %v1095_v46, %v1094_v53  ;;  %v953_v59 = vrot.slane %v944_v54, 5  ;;  %v458_v60 = vld [vmem:[%s1947_s27 + $0x14] sm:$0x1]  ;;  %v459_v61 = vld [vmem:[%s1947_s27 + $0x24] sm:$0x1]  ;;  %s229_s13 = sadd.s32 %s1723_s12, %s2651_s15 }
  0x84   : > { %v1098_v62 = vsel %vm247_vm2, %v1097_v49, %v1096_v58  ;;  %v950_v63 = vsel %vm241_vm0, %v949_v55, %v941_v47  ;;  %v460_v0 = vld [vmem:[%s1947_s27 + $0x34] sm:$0x1]  ;;  %v465_v1 = vrot.slane %v458_v60, 7  ;;  %v467_v2 = vrot.slane %v459_v61, 6  ;;  %v309_v3 = vld [vmem:[%s1947_s27 + $0x4] sm:$0x1] }
  0x85   : > { %v952_v4 = vsel %vm244_vm1, %v951_v56, %v950_v63  ;;  %v469_v5 = vrot.slane %v460_v0, 5  ;;  %v310_v6 = vld [vmem:[%s1947_s27 + $0x14] sm:$0x1]  ;;  %v311_v7 = vld [vmem:[%s1947_s27 + $0x24] sm:$0x1]  ;;  %s1724_s14 = sshll.u32 %s229_s13, 3 }
  0x86   : > { %v954_v8 = vsel %vm247_vm2, %v953_v59, %v952_v4  ;;  %v466_v9 = vsel %vm241_vm0, %v465_v1, %v457_v57  ;;  %v312_v10 = vld [vmem:[%s1947_s27 + $0x34] sm:$0x1]  ;;  %v317_v11 = vrot.slane %v310_v6, 7  ;;  %v319_v12 = vrot.slane %v311_v7, 6  ;;  %v779_v13 = vld [vmem:[%s1947_s27 + $0x7] sm:$0x1] }
  0x87   : > { %1099 = vrot.lane.b32.xlu0 %v1098_v62, %s1876_s28  ;;  %955 = vrot.lane.b32.xlu1 %v954_v8, %s1879_s5  ;;  %v468_v14 = vsel %vm244_vm1, %v467_v2, %v466_v9  ;;  %v321_v15 = vrot.slane %v312_v10, 5  ;;  %v780_v16 = vld [vmem:[%s1947_s27 + $0x17] sm:$0x1]  ;;  %v781_v17 = vld [vmem:[%s1947_s27 + $0x27] sm:$0x1] }
  0x88   : > { %v470_v18 = vsel %vm247_vm2, %v469_v5, %v468_v14  ;;  %v318_v19 = vsel %vm241_vm0, %v317_v11, %v309_v3  ;;  %v782_v20 = vld [vmem:[%s1947_s27 + $0x37] sm:$0x1]  ;;  %v787_v21 = vrot.slane %v780_v16, 7  ;;  %v789_v22 = vrot.slane %v781_v17, 6  ;;  %v637_v23 = vld [vmem:[%s1947_s27 + $0x6] sm:$0x1] }
  0x89   : > { %v1404_v24 = vpop.permute.xlu0 %1403  ;;  %v320_v25 = vsel %vm244_vm1, %v319_v12, %v318_v19  ;;  %v791_v26 = vrot.slane %v782_v20, 5  ;;  %v638_v27 = vld [vmem:[%s1947_s27 + $0x16] sm:$0x1]  ;;  %v639_v28 = vld [vmem:[%s1947_s27 + $0x26] sm:$0x1] }
  0x8a   : > { %1406 = vst.msk [vmem:[#allocation2 + $0x20] sm:$0xf] %vm250_vm3, %v1404_v24  ;;  %v322_v29 = vsel %vm247_vm2, %v321_v15, %v320_v25  ;;  %v788_v30 = vsel %vm241_vm0, %v787_v21, %v779_v13  ;;  %v640_v31 = vld [vmem:[%s1947_s27 + $0x36] sm:$0x1]  ;;  %v645_v32 = vrot.slane %v638_v27, 7  ;;  %v647_v33 = vrot.slane %v639_v28, 6 }
  0x8b   : > { %v1103_v34 = vld [vmem:[%s1947_s27 + $0x2] sm:$0x1]  ;;  %471 = vrot.lane.b32.xlu0 %v470_v18, %s1872_s24  ;;  %323 = vrot.lane.b32.xlu1 %v322_v29, %s1870_s22  ;;  %v790_v35 = vsel %vm244_vm1, %v789_v22, %v788_v30  ;;  %v649_v36 = vrot.slane %v640_v31, 5  ;;  %v1104_v37 = vld [vmem:[%s1947_s27 + $0x12] sm:$0x1]  ;;  %s231_s24 = scalar_lea.vmem %s2635_s4, %s1724_s14 }
  0x8c   : > { %v1105_v38 = vld [vmem:[%s1947_s27 + $0x22] sm:$0x1]  ;;  %v792_v40 = vsel %vm247_vm2, %v791_v26, %v790_v35  ;;  %v646_v41 = vsel %vm241_vm0, %v645_v32, %v637_v23  ;;  %v1106_v42 = vld [vmem:[%s1947_s27 + $0x32] sm:$0x1]  ;;  %v1111_v43 = vrot.slane %v1104_v37, 7 }
  0x8d   : > { %v1113_v44 = vrot.slane %v1105_v38, 6  ;;  %v475_v45 = vld [vmem:[%s1947_s27 + $0x5] sm:$0x1]  ;;  %v1422_v46 = vpop.permute.xlu0 %1421  ;;  %v1260_v47 = vpop.permute.xlu1 %1259  ;;  %v648_v48 = vsel %vm244_vm1, %v647_v33, %v646_v41  ;;  %v1115_v49 = vrot.slane %v1106_v42, 5  ;;  %v476_v50 = vld [vmem:[%s1947_s27 + $0x15] sm:$0x1] }
  0x8e   : > { %v477_v51 = vld [vmem:[%s1947_s27 + $0x25] sm:$0x1]  ;;  %1424 = vst.msk [vmem:[#allocation2 + $0x20] sm:$0xf] %vm269_vm4, %v1422_v46  ;;  %v650_v52 = vsel %vm247_vm2, %v649_v36, %v648_v48  ;;  %v1112_v53 = vsel %vm241_vm0, %v1111_v43, %v1103_v34  ;;  %v478_v54 = vld [vmem:[%s1947_s27 + $0x35] sm:$0x1] }
  0x8f   : > { %1262 = vst.msk [vmem:[#allocation2 + $0x1c] sm:$0xf] %vm250_vm3, %v1260_v47  ;;  %v483_v55 = vrot.slane %v476_v50, 7  ;;  %v485_v56 = vrot.slane %v477_v51, 6  ;;  %v328_v57 = vld [vmem:[%s1947_s27 + $0x5] sm:$0x1]  ;;  %793 = vrot.lane.b32.xlu0 %v792_v40, %s1877_s29  ;;  %651 = vrot.lane.b32.xlu1 %v650_v52, %s1871_s23  ;;  %v1114_v58 = vsel %vm244_vm1, %v1113_v44, %v1112_v53 }
  0x90   : > { %v487_v59 = vrot.slane %v478_v54, 5  ;;  %v329_v60 = vld [vmem:[%s1947_s27 + $0x15] sm:$0x1]  ;;  %v330_v61 = vld [vmem:[%s1947_s27 + $0x25] sm:$0x1]  ;;  %v1116_v62 = vsel %vm247_vm2, %v1115_v49, %v1114_v58 }
  0x91   : > { %v484_v63 = vsel %vm241_vm0, %v483_v55, %v475_v45  ;;  %v331_v0 = vld [vmem:[%s1947_s27 + $0x35] sm:$0x1]  ;;  %v336_v1 = vrot.slane %v329_v60, 7  ;;  %v338_v2 = vrot.slane %v330_v61, 6  ;;  %v797_v3 = vld [vmem:[%s1947_s27 + $0x8] sm:$0x1]  ;;  %v1440_v4 = vpop.permute.xlu1 %1439  ;;  %v1134_v5 = vpop.permute.xlu0 %1133 }
  0x92   : > { %1118 = vst.msk [vmem:[#allocation2 + $0x18] sm:$0xf] %vm250_vm3, %v1116_v62  ;;  %v486_v6 = vsel %vm244_vm1, %v485_v56, %v484_v63  ;;  %v340_v7 = vrot.slane %v331_v0, 5  ;;  %v798_v8 = vld [vmem:[%s1947_s27 + $0x18] sm:$0x1] }
  0x93   : > { %v799_v9 = vld [vmem:[%s1947_s27 + $0x28] sm:$0x1]  ;;  %1442 = vst.msk [vmem:[#allocation2 + $0x20] sm:$0xf] %vm288_vm5, %v1440_v4  ;;  %v488_v10 = vsel %vm247_vm2, %v487_v59, %v486_v6  ;;  %v337_v11 = vsel %vm241_vm0, %v336_v1, %v328_v57  ;;  %v800_v12 = vld [vmem:[%s1947_s27 + $0x38] sm:$0x1] }
  0x94   : > { %1136 = vst.msk [vmem:[#allocation2 + $0x18] sm:$0xf] %vm269_vm4, %v1134_v5  ;;  %v805_v13 = vrot.slane %v798_v8, 7  ;;  %v807_v14 = vrot.slane %v799_v9, 6  ;;  %v655_v15 = vld [vmem:[%s1947_s27 + $0x7] sm:$0x1]  ;;  %489 = vrot.lane.b32.xlu0 %v488_v10, %s1874_s25  ;;  %v339_v16 = vsel %vm244_vm1, %v338_v2, %v337_v11 }
  0x95   : > { %v809_v17 = vrot.slane %v800_v12, 5  ;;  %v656_v18 = vld [vmem:[%s1947_s27 + $0x17] sm:$0x1]  ;;  %v657_v19 = vld [vmem:[%s1947_s27 + $0x27] sm:$0x1]  ;;  %v341_v20 = vsel %vm247_vm2, %v340_v7, %v339_v16  ;;  %v1278_v26 = vpop.permute.xlu1 %1277  ;;  %v1458_v27 = vpop.permute.xlu0 %1457 }
  0x96   : > { %v806_v21 = vsel %vm241_vm0, %v805_v13, %v797_v3  ;;  %v658_v22 = vld [vmem:[%s1947_s27 + $0x37] sm:$0x1]  ;;  %v663_v23 = vrot.slane %v656_v18, 7  ;;  %v665_v24 = vrot.slane %v657_v19, 6  ;;  %v493_v25 = vld [vmem:[%s1947_s27 + $0x6] sm:$0x1]  ;;  %342 = vrot.lane.b32.xlu1 %v341_v20, %s1875_s26 }
  0x97   : > { %v808_v28 = vsel %vm244_vm1, %v807_v14, %v806_v21  ;;  %v667_v29 = vrot.slane %v658_v22, 5  ;;  %v494_v30 = vld [vmem:[%s1947_s27 + $0x16] sm:$0x1]  ;;  %v495_v31 = vld [vmem:[%s1947_s27 + $0x26] sm:$0x1] }
  0x98   : > { %1280 = vst.msk [vmem:[#allocation2 + $0x1c] sm:$0xf] %vm269_vm4, %v1278_v26  ;;  %v810_v32 = vsel %vm247_vm2, %v809_v17, %v808_v28  ;;  %v664_v33 = vsel %vm241_vm0, %v663_v23, %v655_v15  ;;  %v496_v34 = vld [vmem:[%s1947_s27 + $0x36] sm:$0x1]  ;;  %v501_v35 = vrot.slane %v494_v30, 7  ;;  %v503_v36 = vrot.slane %v495_v31, 6 }
  0x99   : > { %1460 = vst.msk [vmem:[#allocation2 + $0x20] sm:$0xf] %vm307_vm6, %v1458_v27  ;;  %v347_v37 = vld [vmem:[%s1947_s27 + $0x6] sm:$0x1]  ;;  %811 = vrot.lane.b32.xlu0 %v810_v32, %s1880_s6  ;;  %v666_v38 = vsel %vm244_vm1, %v665_v24, %v664_v33  ;;  %v505_v40 = vrot.slane %v496_v34, 5  ;;  %v974_v49 = vpop.permute.xlu0 %973  ;;  %v830_v50 = vpop.permute.xlu1 %829 }
  0x9a   : > { %v348_v41 = vld [vmem:[%s1947_s27 + $0x16] sm:$0x1]  ;;  %v349_v42 = vld [vmem:[%s1947_s27 + $0x26] sm:$0x1]  ;;  %v668_v43 = vsel %vm247_vm2, %v667_v29, %v666_v38  ;;  %v502_v44 = vsel %vm241_vm0, %v501_v35, %v493_v25  ;;  %v511_v48 = vld [vmem:[%s1947_s27 + $0x7] sm:$0x1] }
  0x9b   : > { %v350_v45 = vld [vmem:[%s1947_s27 + $0x36] sm:$0x1]  ;;  %v355_v46 = vrot.slane %v348_v41, 7  ;;  %v357_v47 = vrot.slane %v349_v42, 6  ;;  %669 = vrot.lane.b32.xlu1 %v668_v43, %s1876_s28  ;;  %v504_v51 = vsel %vm244_vm1, %v503_v36, %v502_v44  ;;  %v512_v53 = vld [vmem:[%s1947_s27 + $0x17] sm:$0x1] }
  0x9c   : > { %v359_v52 = vrot.slane %v350_v45, 5  ;;  %v513_v54 = vld [vmem:[%s1947_s27 + $0x27] sm:$0x1]  ;;  %976 = vst.msk [vmem:[#allocation2 + $0x14] sm:$0xf] %vm250_vm3, %v974_v49  ;;  %v506_v55 = vsel %vm247_vm2, %v505_v40, %v504_v51  ;;  %v519_v58 = vrot.slane %v512_v53, 7 }
  0x9d   : > { %832 = vst.msk [vmem:[#allocation2 + $0x10] sm:$0xf] %vm250_vm3, %v830_v50  ;;  %v356_v56 = vsel %vm241_vm0, %v355_v46, %v347_v37  ;;  %v514_v57 = vld [vmem:[%s1947_s27 + $0x37] sm:$0x1]  ;;  %v521_v59 = vrot.slane %v513_v54, 6  ;;  %507 = vrot.lane.b32.xlu0 %v506_v55, %s1878_s30  ;;  %v1296_v7 = vpop.permute.xlu0 %1295  ;;  %v1152_v8 = vpop.permute.xlu1 %1151  ;;  %v1624_v28 = vld [vmem:[%s2634_s3] sm:$0xff] }
  0x9e   : > { %v366_v60 = vld [vmem:[%s1947_s27 + $0x7] sm:$0x1]  ;;  %v358_v61 = vsel %vm244_vm1, %v357_v47, %v356_v56  ;;  %v523_v62 = vrot.slane %v514_v57, 5  ;;  %v367_v63 = vld [vmem:[%s1947_s27 + $0x17] sm:$0x1]  ;;  %v520_v2 = vsel %vm241_vm0, %v519_v58, %v511_v48  ;;  %v1882_v35 = vmov 0  }
  0x9f   : > { %v368_v0 = vld [vmem:[%s1947_s27 + $0x27] sm:$0x1]  ;;  %v360_v1 = vsel %vm247_vm2, %v359_v52, %v358_v61  ;;  %v369_v3 = vld [vmem:[%s1947_s27 + $0x37] sm:$0x1]  ;;  %v374_v4 = vrot.slane %v367_v63, 7  ;;  %v522_v9 = vsel %vm244_vm1, %v521_v59, %v520_v2  ;;  %1815 = vset.pattern.permute.xlu1 %v1882_v35  ;;  %1816 = vset.pattern.permute.xlu0 %v1882_v35 }
  0xa0   : > { %v376_v5 = vrot.slane %v368_v0, 6  ;;  %v673_v6 = vld [vmem:[%s1947_s27 + $0x1] sm:$0x1]  ;;  %361 = vrot.lane.b32.xlu1 %v360_v1, %s1877_s29  ;;  %v378_v10 = vrot.slane %v369_v3, 5  ;;  %v674_v11 = vld [vmem:[%s1947_s27 + $0x11] sm:$0x1]  ;;  %v524_v13 = vsel %vm247_vm2, %v523_v62, %v522_v9 }
  0xa1   : > { %v675_v12 = vld [vmem:[%s1947_s27 + $0x21] sm:$0x1]  ;;  %1298 = vst.msk [vmem:[#allocation2 + $0x1c] sm:$0xf] %vm288_vm5, %v1296_v7  ;;  %1154 = vst.msk [vmem:[#allocation2 + $0x18] sm:$0xf] %vm288_vm5, %v1152_v8  ;;  %v375_v14 = vsel %vm241_vm0, %v374_v4, %v366_v60  ;;  %525 = vrot.lane.b32.xlu0 %v524_v13, %s1879_s5  ;;  %v848_v29 = vpop.permute.xlu0 %847  ;;  %v1476_v30 = vpop.permute.xlu1 %1475 }
  0xa2   : > { %v676_v15 = vld [vmem:[%s1947_s27 + $0x31] sm:$0x1]  ;;  %v681_v16 = vrot.slane %v674_v11, 7  ;;  %v683_v17 = vrot.slane %v675_v12, 6  ;;  %v232_v18 = vld [vmem:[%s1947_s27] sm:$0x1]  ;;  %v377_v19 = vsel %vm244_vm1, %v376_v5, %v375_v14 }
  0xa3   : > { %v685_v20 = vrot.slane %v676_v15, 5  ;;  %v233_v21 = vld [vmem:[%s1947_s27 + $0x10] sm:$0x1]  ;;  %v234_v22 = vld [vmem:[%s1947_s27 + $0x20] sm:$0x1]  ;;  %v379_v23 = vsel %vm247_vm2, %v378_v10, %v377_v19 }
  0xa4   : > { %v682_v24 = vsel %vm241_vm0, %v681_v16, %v673_v6  ;;  %v235_v25 = vld [vmem:[%s1947_s27 + $0x30] sm:$0x1]  ;;  %v240_v26 = vrot.slane %v233_v21, 7  ;;  %v243_v27 = vrot.slane %v234_v22, 6  ;;  %380 = vrot.lane.b32.xlu1 %v379_v23, %s1880_s6  ;;  %850 = vst.msk [vmem:[#allocation2 + $0x10] sm:$0xf] %vm269_vm4, %v848_v29 }
  0xa5   : > { %v684_v31 = vsel %vm244_vm1, %v683_v17, %v682_v24  ;;  %v246_v32 = vrot.slane %v235_v25, 5  ;;  %1478 = vst.msk [vmem:[#allocation2 + $0x20] sm:$0xf] %vm326_vm8, %v1476_v30  ;;  %v1617_v36 = vld [vmem:[%s2633_s2] sm:$0xff]  ;;  %1627 = vperm.xlu0 %1816, %v1624_v28   ;;  %v1170_v40 = vpop.permute.xlu0 %1169  ;;  %v992_v41 = vpop.permute.xlu1 %991 }
  0xa6   : > { %v686_v33 = vsel %vm247_vm2, %v685_v20, %v684_v31  ;;  %v242_v34 = vsel %vm241_vm0, %v240_v26, %v232_v18  ;;  %1172 = vst.msk [vmem:[#allocation2 + $0x18] sm:$0xf] %vm307_vm6, %v1170_v40 }
  0xa7   : > { %688 = vst.msk [vmem:[#allocation2 + $0xc] sm:$0xf] %vm250_vm3, %v686_v33  ;;  %v245_v37 = vsel %vm244_vm1, %v243_v27, %v242_v34 }
  0xa8   : > { %v248_v38 = vsel %vm247_vm2, %v246_v32, %v245_v37  ;;  %1620 = vperm.xlu1 %1815, %v1617_v36   ;;  %994 = vst.msk [vmem:[#allocation2 + $0x14] sm:$0xf] %vm269_vm4, %v992_v41  ;;  %v1533_v36 = vld [vmem:[%s2632_s1] sm:$0xff] }
  0xa9   : > { %251 = vst.msk [vmem:[#allocation2] sm:$0xf] %vm250_vm3, %v248_v38  ;;  %v1494_v42 = vpop.permute.xlu0 %1493  ;;  %v1314_v43 = vpop.permute.xlu1 %1313 }
  0xaa   : > { %1496 = vst.msk [vmem:[#allocation2 + $0x20] sm:$0xf] %vm345_vm9, %v1494_v42 }
  0xab   : > { %1316 = vst.msk [vmem:[#allocation2 + $0x1c] sm:$0xf] %vm307_vm6, %v1314_v43 }
  0xad   : > { %v866_v44 = vpop.permute.xlu0 %865  ;;  %v544_v45 = vpop.permute.xlu1 %543 }
  0xae   : > { %868 = vst.msk [vmem:[#allocation2 + $0x10] sm:$0xf] %vm288_vm5, %v866_v44 }
  0xaf   : > { %546 = vst.msk [vmem:[#allocation2 + $0x8] sm:$0xf] %vm250_vm3, %v544_v45 }
  0xb1   : > { %v1188_v46 = vpop.permute.xlu0 %1187  ;;  %v1010_v47 = vpop.permute.xlu1 %1009 }
  0xb2   : > { %1190 = vst.msk [vmem:[#allocation2 + $0x18] sm:$0xf] %vm326_vm8, %v1188_v46 }
  0xb3   : > { %1012 = vst.msk [vmem:[#allocation2 + $0x14] sm:$0xf] %vm288_vm5, %v1010_v47 }
  0xb5   : > { %v1512_v48 = vpop.permute.xlu0 %1511  ;;  %v1332_v49 = vpop.permute.xlu1 %1331 }
  0xb6   : > { %1514 = vst.msk [vmem:[#allocation2 + $0x20] sm:$0xf] %vm364_vm10, %v1512_v48 }
  0xb7   : > { %1334 = vst.msk [vmem:[#allocation2 + $0x1c] sm:$0xf] %vm326_vm8, %v1332_v49 }
  0xb9   : > { %v704_v50 = vpop.permute.xlu0 %703  ;;  %v562_v51 = vpop.permute.xlu1 %561 }
  0xba   : > { %706 = vst.msk [vmem:[#allocation2 + $0xc] sm:$0xf] %vm269_vm4, %v704_v50  ;;  %564 = vst.msk [vmem:[#allocation2 + $0x8] sm:$0xf] %vm269_vm4, %v562_v51 }
  0xbd   : > { %v1028_v52 = vpop.permute.xlu0 %1027  ;;  %v884_v53 = vpop.permute.xlu1 %883 }
  0xbe   : > { %1030 = vst.msk [vmem:[#allocation2 + $0x14] sm:$0xf] %vm307_vm6, %v1028_v52  ;;  %886 = vst.msk [vmem:[#allocation2 + $0x10] sm:$0xf] %vm307_vm6, %v884_v53 }
  0xc1   : > { %v1350_v54 = vpop.permute.xlu0 %1349  ;;  %v1206_v55 = vpop.permute.xlu1 %1205 }
  0xc2   : > { %1352 = vst.msk [vmem:[#allocation2 + $0x1c] sm:$0xf] %vm345_vm9, %v1350_v54  ;;  %1208 = vst.msk [vmem:[#allocation2 + $0x18] sm:$0xf] %vm345_vm9, %v1206_v55 }
  0xc5   : > { %v1530_v56 = vpop.permute.xlu1 %1529  ;;  %v400_v57 = vpop.permute.xlu0 %399 }
  0xc6   : > { %1532 = vst.msk [vmem:[#allocation2 + $0x20] sm:$0xf] %vm383_vm11, %v1530_v56 }
  0xc7   : > { %402 = vst.msk [vmem:[#allocation2 + $0x4] sm:$0xf] %vm250_vm3, %v400_v57 }
  0xc9   : > { %v580_v58 = vpop.permute.xlu1 %579  ;;  %v722_v59 = vpop.permute.xlu0 %721 }
  0xca   : > { %582 = vst.msk [vmem:[#allocation2 + $0x8] sm:$0xf] %vm288_vm5, %v580_v58  ;;  %724 = vst.msk [vmem:[#allocation2 + $0xc] sm:$0xf] %vm288_vm5, %v722_v59 }
  0xcd   : > { %v902_v60 = vpop.permute.xlu1 %901  ;;  %v1046_v61 = vpop.permute.xlu0 %1045  ;;  %v1538_v62 = vld [vmem:[#allocation2 + $0x20] sm:$0xf] }
  0xce   : > { %904 = vst.msk [vmem:[#allocation2 + $0x10] sm:$0xf] %vm326_vm8, %v902_v60  ;;  %1048 = vst.msk [vmem:[#allocation2 + $0x14] sm:$0xf] %vm326_vm8, %v1046_v61  ;;  %1737 = vmatpush3.msk.msra.mxu0 %vm1543_vm12, %v1538_v62 }
  0xcf   : > { %1738 = vmatprep.subr.mxu0 %v1873_v39 }
  0xd1   : > { %v1224_v63 = vpop.permute.xlu1 %1223  ;;  %v1368_v0 = vpop.permute.xlu0 %1367 }
  0xd2   : > { %1226 = vst.msk [vmem:[#allocation2 + $0x18] sm:$0xf] %vm364_vm10, %v1224_v63  ;;  %1370 = vst.msk [vmem:[#allocation2 + $0x1c] sm:$0xf] %vm364_vm10, %v1368_v0 }
  0xd5   : > { %v418_v1 = vpop.permute.xlu0 %417  ;;  %v267_v2 = vpop.permute.xlu1 %266 }
  0xd6   : > { %420 = vst.msk [vmem:[#allocation2 + $0x4] sm:$0xf] %vm269_vm4, %v418_v1  ;;  %270 = vst.msk [vmem:[#allocation2] sm:$0xf] %vm269_vm4, %v267_v2 }
  0xd9   : > { %v740_v3 = vpop.permute.xlu0 %739  ;;  %v598_v4 = vpop.permute.xlu1 %597 }
  0xda   : > { %742 = vst.msk [vmem:[#allocation2 + $0xc] sm:$0xf] %vm307_vm6, %v740_v3  ;;  %600 = vst.msk [vmem:[#allocation2 + $0x8] sm:$0xf] %vm307_vm6, %v598_v4 }
  0xdd   : > { %v1064_v5 = vpop.permute.xlu0 %1063  ;;  %v920_v6 = vpop.permute.xlu1 %919 }
  0xde   : > { %1066 = vst.msk [vmem:[#allocation2 + $0x14] sm:$0xf] %vm345_vm9, %v1064_v5  ;;  %922 = vst.msk [vmem:[#allocation2 + $0x10] sm:$0xf] %vm345_vm9, %v920_v6 }
  0xe1   : > { %v1386_v7 = vpop.permute.xlu0 %1385  ;;  %v1242_v8 = vpop.permute.xlu1 %1241 }
  0xe2   : > { %1388 = vst.msk [vmem:[#allocation2 + $0x1c] sm:$0xf] %vm383_vm11, %v1386_v7  ;;  %1244 = vst.msk [vmem:[#allocation2 + $0x18] sm:$0xf] %vm383_vm11, %v1242_v8 }
  0xe5   : > { %v436_v9 = vpop.permute.xlu0 %435  ;;  %v286_v10 = vpop.permute.xlu1 %285 }
  0xe6   : > { %438 = vst.msk [vmem:[#allocation2 + $0x4] sm:$0xf] %vm288_vm5, %v436_v9  ;;  %289 = vst.msk [vmem:[#allocation2] sm:$0xf] %vm288_vm5, %v286_v10 }
  0xe9   : > { %v758_v11 = vpop.permute.xlu0 %757  ;;  %v616_v12 = vpop.permute.xlu1 %615  ;;  %v1537_v13 = vld [vmem:[#allocation2 + $0x18] sm:$0xff] }
  0xea   : > { %760 = vst.msk [vmem:[#allocation2 + $0xc] sm:$0xf] %vm326_vm8, %v758_v11  ;;  %618 = vst.msk [vmem:[#allocation2 + $0x8] sm:$0xf] %vm326_vm8, %v616_v12  ;;  %1739 = vmatpush3.msra.mxu0 %v1537_v13 }
  0xeb   : > { %1740 = vmatprep.subr.mxu0 %v1873_v39 }
  0xed   : > { %v1082_v14 = vpop.permute.xlu0 %1081  ;;  %v938_v15 = vpop.permute.xlu1 %937 }
  0xee   : > { %1084 = vst.msk [vmem:[#allocation2 + $0x14] sm:$0xf] %vm364_vm10, %v1082_v14  ;;  %940 = vst.msk [vmem:[#allocation2 + $0x10] sm:$0xf] %vm364_vm10, %v938_v15 }
  0xf1   : > { %v454_v16 = vpop.permute.xlu0 %453  ;;  %v305_v17 = vpop.permute.xlu1 %304 }
  0xf2   : > { %456 = vst.msk [vmem:[#allocation2 + $0x4] sm:$0xf] %vm307_vm6, %v454_v16  ;;  %308 = vst.msk [vmem:[#allocation2] sm:$0xf] %vm307_vm6, %v305_v17 }
  0xf5   : > { %v776_v18 = vpop.permute.xlu0 %775  ;;  %v634_v19 = vpop.permute.xlu1 %633 }
  0xf6   : > { %778 = vst.msk [vmem:[#allocation2 + $0xc] sm:$0xf] %vm345_vm9, %v776_v18  ;;  %636 = vst.msk [vmem:[#allocation2 + $0x8] sm:$0xf] %vm345_vm9, %v634_v19 }
  0xf9   : > { %v1100_v20 = vpop.permute.xlu0 %1099  ;;  %v956_v21 = vpop.permute.xlu1 %955 }
  0xfa   : > { %1102 = vst.msk [vmem:[#allocation2 + $0x14] sm:$0xf] %vm383_vm11, %v1100_v20  ;;  %958 = vst.msk [vmem:[#allocation2 + $0x10] sm:$0xf] %vm383_vm11, %v956_v21 }
  0xfd   : > { %v472_v22 = vpop.permute.xlu0 %471  ;;  %v324_v23 = vpop.permute.xlu1 %323 }
  0xfe   : > { %474 = vst.msk [vmem:[#allocation2 + $0x4] sm:$0xf] %vm326_vm8, %v472_v22  ;;  %327 = vst.msk [vmem:[#allocation2] sm:$0xf] %vm326_vm8, %v324_v23 }
 0x101   : > { %v794_v24 = vpop.permute.xlu0 %793  ;;  %v652_v25 = vpop.permute.xlu1 %651  ;;  %v1536_v26 = vld [vmem:[#allocation2 + $0x10] sm:$0xff] }
 0x102   : > { %796 = vst.msk [vmem:[#allocation2 + $0xc] sm:$0xf] %vm364_vm10, %v794_v24  ;;  %654 = vst.msk [vmem:[#allocation2 + $0x8] sm:$0xf] %vm364_vm10, %v652_v25  ;;  %1741 = vmatpush3.msra.mxu0 %v1536_v26 }
 0x103   : > { %1742 = vmatprep.subr.mxu0 %v1873_v39 }
 0x106   : > { %v490_v27 = vpop.permute.xlu0 %489 }
 0x107   : > { %492 = vst.msk [vmem:[#allocation2 + $0x4] sm:$0xf] %vm345_vm9, %v490_v27 }
 0x108   : > { %v343_v28 = vpop.permute.xlu1 %342 }
 0x109   : > { %346 = vst.msk [vmem:[#allocation2] sm:$0xf] %vm345_vm9, %v343_v28 }
 0x10b   : > { %v812_v29 = vpop.permute.xlu0 %811 }
 0x10c   : > { %814 = vst.msk [vmem:[#allocation2 + $0xc] sm:$0xf] %vm383_vm11, %v812_v29 }
 0x10d   : > { %v670_v30 = vpop.permute.xlu1 %669 }
 0x10e   : > { %672 = vst.msk [vmem:[#allocation2 + $0x8] sm:$0xf] %vm383_vm11, %v670_v30 }
 0x10f   : > { %v508_v31 = vpop.permute.xlu0 %507 }
 0x110   : > { %510 = vst.msk [vmem:[#allocation2 + $0x4] sm:$0xf] %vm364_vm10, %v508_v31 }
 0x112   : > { %v362_v32 = vpop.permute.xlu1 %361 }
 0x113   : > { %365 = vst.msk [vmem:[#allocation2] sm:$0xf] %vm364_vm10, %v362_v32  ;;  %v526_v33 = vpop.permute.xlu0 %525 }
 0x114   : > { %528 = vst.msk [vmem:[#allocation2 + $0x4] sm:$0xf] %vm383_vm11, %v526_v33 }
 0x115   : > { %v1535_v35 = vld [vmem:[#allocation2 + $0x8] sm:$0xff] }
 0x116   : > { %v381_v34 = vpop.permute.xlu1 %380  ;;  %1743 = vmatpush3.msra.mxu0 %v1535_v35 }
 0x117   : > { %384 = vst.msk [vmem:[#allocation2] sm:$0xf] %vm383_vm11, %v381_v34  ;;  %1744 = vmatprep.subr.mxu0 %v1873_v39 }
 0x11e   : > { %v1534_v37 = vld [vmem:[#allocation2] sm:$0xff] }
 0x11f   : > { %1745 = vmatpush3.msra.mxu0 %v1534_v37 }
 0x120   : > { %1747 = vmatmul.mubr.msk.f32.vlgmr.msra.gmra.mxu0 %vm1539_vm13, %v1533_v36  ;;  %v1628_v41 = vpop.permute.xlu0 %1627 }
 0x123   : > { %v1621_v38 = vpop.permute.xlu1 %1620 }
 0x1e0   : > { %v1613_v40 = vpop.f32.mrf.mxu0 }
 0x1e1   : > { %v1623_v42 = vmul.f32 %v1621_v38, %v1613_v40 }
 0x1e2   : > { %v1748_v39 = vpop.f32.mrf.mxu0 }
 0x1e3   : > { %v1630_v43 = vadd.f32 %v1628_v41, %v1623_v42 }
 0x1e5   : > { %v1631_v44 = vmax.f32 %v1630_v43, 0.0 }
 0x1e7   : > { %1632 = vst [vmem:[%s231_s24] sm:$0xff] %v1631_v44 }
 0x1e8 PF: > { %s14_s19 = sadd.s32 1, %s1855_s19   ;;  %s2636_s15 = smov %s1847_s17 }
 0x1e9   : > { %p11_p8 = scmp.ge.s32.totalorder %s14_s19, 6   ;;  %s2637_s16 = smov %s1851_s18 }
 0x1ea   : > { %s2638_s17 = smov %s2641_s20  ;;  %s2639_s18 = smov %s2645_s21 }
 0x1eb   :  { %13 = sbr.rel (!%p11_p8) target bundleno = 3 (0x3), region = 66 }

// kernel: conv_block_pallas.2
= control target key start
LH: loop header
LB: loop body
LE: loop exit
PB: predicated region body
PF: predicated region fallthrough
CT: control target
= control target key end

     0   :  { %s1919_s12 = smov 0   ;;  %s1921_s13 = smov 0   ;;  %s2633_s0 = inlined_call_operand.vmem [shape: f32[4,4,10,18], index: 0, kind: input, shape index: {}]   ;;  %s2634_s1 = inlined_call_operand.vmem [shape: f32[8,36], index: 1, kind: input, shape index: {}]   ;;  %s2635_s2 = inlined_call_operand.vmem [shape: f32[4,8,1], index: 2, kind: output, shape index: {0}]   ;;  %s2636_s3 = inlined_call_operand.vmem [shape: f32[4,8,1], index: 3, kind: output, shape index: {1}]  }
   0x1   :  { %s1923_s14 = smov 0   ;;  %s1925_s15 = smov 0  }
   0x2   :  { %s1927_s16 = smov 0  }
   0x3 LB: > { %s23_s17 = sadd.s32 1, %s1864_s14  ;;  %s26_s18 = sadd.s32 1, %s1868_s15  ;;  %s1872_s16 = sphi %s1927_s16, %s14_s16   ;;  %s1868_s15 = sphi %s1925_s15, %s2640_s15   ;;  %s1864_s14 = sphi %s1923_s14, %s2639_s14   ;;  %s1860_s13 = sphi %s1921_s13, %s2638_s13   ;;  %s1856_s12 = sphi %s1919_s12, %s2637_s12  }
   0x4   : > { %p24_p0 = scmp.ge.s32.totalorder %s23_s17, 2  ;;  %p1737_p1 = scmp.ge.s32.totalorder %s1872_s16, 1 }
   0x5   : > { %p168_p2 = scmp.lt.s32.totalorder %s1872_s16, 5 }
   0x6   : > { %s2642_s17 = smov (%p24_p0, %s23_s17), 0  ;;  %s2644_s18 = smov (!%p24_p0, %s26_s18), %s1868_s15 }
   0x7   : > { %p169_p3 = pnand %p1737_p1, %p168_p2  ;;  %p28_p4 = scmp.ge.s32.totalorder %s2644_s18, 2 }
   0x8   : > { %s1738_s19 = sshll.u32 (!%p169_p3), %s1860_s13, 1  ;;  %s1874_s25 = smov (!%p169_p3), 126  }
   0x9   : > { %s2646_s18 = smov (%p28_p4, %s2644_s18), 0  ;;  %172 = sbr.rel (%p169_p3) target bundleno = 622 (0x26e), region = 28 }
   0xa   : > { %s202_s20 = sadd.s32 (!%p169_p3), %s1856_s12, %s1738_s19  ;;  %s1875_s26 = smov (!%p169_p3), 14  }
   0xb   : > { %p203_p5 = scmp.lt.s32.totalorder (!%p169_p3), %s202_s20, 3  ;;  %s1876_s27 = smov (!%p169_p3), 127  }
   0xc   : > { %s1877_s28 = smov (!%p169_p3), 30   ;;  %s1878_s29 = smov (!%p169_p3), 16  }
   0xd   : > { %s1879_s30 = smov (!%p169_p3), 15   ;;  %s1880_s4 = smov (!%p169_p3), 46  }
   0xe   : > { %s2648_s20 = smov (!%p203_p5, %s202_s20), 3  ;;  %vm235_vm0 = vcmask 1041409   ;;  %vm238_vm1 = vcmask 1042434   ;;  %vm241_vm2 = vcmask 1043459   ;;  %s1881_s5 = smov 31   ;;  %vm244_vm3 = vcmask 125952  }
   0xf   : > { %s1749_s21 = sshll.u32 %s2648_s20, 6  ;;  %s1882_s6 = smov 32   ;;  %vm263_vm4 = vcmask 257152   ;;  %vm282_vm5 = vcmask 388352   ;;  %vm301_vm6 = vcmask 519552   ;;  %vm1898_vm7 = vmmov 0  }
  0x10   : > { %s1955_s24 = scalar_lea.vmem %s2633_s0, %s1749_s21  ;;  %s1883_s7 = smov 62   ;;  %vm320_vm8 = vcmask 650752   ;;  %vm339_vm9 = vcmask 781952   ;;  %vm358_vm10 = vcmask 913152   ;;  %vm377_vm11 = vcmask 1044352  }
  0x11   : > { %v1383_v0 = vld [vmem:[%s1955_s24 + $0x2] sm:$0x1]  ;;  %v1384_v1 = vld [vmem:[%s1955_s24 + $0x12] sm:$0x1]  ;;  %v1401_v6 = vld [vmem:[%s1955_s24 + $0x3] sm:$0x1] }
  0x12   : > { %v1385_v2 = vld [vmem:[%s1955_s24 + $0x22] sm:$0x1]  ;;  %v1386_v3 = vld [vmem:[%s1955_s24 + $0x32] sm:$0x1]  ;;  %v1391_v4 = vrot.slane %v1384_v1, 7  ;;  %s1884_s8 = smov 48  }
  0x13   : > { %v1393_v5 = vrot.slane %v1385_v2, 6  ;;  %v1395_v7 = vrot.slane %v1386_v3, 5  ;;  %v1402_v8 = vld [vmem:[%s1955_s24 + $0x13] sm:$0x1]  ;;  %v1403_v9 = vld [vmem:[%s1955_s24 + $0x23] sm:$0x1] }
  0x14   : > { %v1392_v10 = vsel %vm235_vm0, %v1391_v4, %v1383_v0  ;;  %v1404_v11 = vld [vmem:[%s1955_s24 + $0x33] sm:$0x1]  ;;  %v1409_v12 = vrot.slane %v1402_v8, 7  ;;  %v1411_v13 = vrot.slane %v1403_v9, 6  ;;  %v1239_v14 = vld [vmem:[%s1955_s24 + $0x2] sm:$0x1] }
  0x15   : > { %v1394_v15 = vsel %vm238_vm1, %v1393_v5, %v1392_v10  ;;  %v1413_v16 = vrot.slane %v1404_v11, 5  ;;  %v1240_v17 = vld [vmem:[%s1955_s24 + $0x12] sm:$0x1]  ;;  %v1241_v18 = vld [vmem:[%s1955_s24 + $0x22] sm:$0x1]  ;;  %s1885_s9 = smov 78  }
  0x16   : > { %v1396_v19 = vsel %vm241_vm2, %v1395_v7, %v1394_v15  ;;  %v1410_v20 = vsel %vm235_vm0, %v1409_v12, %v1401_v6  ;;  %v1242_v21 = vld [vmem:[%s1955_s24 + $0x32] sm:$0x1]  ;;  %v1247_v22 = vrot.slane %v1240_v17, 7  ;;  %v1249_v23 = vrot.slane %v1241_v18, 6  ;;  %v1419_v24 = vld [vmem:[%s1955_s24 + $0x4] sm:$0x1] }
  0x17   : > { %1397 = vrot.lane.b32.xlu0 %v1396_v19, %s1874_s25  ;;  %v1412_v25 = vsel %vm238_vm1, %v1411_v13, %v1410_v20  ;;  %v1251_v26 = vrot.slane %v1242_v21, 5  ;;  %v1420_v27 = vld [vmem:[%s1955_s24 + $0x14] sm:$0x1]  ;;  %v1421_v28 = vld [vmem:[%s1955_s24 + $0x24] sm:$0x1]  ;;  %s1886_s10 = smov 47  }
  0x18   : > { %v1414_v29 = vsel %vm241_vm2, %v1413_v16, %v1412_v25  ;;  %v1248_v30 = vsel %vm235_vm0, %v1247_v22, %v1239_v14  ;;  %v1422_v31 = vld [vmem:[%s1955_s24 + $0x34] sm:$0x1]  ;;  %v1427_v32 = vrot.slane %v1420_v27, 7  ;;  %v1429_v33 = vrot.slane %v1421_v28, 6  ;;  %v1113_v34 = vld [vmem:[%s1955_s24 + $0x3] sm:$0x1] }
  0x19   : > { %v1250_v35 = vsel %vm238_vm1, %v1249_v23, %v1248_v30  ;;  %v1431_v36 = vrot.slane %v1422_v31, 5  ;;  %v1114_v37 = vld [vmem:[%s1955_s24 + $0x13] sm:$0x1]  ;;  %v1115_v38 = vld [vmem:[%s1955_s24 + $0x23] sm:$0x1]  ;;  %s1887_s11 = smov 64  }
  0x1a   : > { %v1252_v39 = vsel %vm241_vm2, %v1251_v26, %v1250_v35  ;;  %v1428_v40 = vsel %vm235_vm0, %v1427_v32, %v1419_v24  ;;  %v1116_v41 = vld [vmem:[%s1955_s24 + $0x33] sm:$0x1]  ;;  %v1121_v42 = vrot.slane %v1114_v37, 7  ;;  %v1123_v43 = vrot.slane %v1115_v38, 6  ;;  %v1257_v44 = vld [vmem:[%s1955_s24 + $0x3] sm:$0x1] }
  0x1b   : > { %1415 = vrot.lane.b32.xlu0 %v1414_v29, %s1875_s26  ;;  %1253 = vrot.lane.b32.xlu1 %v1252_v39, %s1876_s27  ;;  %v1430_v45 = vsel %vm238_vm1, %v1429_v33, %v1428_v40  ;;  %v1125_v46 = vrot.slane %v1116_v41, 5  ;;  %v1258_v47 = vld [vmem:[%s1955_s24 + $0x13] sm:$0x1]  ;;  %v1259_v48 = vld [vmem:[%s1955_s24 + $0x23] sm:$0x1]  ;;  %s1888_s12 = smov 94  }
  0x1c   : > { %v1432_v49 = vsel %vm241_vm2, %v1431_v36, %v1430_v45  ;;  %v1122_v50 = vsel %vm235_vm0, %v1121_v42, %v1113_v34  ;;  %v1260_v51 = vld [vmem:[%s1955_s24 + $0x33] sm:$0x1]  ;;  %v1265_v52 = vrot.slane %v1258_v47, 7  ;;  %v1267_v53 = vrot.slane %v1259_v48, 6  ;;  %v1437_v54 = vld [vmem:[%s1955_s24 + $0x5] sm:$0x1] }
  0x1d   : > { %v1124_v55 = vsel %vm238_vm1, %v1123_v43, %v1122_v50  ;;  %v1269_v56 = vrot.slane %v1260_v51, 5  ;;  %v1438_v57 = vld [vmem:[%s1955_s24 + $0x15] sm:$0x1]  ;;  %v1439_v58 = vld [vmem:[%s1955_s24 + $0x25] sm:$0x1]  ;;  %s1889_s13 = smov 63  }
  0x1e   : > { %v1126_v59 = vsel %vm241_vm2, %v1125_v46, %v1124_v55  ;;  %v1266_v60 = vsel %vm235_vm0, %v1265_v52, %v1257_v44  ;;  %v1440_v61 = vld [vmem:[%s1955_s24 + $0x35] sm:$0x1]  ;;  %v1445_v62 = vrot.slane %v1438_v57, 7  ;;  %v1447_v63 = vrot.slane %v1439_v58, 6  ;;  %v953_v0 = vld [vmem:[%s1955_s24 + $0x1] sm:$0x1] }
  0x1f   : > { %1433 = vrot.lane.b32.xlu1 %v1432_v49, %s1877_s28  ;;  %1127 = vrot.lane.b32.xlu0 %v1126_v59, %s1878_s29  ;;  %v1268_v1 = vsel %vm238_vm1, %v1267_v53, %v1266_v60  ;;  %v1449_v2 = vrot.slane %v1440_v61, 5  ;;  %v954_v3 = vld [vmem:[%s1955_s24 + $0x11] sm:$0x1]  ;;  %v955_v4 = vld [vmem:[%s1955_s24 + $0x21] sm:$0x1]  ;;  %s1891_s19 = smov 79  }
  0x20   : > { %v1270_v5 = vsel %vm241_vm2, %v1269_v56, %v1268_v1  ;;  %v1446_v6 = vsel %vm235_vm0, %v1445_v62, %v1437_v54  ;;  %v956_v7 = vld [vmem:[%s1955_s24 + $0x31] sm:$0x1]  ;;  %v961_v8 = vrot.slane %v954_v3, 7  ;;  %v963_v9 = vrot.slane %v955_v4, 6  ;;  %v809_v10 = vld [vmem:[%s1955_s24 + $0x1] sm:$0x1] }
  0x21   : > { %v1448_v11 = vsel %vm238_vm1, %v1447_v63, %v1446_v6  ;;  %v965_v12 = vrot.slane %v956_v7, 5  ;;  %v810_v13 = vld [vmem:[%s1955_s24 + $0x11] sm:$0x1]  ;;  %v811_v14 = vld [vmem:[%s1955_s24 + $0x21] sm:$0x1]  ;;  %s1892_s21 = smov 80  }
  0x22   : > { %v1450_v15 = vsel %vm241_vm2, %v1449_v2, %v1448_v11  ;;  %v962_v16 = vsel %vm235_vm0, %v961_v8, %v953_v0  ;;  %v812_v17 = vld [vmem:[%s1955_s24 + $0x31] sm:$0x1]  ;;  %v817_v18 = vrot.slane %v810_v13, 7  ;;  %v819_v19 = vrot.slane %v811_v14, 6  ;;  %v1275_v20 = vld [vmem:[%s1955_s24 + $0x4] sm:$0x1] }
  0x23   : > { %1271 = vrot.lane.b32.xlu1 %v1270_v5, %s1879_s30  ;;  %1451 = vrot.lane.b32.xlu0 %v1450_v15, %s1880_s4  ;;  %v964_v21 = vsel %vm238_vm1, %v963_v9, %v962_v16  ;;  %v821_v22 = vrot.slane %v812_v17, 5  ;;  %v1276_v23 = vld [vmem:[%s1955_s24 + $0x14] sm:$0x1]  ;;  %v1277_v24 = vld [vmem:[%s1955_s24 + $0x24] sm:$0x1]  ;;  %s1893_s22 = smov 110  }
  0x24   : > { %v966_v25 = vsel %vm241_vm2, %v965_v12, %v964_v21  ;;  %v818_v26 = vsel %vm235_vm0, %v817_v18, %v809_v10  ;;  %v1278_v27 = vld [vmem:[%s1955_s24 + $0x34] sm:$0x1]  ;;  %v1283_v28 = vrot.slane %v1276_v23, 7  ;;  %v1285_v29 = vrot.slane %v1277_v24, 6  ;;  %v1131_v30 = vld [vmem:[%s1955_s24 + $0x4] sm:$0x1] }
  0x25   : > { %v820_v31 = vsel %vm238_vm1, %v819_v19, %v818_v26  ;;  %v1287_v32 = vrot.slane %v1278_v27, 5  ;;  %v1132_v33 = vld [vmem:[%s1955_s24 + $0x14] sm:$0x1]  ;;  %v1133_v34 = vld [vmem:[%s1955_s24 + $0x24] sm:$0x1]  ;;  %s1894_s23 = smov 96  }
  0x26   : > { %v822_v35 = vsel %vm241_vm2, %v821_v22, %v820_v31  ;;  %v1284_v36 = vsel %vm235_vm0, %v1283_v28, %v1275_v20  ;;  %v1134_v37 = vld [vmem:[%s1955_s24 + $0x34] sm:$0x1]  ;;  %v1139_v38 = vrot.slane %v1132_v33, 7  ;;  %v1141_v39 = vrot.slane %v1133_v34, 6  ;;  %v827_v40 = vld [vmem:[%s1955_s24 + $0x2] sm:$0x1] }
  0x27   : > { %967 = vrot.lane.b32.xlu0 %v966_v25, %s1874_s25  ;;  %823 = vrot.lane.b32.xlu1 %v822_v35, %s1876_s27  ;;  %v1286_v41 = vsel %vm238_vm1, %v1285_v29, %v1284_v36  ;;  %v1143_v42 = vrot.slane %v1134_v37, 5  ;;  %v828_v43 = vld [vmem:[%s1955_s24 + $0x12] sm:$0x1]  ;;  %v829_v44 = vld [vmem:[%s1955_s24 + $0x22] sm:$0x1]  ;;  %vm1537_vm12 = vcmask 1043456  }
  0x28   : > { %v1288_v45 = vsel %vm241_vm2, %v1287_v32, %v1286_v41  ;;  %v1140_v46 = vsel %vm235_vm0, %v1139_v38, %v1131_v30  ;;  %v830_v47 = vld [vmem:[%s1955_s24 + $0x32] sm:$0x1]  ;;  %v835_v48 = vrot.slane %v828_v43, 7  ;;  %v837_v49 = vrot.slane %v829_v44, 6  ;;  %v1455_v50 = vld [vmem:[%s1955_s24 + $0x6] sm:$0x1] }
  0x29   : > { %v1142_v51 = vsel %vm238_vm1, %v1141_v39, %v1140_v46  ;;  %v839_v52 = vrot.slane %v830_v47, 5  ;;  %v1456_v53 = vld [vmem:[%s1955_s24 + $0x16] sm:$0x1]  ;;  %v1457_v54 = vld [vmem:[%s1955_s24 + $0x26] sm:$0x1]  ;;  %vm1533_vm13 = vcmask 293888  }
  0x2a   : > { %v1144_v55 = vsel %vm241_vm2, %v1143_v42, %v1142_v51  ;;  %v836_v56 = vsel %vm235_vm0, %v835_v48, %v827_v40  ;;  %v1458_v57 = vld [vmem:[%s1955_s24 + $0x36] sm:$0x1]  ;;  %v1463_v58 = vrot.slane %v1456_v53, 7  ;;  %v1465_v59 = vrot.slane %v1457_v54, 6  ;;  %v1149_v60 = vld [vmem:[%s1955_s24 + $0x5] sm:$0x1] }
  0x2b   : > { %1289 = vrot.lane.b32.xlu0 %v1288_v45, %s1881_s5  ;;  %1145 = vrot.lane.b32.xlu1 %v1144_v55, %s1882_s6  ;;  %v838_v61 = vsel %vm238_vm1, %v837_v49, %v836_v56  ;;  %v1467_v62 = vrot.slane %v1458_v57, 5  ;;  %v1150_v63 = vld [vmem:[%s1955_s24 + $0x15] sm:$0x1]  ;;  %v1151_v0 = vld [vmem:[%s1955_s24 + $0x25] sm:$0x1]  ;;  %vm1613_vm14 = vcmask 7168  }
  0x2c   : > { %v840_v1 = vsel %vm241_vm2, %v839_v52, %v838_v61  ;;  %v1464_v2 = vsel %vm235_vm0, %v1463_v58, %v1455_v50  ;;  %v1152_v3 = vld [vmem:[%s1955_s24 + $0x35] sm:$0x1]  ;;  %v1157_v4 = vrot.slane %v1150_v63, 7  ;;  %v1159_v5 = vrot.slane %v1151_v0, 6  ;;  %v971_v6 = vld [vmem:[%s1955_s24 + $0x2] sm:$0x1] }
  0x2d   : > { %v1466_v7 = vsel %vm238_vm1, %v1465_v59, %v1464_v2  ;;  %v1161_v8 = vrot.slane %v1152_v3, 5  ;;  %v972_v9 = vld [vmem:[%s1955_s24 + $0x12] sm:$0x1]  ;;  %v973_v10 = vld [vmem:[%s1955_s24 + $0x22] sm:$0x1] }
  0x2e   : > { %v1468_v11 = vsel %vm241_vm2, %v1467_v62, %v1466_v7  ;;  %v1158_v12 = vsel %vm235_vm0, %v1157_v4, %v1149_v60  ;;  %v974_v13 = vld [vmem:[%s1955_s24 + $0x32] sm:$0x1]  ;;  %v979_v14 = vrot.slane %v972_v9, 7  ;;  %v981_v15 = vrot.slane %v973_v10, 6  ;;  %v1473_v16 = vld [vmem:[%s1955_s24 + $0x7] sm:$0x1] }
  0x2f   : > { %841 = vrot.lane.b32.xlu0 %v840_v1, %s1879_s30  ;;  %1469 = vrot.lane.b32.xlu1 %v1468_v11, %s1883_s7  ;;  %v1160_v17 = vsel %vm238_vm1, %v1159_v5, %v1158_v12  ;;  %v983_v18 = vrot.slane %v974_v13, 5  ;;  %v1474_v19 = vld [vmem:[%s1955_s24 + $0x17] sm:$0x1]  ;;  %v1475_v20 = vld [vmem:[%s1955_s24 + $0x27] sm:$0x1] }
  0x30   : > { %v1162_v21 = vsel %vm241_vm2, %v1161_v8, %v1160_v17  ;;  %v980_v22 = vsel %vm235_vm0, %v979_v14, %v971_v6  ;;  %v1476_v23 = vld [vmem:[%s1955_s24 + $0x37] sm:$0x1]  ;;  %v1481_v24 = vrot.slane %v1474_v19, 7  ;;  %v1483_v25 = vrot.slane %v1475_v20, 6  ;;  %v1293_v26 = vld [vmem:[%s1955_s24 + $0x5] sm:$0x1] }
  0x31   : > { %v982_v27 = vsel %vm238_vm1, %v981_v15, %v980_v22  ;;  %v1485_v28 = vrot.slane %v1476_v23, 5  ;;  %v1294_v29 = vld [vmem:[%s1955_s24 + $0x15] sm:$0x1]  ;;  %v1295_v30 = vld [vmem:[%s1955_s24 + $0x25] sm:$0x1] }
  0x32   : > { %v984_v31 = vsel %vm241_vm2, %v983_v18, %v982_v27  ;;  %v1482_v32 = vsel %vm235_vm0, %v1481_v24, %v1473_v16  ;;  %v1296_v33 = vld [vmem:[%s1955_s24 + $0x35] sm:$0x1]  ;;  %v1301_v34 = vrot.slane %v1294_v29, 7  ;;  %v1303_v35 = vrot.slane %v1295_v30, 6  ;;  %v845_v36 = vld [vmem:[%s1955_s24 + $0x3] sm:$0x1] }
  0x33   : > { %1163 = vrot.lane.b32.xlu0 %v1162_v21, %s1884_s8  ;;  %985 = vrot.lane.b32.xlu1 %v984_v31, %s1875_s26  ;;  %v1484_v37 = vsel %vm238_vm1, %v1483_v25, %v1482_v32  ;;  %v1305_v38 = vrot.slane %v1296_v33, 5  ;;  %v846_v39 = vld [vmem:[%s1955_s24 + $0x13] sm:$0x1]  ;;  %v847_v40 = vld [vmem:[%s1955_s24 + $0x23] sm:$0x1] }
  0x34   : > { %v1486_v41 = vsel %vm241_vm2, %v1485_v28, %v1484_v37  ;;  %v1302_v42 = vsel %vm235_vm0, %v1301_v34, %v1293_v26  ;;  %v848_v43 = vld [vmem:[%s1955_s24 + $0x33] sm:$0x1]  ;;  %v853_v44 = vrot.slane %v846_v39, 7  ;;  %v855_v45 = vrot.slane %v847_v40, 6  ;;  %v523_v46 = vld [vmem:[%s1955_s24] sm:$0x1] }
  0x35   : > { %v1304_v47 = vsel %vm238_vm1, %v1303_v35, %v1302_v42  ;;  %v857_v48 = vrot.slane %v848_v43, 5  ;;  %v524_v49 = vld [vmem:[%s1955_s24 + $0x10] sm:$0x1]  ;;  %v525_v50 = vld [vmem:[%s1955_s24 + $0x20] sm:$0x1] }
  0x36   : > { %v1306_v51 = vsel %vm241_vm2, %v1305_v38, %v1304_v47  ;;  %v854_v52 = vsel %vm235_vm0, %v853_v44, %v845_v36  ;;  %v526_v53 = vld [vmem:[%s1955_s24 + $0x30] sm:$0x1]  ;;  %v531_v54 = vrot.slane %v524_v49, 7  ;;  %v533_v55 = vrot.slane %v525_v50, 6  ;;  %v1167_v56 = vld [vmem:[%s1955_s24 + $0x6] sm:$0x1] }
  0x37   : > { %1487 = vrot.lane.b32.xlu0 %v1486_v41, %s1885_s9  ;;  %1307 = vrot.lane.b32.xlu1 %v1306_v51, %s1886_s10  ;;  %v856_v57 = vsel %vm238_vm1, %v855_v45, %v854_v52  ;;  %v535_v58 = vrot.slane %v526_v53, 5  ;;  %v1168_v59 = vld [vmem:[%s1955_s24 + $0x16] sm:$0x1]  ;;  %v1169_v60 = vld [vmem:[%s1955_s24 + $0x26] sm:$0x1] }
  0x38   : > { %v858_v61 = vsel %vm241_vm2, %v857_v48, %v856_v57  ;;  %v532_v62 = vsel %vm235_vm0, %v531_v54, %v523_v46  ;;  %v1170_v63 = vld [vmem:[%s1955_s24 + $0x36] sm:$0x1]  ;;  %v1175_v0 = vrot.slane %v1168_v59, 7  ;;  %v1177_v1 = vrot.slane %v1169_v60, 6  ;;  %v989_v2 = vld [vmem:[%s1955_s24 + $0x3] sm:$0x1] }
  0x39   : > { %v534_v3 = vsel %vm238_vm1, %v533_v55, %v532_v62  ;;  %v1179_v4 = vrot.slane %v1170_v63, 5  ;;  %v990_v5 = vld [vmem:[%s1955_s24 + $0x13] sm:$0x1]  ;;  %v991_v6 = vld [vmem:[%s1955_s24 + $0x23] sm:$0x1] }
  0x3a   : > { %v536_v7 = vsel %vm241_vm2, %v535_v58, %v534_v3  ;;  %v1176_v8 = vsel %vm235_vm0, %v1175_v0, %v1167_v56  ;;  %v992_v9 = vld [vmem:[%s1955_s24 + $0x33] sm:$0x1]  ;;  %v997_v10 = vrot.slane %v990_v5, 7  ;;  %v999_v11 = vrot.slane %v991_v6, 6  ;;  %v1491_v12 = vld [vmem:[%s1955_s24 + $0x8] sm:$0x1] }
  0x3b   : > { %859 = vrot.lane.b32.xlu0 %v858_v61, %s1881_s5  ;;  %537 = vrot.lane.b32.xlu1 %v536_v7, %s1874_s25  ;;  %v1178_v13 = vsel %vm238_vm1, %v1177_v1, %v1176_v8  ;;  %v1001_v14 = vrot.slane %v992_v9, 5  ;;  %v1492_v15 = vld [vmem:[%s1955_s24 + $0x18] sm:$0x1]  ;;  %v1493_v16 = vld [vmem:[%s1955_s24 + $0x28] sm:$0x1]  ;;  %s1895_s25 = smov 95  }
  0x3c   : > { %v1180_v17 = vsel %vm241_vm2, %v1179_v4, %v1178_v13  ;;  %v998_v18 = vsel %vm235_vm0, %v997_v10, %v989_v2  ;;  %v1494_v19 = vld [vmem:[%s1955_s24 + $0x38] sm:$0x1]  ;;  %v1499_v20 = vrot.slane %v1492_v15, 7  ;;  %v1501_v21 = vrot.slane %v1493_v16, 6  ;;  %v1311_v22 = vld [vmem:[%s1955_s24 + $0x6] sm:$0x1] }
  0x3d   : > { %v1000_v23 = vsel %vm238_vm1, %v999_v11, %v998_v18  ;;  %v1503_v24 = vrot.slane %v1494_v19, 5  ;;  %v1312_v25 = vld [vmem:[%s1955_s24 + $0x16] sm:$0x1]  ;;  %v1313_v26 = vld [vmem:[%s1955_s24 + $0x26] sm:$0x1] }
  0x3e   : > { %v1002_v27 = vsel %vm241_vm2, %v1001_v14, %v1000_v23  ;;  %v1500_v28 = vsel %vm235_vm0, %v1499_v20, %v1491_v12  ;;  %v1314_v29 = vld [vmem:[%s1955_s24 + $0x36] sm:$0x1]  ;;  %v1319_v30 = vrot.slane %v1312_v25, 7  ;;  %v1321_v31 = vrot.slane %v1313_v26, 6  ;;  %v683_v32 = vld [vmem:[%s1955_s24 + $0x2] sm:$0x1] }
  0x3f   : > { %1181 = vrot.lane.b32.xlu0 %v1180_v17, %s1887_s11  ;;  %1003 = vrot.lane.b32.xlu1 %v1002_v27, %s1877_s28  ;;  %v1502_v33 = vsel %vm238_vm1, %v1501_v21, %v1500_v28  ;;  %v1323_v34 = vrot.slane %v1314_v29, 5  ;;  %v684_v35 = vld [vmem:[%s1955_s24 + $0x12] sm:$0x1]  ;;  %v685_v36 = vld [vmem:[%s1955_s24 + $0x22] sm:$0x1] }
  0x40   : > { %v1504_v37 = vsel %vm241_vm2, %v1503_v24, %v1502_v33  ;;  %v1320_v38 = vsel %vm235_vm0, %v1319_v30, %v1311_v22  ;;  %v686_v39 = vld [vmem:[%s1955_s24 + $0x32] sm:$0x1]  ;;  %v691_v40 = vrot.slane %v684_v35, 7  ;;  %v693_v41 = vrot.slane %v685_v36, 6  ;;  %v541_v42 = vld [vmem:[%s1955_s24 + $0x1] sm:$0x1] }
  0x41   : > { %v1322_v43 = vsel %vm238_vm1, %v1321_v31, %v1320_v38  ;;  %v695_v44 = vrot.slane %v686_v39, 5  ;;  %v542_v45 = vld [vmem:[%s1955_s24 + $0x11] sm:$0x1]  ;;  %v543_v46 = vld [vmem:[%s1955_s24 + $0x21] sm:$0x1]  ;;  %v1890_v39 = vmov 0.0  }
  0x42   : > { %v1324_v47 = vsel %vm241_vm2, %v1323_v34, %v1322_v43  ;;  %v692_v48 = vsel %vm235_vm0, %v691_v40, %v683_v32  ;;  %v544_v49 = vld [vmem:[%s1955_s24 + $0x31] sm:$0x1]  ;;  %v549_v50 = vrot.slane %v542_v45, 7  ;;  %v551_v51 = vrot.slane %v543_v46, 6  ;;  %v1007_v52 = vld [vmem:[%s1955_s24 + $0x4] sm:$0x1]  ;;  %1756 = vmatprep.subr.mxu0 %v1890_v39  ;;  %1766 = vmatprep.mubr.msk.f32.mxu0 %vm1898_vm7, %v1890_v39 }
  0x43   : > { %1505 = vrot.lane.b32.xlu0 %v1504_v37, %s1888_s12  ;;  %1325 = vrot.lane.b32.xlu1 %v1324_v47, %s1889_s13  ;;  %v694_v53 = vsel %vm238_vm1, %v693_v41, %v692_v48  ;;  %v553_v54 = vrot.slane %v544_v49, 5  ;;  %v1008_v55 = vld [vmem:[%s1955_s24 + $0x14] sm:$0x1]  ;;  %v1009_v56 = vld [vmem:[%s1955_s24 + $0x24] sm:$0x1] }
  0x44   : > { %v696_v57 = vsel %vm241_vm2, %v695_v44, %v694_v53  ;;  %v550_v58 = vsel %vm235_vm0, %v549_v50, %v541_v42  ;;  %v1010_v59 = vld [vmem:[%s1955_s24 + $0x34] sm:$0x1]  ;;  %v1015_v60 = vrot.slane %v1008_v55, 7  ;;  %v1017_v61 = vrot.slane %v1009_v56, 6  ;;  %v863_v62 = vld [vmem:[%s1955_s24 + $0x4] sm:$0x1] }
  0x45   : > { %v552_v63 = vsel %vm238_vm1, %v551_v51, %v550_v58  ;;  %v1019_v0 = vrot.slane %v1010_v59, 5  ;;  %v864_v1 = vld [vmem:[%s1955_s24 + $0x14] sm:$0x1]  ;;  %v865_v2 = vld [vmem:[%s1955_s24 + $0x24] sm:$0x1] }
  0x46   : > { %v554_v3 = vsel %vm241_vm2, %v553_v54, %v552_v63  ;;  %v1016_v4 = vsel %vm235_vm0, %v1015_v60, %v1007_v52  ;;  %v866_v5 = vld [vmem:[%s1955_s24 + $0x34] sm:$0x1]  ;;  %v871_v6 = vrot.slane %v864_v1, 7  ;;  %v873_v7 = vrot.slane %v865_v2, 6  ;;  %v1329_v8 = vld [vmem:[%s1955_s24 + $0x7] sm:$0x1] }
  0x47   : > { %697 = vrot.lane.b32.xlu0 %v696_v57, %s1878_s29  ;;  %555 = vrot.lane.b32.xlu1 %v554_v3, %s1875_s26  ;;  %v1018_v9 = vsel %vm238_vm1, %v1017_v61, %v1016_v4  ;;  %v875_v10 = vrot.slane %v866_v5, 5  ;;  %v1330_v11 = vld [vmem:[%s1955_s24 + $0x17] sm:$0x1]  ;;  %v1331_v12 = vld [vmem:[%s1955_s24 + $0x27] sm:$0x1]  ;;  %s1896_s26 = smov 111  }
  0x48   : > { %v1020_v13 = vsel %vm241_vm2, %v1019_v0, %v1018_v9  ;;  %v872_v14 = vsel %vm235_vm0, %v871_v6, %v863_v62  ;;  %v1332_v15 = vld [vmem:[%s1955_s24 + $0x37] sm:$0x1]  ;;  %v1337_v16 = vrot.slane %v1330_v11, 7  ;;  %v1339_v17 = vrot.slane %v1331_v12, 6  ;;  %v1185_v18 = vld [vmem:[%s1955_s24 + $0x7] sm:$0x1] }
  0x49   : > { %v874_v19 = vsel %vm238_vm1, %v873_v7, %v872_v14  ;;  %v1341_v20 = vrot.slane %v1332_v15, 5  ;;  %v1186_v21 = vld [vmem:[%s1955_s24 + $0x17] sm:$0x1]  ;;  %v1187_v22 = vld [vmem:[%s1955_s24 + $0x27] sm:$0x1] }
  0x4a   : > { %v876_v23 = vsel %vm241_vm2, %v875_v10, %v874_v19  ;;  %v1338_v24 = vsel %vm235_vm0, %v1337_v16, %v1329_v8  ;;  %v1188_v25 = vld [vmem:[%s1955_s24 + $0x37] sm:$0x1]  ;;  %v1193_v26 = vrot.slane %v1186_v21, 7  ;;  %v1195_v27 = vrot.slane %v1187_v22, 6  ;;  %v1509_v28 = vld [vmem:[%s1955_s24 + $0x9] sm:$0x1] }
  0x4b   : > { %1021 = vrot.lane.b32.xlu0 %v1020_v13, %s1880_s4  ;;  %877 = vrot.lane.b32.xlu1 %v876_v23, %s1886_s10  ;;  %v1340_v29 = vsel %vm238_vm1, %v1339_v17, %v1338_v24  ;;  %v1197_v30 = vrot.slane %v1188_v25, 5  ;;  %v1510_v31 = vld [vmem:[%s1955_s24 + $0x19] sm:$0x1]  ;;  %v1511_v32 = vld [vmem:[%s1955_s24 + $0x29] sm:$0x1] }
  0x4c   : > { %v1342_v33 = vsel %vm241_vm2, %v1341_v20, %v1340_v29  ;;  %v1194_v34 = vsel %vm235_vm0, %v1193_v26, %v1185_v18  ;;  %v1512_v35 = vld [vmem:[%s1955_s24 + $0x39] sm:$0x1]  ;;  %v1517_v36 = vrot.slane %v1510_v31, 7  ;;  %v1519_v37 = vrot.slane %v1511_v32, 6  ;;  %v379_v38 = vld [vmem:[%s1955_s24] sm:$0x1] }
  0x4d   : > { %v1196_v40 = vsel %vm238_vm1, %v1195_v27, %v1194_v34  ;;  %v1521_v41 = vrot.slane %v1512_v35, 5  ;;  %v380_v42 = vld [vmem:[%s1955_s24 + $0x10] sm:$0x1]  ;;  %v381_v43 = vld [vmem:[%s1955_s24 + $0x20] sm:$0x1] }
  0x4e   : > { %v1198_v44 = vsel %vm241_vm2, %v1197_v30, %v1196_v40  ;;  %v1518_v45 = vsel %vm235_vm0, %v1517_v36, %v1509_v28  ;;  %v382_v46 = vld [vmem:[%s1955_s24 + $0x30] sm:$0x1]  ;;  %v387_v47 = vrot.slane %v380_v42, 7  ;;  %v389_v48 = vrot.slane %v381_v43, 6  ;;  %v559_v49 = vld [vmem:[%s1955_s24 + $0x2] sm:$0x1] }
  0x4f   : > { %1343 = vrot.lane.b32.xlu0 %v1342_v33, %s1891_s19  ;;  %1199 = vrot.lane.b32.xlu1 %v1198_v44, %s1892_s21  ;;  %v1520_v50 = vsel %vm238_vm1, %v1519_v37, %v1518_v45  ;;  %v391_v51 = vrot.slane %v382_v46, 5  ;;  %v560_v52 = vld [vmem:[%s1955_s24 + $0x12] sm:$0x1]  ;;  %v561_v53 = vld [vmem:[%s1955_s24 + $0x22] sm:$0x1] }
  0x50   : > { %v1522_v54 = vsel %vm241_vm2, %v1521_v41, %v1520_v50  ;;  %v388_v55 = vsel %vm235_vm0, %v387_v47, %v379_v38  ;;  %v562_v56 = vld [vmem:[%s1955_s24 + $0x32] sm:$0x1]  ;;  %v567_v57 = vrot.slane %v560_v52, 7  ;;  %v569_v58 = vrot.slane %v561_v53, 6  ;;  %v701_v59 = vld [vmem:[%s1955_s24 + $0x3] sm:$0x1] }
  0x51   : > { %v390_v60 = vsel %vm238_vm1, %v389_v48, %v388_v55  ;;  %v571_v61 = vrot.slane %v562_v56, 5  ;;  %v702_v62 = vld [vmem:[%s1955_s24 + $0x13] sm:$0x1]  ;;  %v703_v63 = vld [vmem:[%s1955_s24 + $0x23] sm:$0x1] }
  0x52   : > { %v392_v0 = vsel %vm241_vm2, %v391_v51, %v390_v60  ;;  %v568_v1 = vsel %vm235_vm0, %v567_v57, %v559_v49  ;;  %v704_v2 = vld [vmem:[%s1955_s24 + $0x33] sm:$0x1]  ;;  %v709_v3 = vrot.slane %v702_v62, 7  ;;  %v711_v4 = vrot.slane %v703_v63, 6  ;;  %v881_v5 = vld [vmem:[%s1955_s24 + $0x5] sm:$0x1] }
  0x53   : > { %1523 = vrot.lane.b32.xlu1 %v1522_v54, %s1893_s22  ;;  %393 = vrot.lane.b32.xlu0 %v392_v0, %s1876_s27  ;;  %v570_v6 = vsel %vm238_vm1, %v569_v58, %v568_v1  ;;  %v713_v7 = vrot.slane %v704_v2, 5  ;;  %v882_v8 = vld [vmem:[%s1955_s24 + $0x15] sm:$0x1]  ;;  %v883_v9 = vld [vmem:[%s1955_s24 + $0x25] sm:$0x1]  ;;  %s1897_s27 = smov 112  }
  0x54   : > { %v572_v10 = vsel %vm241_vm2, %v571_v61, %v570_v6  ;;  %v710_v11 = vsel %vm235_vm0, %v709_v3, %v701_v59  ;;  %v884_v12 = vld [vmem:[%s1955_s24 + $0x35] sm:$0x1]  ;;  %v889_v13 = vrot.slane %v882_v8, 7  ;;  %v891_v14 = vrot.slane %v883_v9, 6  ;;  %v1025_v15 = vld [vmem:[%s1955_s24 + $0x5] sm:$0x1] }
  0x55   : > { %v712_v16 = vsel %vm238_vm1, %v711_v4, %v710_v11  ;;  %v893_v17 = vrot.slane %v884_v12, 5  ;;  %v1026_v18 = vld [vmem:[%s1955_s24 + $0x15] sm:$0x1]  ;;  %v1027_v19 = vld [vmem:[%s1955_s24 + $0x25] sm:$0x1] }
  0x56   : > { %v714_v20 = vsel %vm241_vm2, %v713_v7, %v712_v16  ;;  %v890_v21 = vsel %vm235_vm0, %v889_v13, %v881_v5  ;;  %v1028_v22 = vld [vmem:[%s1955_s24 + $0x35] sm:$0x1]  ;;  %v1033_v23 = vrot.slane %v1026_v18, 7  ;;  %v1035_v24 = vrot.slane %v1027_v19, 6  ;;  %v1203_v25 = vld [vmem:[%s1955_s24 + $0x8] sm:$0x1] }
  0x57   : > { %573 = vrot.lane.b32.xlu1 %v572_v10, %s1877_s28  ;;  %715 = vrot.lane.b32.xlu0 %v714_v20, %s1882_s6  ;;  %v892_v26 = vsel %vm238_vm1, %v891_v14, %v890_v21  ;;  %v1037_v27 = vrot.slane %v1028_v22, 5  ;;  %v1204_v28 = vld [vmem:[%s1955_s24 + $0x18] sm:$0x1]  ;;  %v1205_v29 = vld [vmem:[%s1955_s24 + $0x28] sm:$0x1] }
  0x58   : > { %v894_v30 = vsel %vm241_vm2, %v893_v17, %v892_v26  ;;  %v1034_v31 = vsel %vm235_vm0, %v1033_v23, %v1025_v15  ;;  %v1206_v32 = vld [vmem:[%s1955_s24 + $0x38] sm:$0x1]  ;;  %v1211_v33 = vrot.slane %v1204_v28, 7  ;;  %v1213_v34 = vrot.slane %v1205_v29, 6  ;;  %v1347_v35 = vld [vmem:[%s1955_s24 + $0x8] sm:$0x1] }
  0x59   : > { %v1036_v36 = vsel %vm238_vm1, %v1035_v24, %v1034_v31  ;;  %v1215_v37 = vrot.slane %v1206_v32, 5  ;;  %v1348_v38 = vld [vmem:[%s1955_s24 + $0x18] sm:$0x1]  ;;  %v1349_v40 = vld [vmem:[%s1955_s24 + $0x28] sm:$0x1] }
  0x5a   : > { %v1038_v41 = vsel %vm241_vm2, %v1037_v27, %v1036_v36  ;;  %v1212_v42 = vsel %vm235_vm0, %v1211_v33, %v1203_v25  ;;  %v1350_v43 = vld [vmem:[%s1955_s24 + $0x38] sm:$0x1]  ;;  %v1355_v44 = vrot.slane %v1348_v38, 7  ;;  %v1357_v45 = vrot.slane %v1349_v40, 6  ;;  %v397_v46 = vld [vmem:[%s1955_s24 + $0x1] sm:$0x1] }
  0x5b   : > { %895 = vrot.lane.b32.xlu1 %v894_v30, %s1889_s13  ;;  %1039 = vrot.lane.b32.xlu0 %v1038_v41, %s1883_s7  ;;  %v1214_v47 = vsel %vm238_vm1, %v1213_v34, %v1212_v42  ;;  %v1359_v48 = vrot.slane %v1350_v43, 5  ;;  %v398_v49 = vld [vmem:[%s1955_s24 + $0x11] sm:$0x1]  ;;  %v399_v50 = vld [vmem:[%s1955_s24 + $0x21] sm:$0x1] }
  0x5c   : > { %v1216_v51 = vsel %vm241_vm2, %v1215_v37, %v1214_v47  ;;  %v1356_v52 = vsel %vm235_vm0, %v1355_v44, %v1347_v35  ;;  %v400_v53 = vld [vmem:[%s1955_s24 + $0x31] sm:$0x1]  ;;  %v405_v54 = vrot.slane %v398_v49, 7  ;;  %v407_v55 = vrot.slane %v399_v50, 6  ;;  %v246_v56 = vld [vmem:[%s1955_s24 + $0x1] sm:$0x1] }
  0x5d   : > { %v1358_v57 = vsel %vm238_vm1, %v1357_v45, %v1356_v52  ;;  %v409_v58 = vrot.slane %v400_v53, 5  ;;  %v247_v59 = vld [vmem:[%s1955_s24 + $0x11] sm:$0x1]  ;;  %v248_v60 = vld [vmem:[%s1955_s24 + $0x21] sm:$0x1] }
  0x5e   : > { %v1360_v61 = vsel %vm241_vm2, %v1359_v48, %v1358_v57  ;;  %v406_v62 = vsel %vm235_vm0, %v405_v54, %v397_v46  ;;  %v249_v63 = vld [vmem:[%s1955_s24 + $0x31] sm:$0x1]  ;;  %v254_v0 = vrot.slane %v247_v59, 7  ;;  %v256_v1 = vrot.slane %v248_v60, 6  ;;  %v719_v2 = vld [vmem:[%s1955_s24 + $0x4] sm:$0x1] }
  0x5f   : > { %1217 = vrot.lane.b32.xlu1 %v1216_v51, %s1894_s23  ;;  %1361 = vrot.lane.b32.xlu0 %v1360_v61, %s1895_s25  ;;  %v408_v3 = vsel %vm238_vm1, %v407_v55, %v406_v62  ;;  %v258_v4 = vrot.slane %v249_v63, 5  ;;  %v720_v5 = vld [vmem:[%s1955_s24 + $0x14] sm:$0x1]  ;;  %v721_v6 = vld [vmem:[%s1955_s24 + $0x24] sm:$0x1] }
  0x60   : > { %v410_v7 = vsel %vm241_vm2, %v409_v58, %v408_v3  ;;  %v255_v8 = vsel %vm235_vm0, %v254_v0, %v246_v56  ;;  %v722_v9 = vld [vmem:[%s1955_s24 + $0x34] sm:$0x1]  ;;  %v727_v10 = vrot.slane %v720_v5, 7  ;;  %v729_v11 = vrot.slane %v721_v6, 6  ;;  %v577_v12 = vld [vmem:[%s1955_s24 + $0x3] sm:$0x1] }
  0x61   : > { %v257_v13 = vsel %vm238_vm1, %v256_v1, %v255_v8  ;;  %v731_v14 = vrot.slane %v722_v9, 5  ;;  %v578_v15 = vld [vmem:[%s1955_s24 + $0x13] sm:$0x1]  ;;  %v579_v16 = vld [vmem:[%s1955_s24 + $0x23] sm:$0x1] }
  0x62   : > { %v259_v17 = vsel %vm241_vm2, %v258_v4, %v257_v13  ;;  %v728_v18 = vsel %vm235_vm0, %v727_v10, %v719_v2  ;;  %v580_v19 = vld [vmem:[%s1955_s24 + $0x33] sm:$0x1]  ;;  %v585_v20 = vrot.slane %v578_v15, 7  ;;  %v587_v21 = vrot.slane %v579_v16, 6  ;;  %v1043_v22 = vld [vmem:[%s1955_s24 + $0x6] sm:$0x1] }
  0x63   : > { %411 = vrot.lane.b32.xlu0 %v410_v7, %s1879_s30  ;;  %260 = vrot.lane.b32.xlu1 %v259_v17, %s1878_s29  ;;  %v730_v23 = vsel %vm238_vm1, %v729_v11, %v728_v18  ;;  %v589_v24 = vrot.slane %v580_v19, 5  ;;  %v1044_v25 = vld [vmem:[%s1955_s24 + $0x16] sm:$0x1]  ;;  %v1045_v26 = vld [vmem:[%s1955_s24 + $0x26] sm:$0x1]  ;;  %s1742_s29 = sshll.u32 %s2648_s20, 3 }
  0x64   : > { %v732_v27 = vsel %vm241_vm2, %v731_v14, %v730_v23  ;;  %v586_v28 = vsel %vm235_vm0, %v585_v20, %v577_v12  ;;  %v1046_v29 = vld [vmem:[%s1955_s24 + $0x36] sm:$0x1]  ;;  %v1051_v30 = vrot.slane %v1044_v25, 7  ;;  %v1053_v31 = vrot.slane %v1045_v26, 6  ;;  %v899_v32 = vld [vmem:[%s1955_s24 + $0x6] sm:$0x1] }
  0x65   : > { %v588_v33 = vsel %vm238_vm1, %v587_v21, %v586_v28  ;;  %v1055_v34 = vrot.slane %v1046_v29, 5  ;;  %v900_v35 = vld [vmem:[%s1955_s24 + $0x16] sm:$0x1]  ;;  %v901_v36 = vld [vmem:[%s1955_s24 + $0x26] sm:$0x1] }
  0x66   : > { %v590_v37 = vsel %vm241_vm2, %v589_v24, %v588_v33  ;;  %v1052_v38 = vsel %vm235_vm0, %v1051_v30, %v1043_v22  ;;  %v902_v40 = vld [vmem:[%s1955_s24 + $0x36] sm:$0x1]  ;;  %v907_v41 = vrot.slane %v900_v35, 7  ;;  %v909_v42 = vrot.slane %v901_v36, 6  ;;  %v1365_v43 = vld [vmem:[%s1955_s24 + $0x9] sm:$0x1] }
  0x67   : > { %733 = vrot.lane.b32.xlu0 %v732_v27, %s1884_s8  ;;  %591 = vrot.lane.b32.xlu1 %v590_v37, %s1880_s4  ;;  %v1054_v44 = vsel %vm238_vm1, %v1053_v31, %v1052_v38  ;;  %v911_v45 = vrot.slane %v902_v40, 5  ;;  %v1366_v46 = vld [vmem:[%s1955_s24 + $0x19] sm:$0x1]  ;;  %v1367_v47 = vld [vmem:[%s1955_s24 + $0x29] sm:$0x1] }
  0x68   : > { %v1056_v48 = vsel %vm241_vm2, %v1055_v34, %v1054_v44  ;;  %v908_v49 = vsel %vm235_vm0, %v907_v41, %v899_v32  ;;  %v1368_v50 = vld [vmem:[%s1955_s24 + $0x39] sm:$0x1]  ;;  %v1373_v51 = vrot.slane %v1366_v46, 7  ;;  %v1375_v52 = vrot.slane %v1367_v47, 6  ;;  %v1221_v53 = vld [vmem:[%s1955_s24 + $0x9] sm:$0x1] }
  0x69   : > { %v910_v54 = vsel %vm238_vm1, %v909_v42, %v908_v49  ;;  %v1377_v55 = vrot.slane %v1368_v50, 5  ;;  %v1222_v56 = vld [vmem:[%s1955_s24 + $0x19] sm:$0x1]  ;;  %v1223_v57 = vld [vmem:[%s1955_s24 + $0x29] sm:$0x1] }
  0x6a   : > { %v912_v58 = vsel %vm241_vm2, %v911_v45, %v910_v54  ;;  %v1374_v59 = vsel %vm235_vm0, %v1373_v51, %v1365_v43  ;;  %v1224_v60 = vld [vmem:[%s1955_s24 + $0x39] sm:$0x1]  ;;  %v1229_v61 = vrot.slane %v1222_v56, 7  ;;  %v1231_v62 = vrot.slane %v1223_v57, 6  ;;  %v415_v63 = vld [vmem:[%s1955_s24 + $0x2] sm:$0x1] }
  0x6b   : > { %1057 = vrot.lane.b32.xlu0 %v1056_v48, %s1885_s9  ;;  %913 = vrot.lane.b32.xlu1 %v912_v58, %s1891_s19  ;;  %v1376_v0 = vsel %vm238_vm1, %v1375_v52, %v1374_v59  ;;  %v1233_v1 = vrot.slane %v1224_v60, 5  ;;  %v416_v2 = vld [vmem:[%s1955_s24 + $0x12] sm:$0x1]  ;;  %v417_v3 = vld [vmem:[%s1955_s24 + $0x22] sm:$0x1] }
  0x6c   : > { %v1378_v4 = vsel %vm241_vm2, %v1377_v55, %v1376_v0  ;;  %v1230_v5 = vsel %vm235_vm0, %v1229_v61, %v1221_v53  ;;  %v418_v6 = vld [vmem:[%s1955_s24 + $0x32] sm:$0x1]  ;;  %v423_v7 = vrot.slane %v416_v2, 7  ;;  %v425_v8 = vrot.slane %v417_v3, 6  ;;  %v265_v9 = vld [vmem:[%s1955_s24 + $0x2] sm:$0x1] }
  0x6d   : > { %v1232_v10 = vsel %vm238_vm1, %v1231_v62, %v1230_v5  ;;  %v427_v11 = vrot.slane %v418_v6, 5  ;;  %v266_v12 = vld [vmem:[%s1955_s24 + $0x12] sm:$0x1]  ;;  %v267_v13 = vld [vmem:[%s1955_s24 + $0x22] sm:$0x1] }
  0x6e   : > { %v1234_v14 = vsel %vm241_vm2, %v1233_v1, %v1232_v10  ;;  %v424_v15 = vsel %vm235_vm0, %v423_v7, %v415_v63  ;;  %v268_v16 = vld [vmem:[%s1955_s24 + $0x32] sm:$0x1]  ;;  %v273_v17 = vrot.slane %v266_v12, 7  ;;  %v275_v18 = vrot.slane %v267_v13, 6  ;;  %v737_v19 = vld [vmem:[%s1955_s24 + $0x5] sm:$0x1] }
  0x6f   : > { %1379 = vrot.lane.b32.xlu0 %v1378_v4, %s1896_s26  ;;  %1235 = vrot.lane.b32.xlu1 %v1234_v14, %s1897_s27  ;;  %v426_v20 = vsel %vm238_vm1, %v425_v8, %v424_v15  ;;  %v277_v21 = vrot.slane %v268_v16, 5  ;;  %v738_v22 = vld [vmem:[%s1955_s24 + $0x15] sm:$0x1]  ;;  %v739_v23 = vld [vmem:[%s1955_s24 + $0x25] sm:$0x1] }
  0x70   : > { %v428_v24 = vsel %vm241_vm2, %v427_v11, %v426_v20  ;;  %v274_v25 = vsel %vm235_vm0, %v273_v17, %v265_v9  ;;  %v740_v26 = vld [vmem:[%s1955_s24 + $0x35] sm:$0x1]  ;;  %v745_v27 = vrot.slane %v738_v22, 7  ;;  %v747_v28 = vrot.slane %v739_v23, 6  ;;  %v595_v29 = vld [vmem:[%s1955_s24 + $0x4] sm:$0x1] }
  0x71   : > { %v276_v30 = vsel %vm238_vm1, %v275_v18, %v274_v25  ;;  %v749_v31 = vrot.slane %v740_v26, 5  ;;  %v596_v32 = vld [vmem:[%s1955_s24 + $0x14] sm:$0x1]  ;;  %v597_v33 = vld [vmem:[%s1955_s24 + $0x24] sm:$0x1] }
  0x72   : > { %v278_v34 = vsel %vm241_vm2, %v277_v21, %v276_v30  ;;  %v746_v35 = vsel %vm235_vm0, %v745_v27, %v737_v19  ;;  %v598_v36 = vld [vmem:[%s1955_s24 + $0x34] sm:$0x1]  ;;  %v603_v37 = vrot.slane %v596_v32, 7  ;;  %v605_v38 = vrot.slane %v597_v33, 6  ;;  %v1061_v40 = vld [vmem:[%s1955_s24 + $0x7] sm:$0x1] }
  0x73   : > { %429 = vrot.lane.b32.xlu0 %v428_v24, %s1881_s5  ;;  %279 = vrot.lane.b32.xlu1 %v278_v34, %s1882_s6  ;;  %v748_v41 = vsel %vm238_vm1, %v747_v28, %v746_v35  ;;  %v607_v42 = vrot.slane %v598_v36, 5  ;;  %v1062_v43 = vld [vmem:[%s1955_s24 + $0x17] sm:$0x1]  ;;  %v1063_v44 = vld [vmem:[%s1955_s24 + $0x27] sm:$0x1]  ;;  %s215_s5 = scalar_lea.vmem %s2635_s2, %s1742_s29 }
  0x74   : > { %v750_v45 = vsel %vm241_vm2, %v749_v31, %v748_v41  ;;  %v604_v46 = vsel %vm235_vm0, %v603_v37, %v595_v29  ;;  %v1064_v47 = vld [vmem:[%s1955_s24 + $0x37] sm:$0x1]  ;;  %v1069_v48 = vrot.slane %v1062_v43, 7  ;;  %v1071_v49 = vrot.slane %v1063_v44, 6  ;;  %v917_v50 = vld [vmem:[%s1955_s24 + $0x7] sm:$0x1] }
  0x75   : > { %v606_v51 = vsel %vm238_vm1, %v605_v38, %v604_v46  ;;  %v1073_v52 = vrot.slane %v1064_v47, 5  ;;  %v918_v53 = vld [vmem:[%s1955_s24 + $0x17] sm:$0x1]  ;;  %v919_v54 = vld [vmem:[%s1955_s24 + $0x27] sm:$0x1] }
  0x76   : > { %v608_v55 = vsel %vm241_vm2, %v607_v42, %v606_v51  ;;  %v1070_v56 = vsel %vm235_vm0, %v1069_v48, %v1061_v40  ;;  %v920_v57 = vld [vmem:[%s1955_s24 + $0x37] sm:$0x1]  ;;  %v925_v58 = vrot.slane %v918_v53, 7  ;;  %v927_v59 = vrot.slane %v919_v54, 6  ;;  %v433_v60 = vld [vmem:[%s1955_s24 + $0x3] sm:$0x1] }
  0x77   : > { %751 = vrot.lane.b32.xlu0 %v750_v45, %s1887_s11  ;;  %609 = vrot.lane.b32.xlu1 %v608_v55, %s1883_s7  ;;  %v1072_v61 = vsel %vm238_vm1, %v1071_v49, %v1070_v56  ;;  %v929_v62 = vrot.slane %v920_v57, 5  ;;  %v434_v63 = vld [vmem:[%s1955_s24 + $0x13] sm:$0x1]  ;;  %v435_v0 = vld [vmem:[%s1955_s24 + $0x23] sm:$0x1] }
  0x78   : > { %v1074_v1 = vsel %vm241_vm2, %v1073_v52, %v1072_v61  ;;  %v926_v2 = vsel %vm235_vm0, %v925_v58, %v917_v50  ;;  %v436_v3 = vld [vmem:[%s1955_s24 + $0x33] sm:$0x1]  ;;  %v441_v4 = vrot.slane %v434_v63, 7  ;;  %v443_v5 = vrot.slane %v435_v0, 6  ;;  %v284_v6 = vld [vmem:[%s1955_s24 + $0x3] sm:$0x1] }
  0x79   : > { %v928_v7 = vsel %vm238_vm1, %v927_v59, %v926_v2  ;;  %v445_v8 = vrot.slane %v436_v3, 5  ;;  %v285_v9 = vld [vmem:[%s1955_s24 + $0x13] sm:$0x1]  ;;  %v286_v10 = vld [vmem:[%s1955_s24 + $0x23] sm:$0x1] }
  0x7a   : > { %v930_v11 = vsel %vm241_vm2, %v929_v62, %v928_v7  ;;  %v442_v12 = vsel %vm235_vm0, %v441_v4, %v433_v60  ;;  %v287_v13 = vld [vmem:[%s1955_s24 + $0x33] sm:$0x1]  ;;  %v292_v14 = vrot.slane %v285_v9, 7  ;;  %v294_v15 = vrot.slane %v286_v10, 6  ;;  %v755_v16 = vld [vmem:[%s1955_s24 + $0x6] sm:$0x1] }
  0x7b   : > { %1075 = vrot.lane.b32.xlu0 %v1074_v1, %s1888_s12  ;;  %931 = vrot.lane.b32.xlu1 %v930_v11, %s1895_s25  ;;  %v444_v17 = vsel %vm238_vm1, %v443_v5, %v442_v12  ;;  %v296_v18 = vrot.slane %v287_v13, 5  ;;  %v756_v19 = vld [vmem:[%s1955_s24 + $0x16] sm:$0x1]  ;;  %v757_v20 = vld [vmem:[%s1955_s24 + $0x26] sm:$0x1] }
  0x7c   : > { %v446_v21 = vsel %vm241_vm2, %v445_v8, %v444_v17  ;;  %v293_v22 = vsel %vm235_vm0, %v292_v14, %v284_v6  ;;  %v758_v23 = vld [vmem:[%s1955_s24 + $0x36] sm:$0x1]  ;;  %v763_v24 = vrot.slane %v756_v19, 7  ;;  %v765_v25 = vrot.slane %v757_v20, 6  ;;  %v613_v26 = vld [vmem:[%s1955_s24 + $0x5] sm:$0x1] }
  0x7d   : > { %v295_v27 = vsel %vm238_vm1, %v294_v15, %v293_v22  ;;  %v767_v28 = vrot.slane %v758_v23, 5  ;;  %v614_v29 = vld [vmem:[%s1955_s24 + $0x15] sm:$0x1]  ;;  %v615_v30 = vld [vmem:[%s1955_s24 + $0x25] sm:$0x1] }
  0x7e   : > { %v297_v31 = vsel %vm241_vm2, %v296_v18, %v295_v27  ;;  %v764_v32 = vsel %vm235_vm0, %v763_v24, %v755_v16  ;;  %v616_v33 = vld [vmem:[%s1955_s24 + $0x35] sm:$0x1]  ;;  %v621_v34 = vrot.slane %v614_v29, 7  ;;  %v623_v35 = vrot.slane %v615_v30, 6  ;;  %v1079_v36 = vld [vmem:[%s1955_s24 + $0x8] sm:$0x1] }
  0x7f   : > { %447 = vrot.lane.b32.xlu0 %v446_v21, %s1886_s10  ;;  %298 = vrot.lane.b32.xlu1 %v297_v31, %s1884_s8  ;;  %v766_v37 = vsel %vm238_vm1, %v765_v25, %v764_v32  ;;  %v625_v38 = vrot.slane %v616_v33, 5  ;;  %v1080_v40 = vld [vmem:[%s1955_s24 + $0x18] sm:$0x1]  ;;  %v1081_v41 = vld [vmem:[%s1955_s24 + $0x28] sm:$0x1]  ;;  %s223_s8 = scalar_lea.vmem %s2636_s3, %s1742_s29 }
  0x80   : > { %v768_v42 = vsel %vm241_vm2, %v767_v28, %v766_v37  ;;  %v622_v43 = vsel %vm235_vm0, %v621_v34, %v613_v26  ;;  %v1082_v44 = vld [vmem:[%s1955_s24 + $0x38] sm:$0x1]  ;;  %v1087_v45 = vrot.slane %v1080_v40, 7  ;;  %v1089_v46 = vrot.slane %v1081_v41, 6  ;;  %v935_v47 = vld [vmem:[%s1955_s24 + $0x8] sm:$0x1] }
  0x81   : > { %v624_v48 = vsel %vm238_vm1, %v623_v35, %v622_v43  ;;  %v1091_v49 = vrot.slane %v1082_v44, 5  ;;  %v936_v50 = vld [vmem:[%s1955_s24 + $0x18] sm:$0x1]  ;;  %v937_v51 = vld [vmem:[%s1955_s24 + $0x28] sm:$0x1] }
  0x82   : > { %v626_v52 = vsel %vm241_vm2, %v625_v38, %v624_v48  ;;  %v1088_v53 = vsel %vm235_vm0, %v1087_v45, %v1079_v36  ;;  %v938_v54 = vld [vmem:[%s1955_s24 + $0x38] sm:$0x1]  ;;  %v943_v55 = vrot.slane %v936_v50, 7  ;;  %v945_v56 = vrot.slane %v937_v51, 6  ;;  %v451_v57 = vld [vmem:[%s1955_s24 + $0x4] sm:$0x1] }
  0x83   : > { %769 = vrot.lane.b32.xlu0 %v768_v42, %s1892_s21  ;;  %627 = vrot.lane.b32.xlu1 %v626_v52, %s1885_s9  ;;  %v1090_v58 = vsel %vm238_vm1, %v1089_v46, %v1088_v53  ;;  %v947_v59 = vrot.slane %v938_v54, 5  ;;  %v452_v60 = vld [vmem:[%s1955_s24 + $0x14] sm:$0x1]  ;;  %v453_v61 = vld [vmem:[%s1955_s24 + $0x24] sm:$0x1] }
  0x84   : > { %v1092_v62 = vsel %vm241_vm2, %v1091_v49, %v1090_v58  ;;  %v944_v63 = vsel %vm235_vm0, %v943_v55, %v935_v47  ;;  %v454_v0 = vld [vmem:[%s1955_s24 + $0x34] sm:$0x1]  ;;  %v459_v1 = vrot.slane %v452_v60, 7  ;;  %v461_v2 = vrot.slane %v453_v61, 6  ;;  %v303_v3 = vld [vmem:[%s1955_s24 + $0x4] sm:$0x1] }
  0x85   : > { %v946_v4 = vsel %vm238_vm1, %v945_v56, %v944_v63  ;;  %v463_v5 = vrot.slane %v454_v0, 5  ;;  %v304_v6 = vld [vmem:[%s1955_s24 + $0x14] sm:$0x1]  ;;  %v305_v7 = vld [vmem:[%s1955_s24 + $0x24] sm:$0x1] }
  0x86   : > { %v948_v8 = vsel %vm241_vm2, %v947_v59, %v946_v4  ;;  %v460_v9 = vsel %vm235_vm0, %v459_v1, %v451_v57  ;;  %v306_v10 = vld [vmem:[%s1955_s24 + $0x34] sm:$0x1]  ;;  %v311_v11 = vrot.slane %v304_v6, 7  ;;  %v313_v12 = vrot.slane %v305_v7, 6  ;;  %v773_v13 = vld [vmem:[%s1955_s24 + $0x7] sm:$0x1] }
  0x87   : > { %1093 = vrot.lane.b32.xlu0 %v1092_v62, %s1893_s22  ;;  %949 = vrot.lane.b32.xlu1 %v948_v8, %s1896_s26  ;;  %v462_v14 = vsel %vm238_vm1, %v461_v2, %v460_v9  ;;  %v315_v15 = vrot.slane %v306_v10, 5  ;;  %v774_v16 = vld [vmem:[%s1955_s24 + $0x17] sm:$0x1]  ;;  %v775_v17 = vld [vmem:[%s1955_s24 + $0x27] sm:$0x1] }
  0x88   : > { %v464_v18 = vsel %vm241_vm2, %v463_v5, %v462_v14  ;;  %v312_v19 = vsel %vm235_vm0, %v311_v11, %v303_v3  ;;  %v776_v20 = vld [vmem:[%s1955_s24 + $0x37] sm:$0x1]  ;;  %v781_v21 = vrot.slane %v774_v16, 7  ;;  %v783_v22 = vrot.slane %v775_v17, 6  ;;  %v631_v23 = vld [vmem:[%s1955_s24 + $0x6] sm:$0x1] }
  0x89   : > { %v1398_v24 = vpop.permute.xlu0 %1397  ;;  %v314_v25 = vsel %vm238_vm1, %v313_v12, %v312_v19  ;;  %v785_v26 = vrot.slane %v776_v20, 5  ;;  %v632_v27 = vld [vmem:[%s1955_s24 + $0x16] sm:$0x1]  ;;  %v633_v28 = vld [vmem:[%s1955_s24 + $0x26] sm:$0x1] }
  0x8a   : > { %1400 = vst.msk [vmem:[#allocation2 + $0x20] sm:$0xf] %vm244_vm3, %v1398_v24  ;;  %v316_v29 = vsel %vm241_vm2, %v315_v15, %v314_v25  ;;  %v782_v30 = vsel %vm235_vm0, %v781_v21, %v773_v13  ;;  %v634_v31 = vld [vmem:[%s1955_s24 + $0x36] sm:$0x1]  ;;  %v639_v32 = vrot.slane %v632_v27, 7  ;;  %v641_v33 = vrot.slane %v633_v28, 6 }
  0x8b   : > { %v1097_v34 = vld [vmem:[%s1955_s24 + $0x2] sm:$0x1]  ;;  %465 = vrot.lane.b32.xlu0 %v464_v18, %s1889_s13  ;;  %317 = vrot.lane.b32.xlu1 %v316_v29, %s1887_s11  ;;  %v784_v35 = vsel %vm238_vm1, %v783_v22, %v782_v30  ;;  %v643_v36 = vrot.slane %v634_v31, 5  ;;  %v1098_v37 = vld [vmem:[%s1955_s24 + $0x12] sm:$0x1] }
  0x8c   : > { %v1099_v38 = vld [vmem:[%s1955_s24 + $0x22] sm:$0x1]  ;;  %v786_v40 = vsel %vm241_vm2, %v785_v26, %v784_v35  ;;  %v640_v41 = vsel %vm235_vm0, %v639_v32, %v631_v23  ;;  %v1100_v42 = vld [vmem:[%s1955_s24 + $0x32] sm:$0x1]  ;;  %v1105_v43 = vrot.slane %v1098_v37, 7 }
  0x8d   : > { %v1107_v44 = vrot.slane %v1099_v38, 6  ;;  %v469_v45 = vld [vmem:[%s1955_s24 + $0x5] sm:$0x1]  ;;  %v1416_v46 = vpop.permute.xlu0 %1415  ;;  %v1254_v47 = vpop.permute.xlu1 %1253  ;;  %v642_v48 = vsel %vm238_vm1, %v641_v33, %v640_v41  ;;  %v1109_v49 = vrot.slane %v1100_v42, 5  ;;  %v470_v50 = vld [vmem:[%s1955_s24 + $0x15] sm:$0x1] }
  0x8e   : > { %v471_v51 = vld [vmem:[%s1955_s24 + $0x25] sm:$0x1]  ;;  %1418 = vst.msk [vmem:[#allocation2 + $0x20] sm:$0xf] %vm263_vm4, %v1416_v46  ;;  %v644_v52 = vsel %vm241_vm2, %v643_v36, %v642_v48  ;;  %v1106_v53 = vsel %vm235_vm0, %v1105_v43, %v1097_v34  ;;  %v472_v54 = vld [vmem:[%s1955_s24 + $0x35] sm:$0x1] }
  0x8f   : > { %1256 = vst.msk [vmem:[#allocation2 + $0x1c] sm:$0xf] %vm244_vm3, %v1254_v47  ;;  %v477_v55 = vrot.slane %v470_v50, 7  ;;  %v479_v56 = vrot.slane %v471_v51, 6  ;;  %v322_v57 = vld [vmem:[%s1955_s24 + $0x5] sm:$0x1]  ;;  %787 = vrot.lane.b32.xlu0 %v786_v40, %s1894_s23  ;;  %645 = vrot.lane.b32.xlu1 %v644_v52, %s1888_s12  ;;  %v1108_v58 = vsel %vm238_vm1, %v1107_v44, %v1106_v53 }
  0x90   : > { %v481_v59 = vrot.slane %v472_v54, 5  ;;  %v323_v60 = vld [vmem:[%s1955_s24 + $0x15] sm:$0x1]  ;;  %v324_v61 = vld [vmem:[%s1955_s24 + $0x25] sm:$0x1]  ;;  %v1110_v62 = vsel %vm241_vm2, %v1109_v49, %v1108_v58 }
  0x91   : > { %v478_v63 = vsel %vm235_vm0, %v477_v55, %v469_v45  ;;  %v325_v0 = vld [vmem:[%s1955_s24 + $0x35] sm:$0x1]  ;;  %v330_v1 = vrot.slane %v323_v60, 7  ;;  %v332_v2 = vrot.slane %v324_v61, 6  ;;  %v791_v3 = vld [vmem:[%s1955_s24 + $0x8] sm:$0x1]  ;;  %v1434_v4 = vpop.permute.xlu1 %1433  ;;  %v1128_v5 = vpop.permute.xlu0 %1127 }
  0x92   : > { %1112 = vst.msk [vmem:[#allocation2 + $0x18] sm:$0xf] %vm244_vm3, %v1110_v62  ;;  %v480_v6 = vsel %vm238_vm1, %v479_v56, %v478_v63  ;;  %v334_v7 = vrot.slane %v325_v0, 5  ;;  %v792_v8 = vld [vmem:[%s1955_s24 + $0x18] sm:$0x1] }
  0x93   : > { %v793_v9 = vld [vmem:[%s1955_s24 + $0x28] sm:$0x1]  ;;  %1436 = vst.msk [vmem:[#allocation2 + $0x20] sm:$0xf] %vm282_vm5, %v1434_v4  ;;  %v482_v10 = vsel %vm241_vm2, %v481_v59, %v480_v6  ;;  %v331_v11 = vsel %vm235_vm0, %v330_v1, %v322_v57  ;;  %v794_v12 = vld [vmem:[%s1955_s24 + $0x38] sm:$0x1] }
  0x94   : > { %1130 = vst.msk [vmem:[#allocation2 + $0x18] sm:$0xf] %vm263_vm4, %v1128_v5  ;;  %v799_v13 = vrot.slane %v792_v8, 7  ;;  %v801_v14 = vrot.slane %v793_v9, 6  ;;  %v649_v15 = vld [vmem:[%s1955_s24 + $0x7] sm:$0x1]  ;;  %483 = vrot.lane.b32.xlu0 %v482_v10, %s1891_s19  ;;  %v333_v16 = vsel %vm238_vm1, %v332_v2, %v331_v11 }
  0x95   : > { %v803_v17 = vrot.slane %v794_v12, 5  ;;  %v650_v18 = vld [vmem:[%s1955_s24 + $0x17] sm:$0x1]  ;;  %v651_v19 = vld [vmem:[%s1955_s24 + $0x27] sm:$0x1]  ;;  %v335_v20 = vsel %vm241_vm2, %v334_v7, %v333_v16  ;;  %v1272_v26 = vpop.permute.xlu1 %1271  ;;  %v1452_v27 = vpop.permute.xlu0 %1451 }
  0x96   : > { %v800_v21 = vsel %vm235_vm0, %v799_v13, %v791_v3  ;;  %v652_v22 = vld [vmem:[%s1955_s24 + $0x37] sm:$0x1]  ;;  %v657_v23 = vrot.slane %v650_v18, 7  ;;  %v659_v24 = vrot.slane %v651_v19, 6  ;;  %v487_v25 = vld [vmem:[%s1955_s24 + $0x6] sm:$0x1]  ;;  %336 = vrot.lane.b32.xlu1 %v335_v20, %s1892_s21 }
  0x97   : > { %v802_v28 = vsel %vm238_vm1, %v801_v14, %v800_v21  ;;  %v661_v29 = vrot.slane %v652_v22, 5  ;;  %v488_v30 = vld [vmem:[%s1955_s24 + $0x16] sm:$0x1]  ;;  %v489_v31 = vld [vmem:[%s1955_s24 + $0x26] sm:$0x1] }
  0x98   : > { %1274 = vst.msk [vmem:[#allocation2 + $0x1c] sm:$0xf] %vm263_vm4, %v1272_v26  ;;  %v804_v32 = vsel %vm241_vm2, %v803_v17, %v802_v28  ;;  %v658_v33 = vsel %vm235_vm0, %v657_v23, %v649_v15  ;;  %v490_v34 = vld [vmem:[%s1955_s24 + $0x36] sm:$0x1]  ;;  %v495_v35 = vrot.slane %v488_v30, 7  ;;  %v497_v36 = vrot.slane %v489_v31, 6 }
  0x99   : > { %1454 = vst.msk [vmem:[#allocation2 + $0x20] sm:$0xf] %vm301_vm6, %v1452_v27  ;;  %v341_v37 = vld [vmem:[%s1955_s24 + $0x6] sm:$0x1]  ;;  %805 = vrot.lane.b32.xlu0 %v804_v32, %s1897_s27  ;;  %v660_v38 = vsel %vm238_vm1, %v659_v24, %v658_v33  ;;  %v499_v40 = vrot.slane %v490_v34, 5  ;;  %v968_v49 = vpop.permute.xlu0 %967  ;;  %v824_v50 = vpop.permute.xlu1 %823 }
  0x9a   : > { %v342_v41 = vld [vmem:[%s1955_s24 + $0x16] sm:$0x1]  ;;  %v343_v42 = vld [vmem:[%s1955_s24 + $0x26] sm:$0x1]  ;;  %v662_v43 = vsel %vm241_vm2, %v661_v29, %v660_v38  ;;  %v496_v44 = vsel %vm235_vm0, %v495_v35, %v487_v25  ;;  %v505_v48 = vld [vmem:[%s1955_s24 + $0x7] sm:$0x1] }
  0x9b   : > { %v344_v45 = vld [vmem:[%s1955_s24 + $0x36] sm:$0x1]  ;;  %v349_v46 = vrot.slane %v342_v41, 7  ;;  %v351_v47 = vrot.slane %v343_v42, 6  ;;  %663 = vrot.lane.b32.xlu1 %v662_v43, %s1893_s22  ;;  %v498_v51 = vsel %vm238_vm1, %v497_v36, %v496_v44  ;;  %v506_v53 = vld [vmem:[%s1955_s24 + $0x17] sm:$0x1] }
  0x9c   : > { %v353_v52 = vrot.slane %v344_v45, 5  ;;  %v507_v54 = vld [vmem:[%s1955_s24 + $0x27] sm:$0x1]  ;;  %970 = vst.msk [vmem:[#allocation2 + $0x14] sm:$0xf] %vm244_vm3, %v968_v49  ;;  %v500_v55 = vsel %vm241_vm2, %v499_v40, %v498_v51  ;;  %v513_v58 = vrot.slane %v506_v53, 7 }
  0x9d   : > { %826 = vst.msk [vmem:[#allocation2 + $0x10] sm:$0xf] %vm244_vm3, %v824_v50  ;;  %v350_v56 = vsel %vm235_vm0, %v349_v46, %v341_v37  ;;  %v508_v57 = vld [vmem:[%s1955_s24 + $0x37] sm:$0x1]  ;;  %v515_v59 = vrot.slane %v507_v54, 6  ;;  %501 = vrot.lane.b32.xlu0 %v500_v55, %s1895_s25  ;;  %v1290_v7 = vpop.permute.xlu0 %1289  ;;  %v1146_v8 = vpop.permute.xlu1 %1145 }
  0x9e   : > { %v360_v60 = vld [vmem:[%s1955_s24 + $0x7] sm:$0x1]  ;;  %v352_v61 = vsel %vm238_vm1, %v351_v47, %v350_v56  ;;  %v517_v62 = vrot.slane %v508_v57, 5  ;;  %v361_v63 = vld [vmem:[%s1955_s24 + $0x17] sm:$0x1]  ;;  %v514_v2 = vsel %vm235_vm0, %v513_v58, %v505_v48 }
  0x9f   : > { %v362_v0 = vld [vmem:[%s1955_s24 + $0x27] sm:$0x1]  ;;  %v354_v1 = vsel %vm241_vm2, %v353_v52, %v352_v61  ;;  %v363_v3 = vld [vmem:[%s1955_s24 + $0x37] sm:$0x1]  ;;  %v368_v4 = vrot.slane %v361_v63, 7  ;;  %v516_v9 = vsel %vm238_vm1, %v515_v59, %v514_v2 }
  0xa0   : > { %v370_v5 = vrot.slane %v362_v0, 6  ;;  %v667_v6 = vld [vmem:[%s1955_s24 + $0x1] sm:$0x1]  ;;  %355 = vrot.lane.b32.xlu1 %v354_v1, %s1894_s23  ;;  %v372_v10 = vrot.slane %v363_v3, 5  ;;  %v668_v11 = vld [vmem:[%s1955_s24 + $0x11] sm:$0x1]  ;;  %v518_v13 = vsel %vm241_vm2, %v517_v62, %v516_v9 }
  0xa1   : > { %v669_v12 = vld [vmem:[%s1955_s24 + $0x21] sm:$0x1]  ;;  %1292 = vst.msk [vmem:[#allocation2 + $0x1c] sm:$0xf] %vm282_vm5, %v1290_v7  ;;  %1148 = vst.msk [vmem:[#allocation2 + $0x18] sm:$0xf] %vm282_vm5, %v1146_v8  ;;  %v369_v14 = vsel %vm235_vm0, %v368_v4, %v360_v60  ;;  %519 = vrot.lane.b32.xlu0 %v518_v13, %s1896_s26  ;;  %v842_v28 = vpop.permute.xlu0 %841  ;;  %v1470_v29 = vpop.permute.xlu1 %1469 }
  0xa2   : > { %v670_v15 = vld [vmem:[%s1955_s24 + $0x31] sm:$0x1]  ;;  %v675_v16 = vrot.slane %v668_v11, 7  ;;  %v677_v17 = vrot.slane %v669_v12, 6  ;;  %v226_v18 = vld [vmem:[%s1955_s24] sm:$0x1]  ;;  %v371_v19 = vsel %vm238_vm1, %v370_v5, %v369_v14 }
  0xa3   : > { %v679_v20 = vrot.slane %v670_v15, 5  ;;  %v227_v21 = vld [vmem:[%s1955_s24 + $0x10] sm:$0x1]  ;;  %v228_v22 = vld [vmem:[%s1955_s24 + $0x20] sm:$0x1]  ;;  %v373_v23 = vsel %vm241_vm2, %v372_v10, %v371_v19 }
  0xa4   : > { %v676_v24 = vsel %vm235_vm0, %v675_v16, %v667_v6  ;;  %v229_v25 = vld [vmem:[%s1955_s24 + $0x30] sm:$0x1]  ;;  %v234_v26 = vrot.slane %v227_v21, 7  ;;  %v237_v27 = vrot.slane %v228_v22, 6  ;;  %374 = vrot.lane.b32.xlu1 %v373_v23, %s1897_s27  ;;  %844 = vst.msk [vmem:[#allocation2 + $0x10] sm:$0xf] %vm263_vm4, %v842_v28 }
  0xa5   : > { %v678_v30 = vsel %vm238_vm1, %v677_v17, %v676_v24  ;;  %v240_v31 = vrot.slane %v229_v25, 5  ;;  %1472 = vst.msk [vmem:[#allocation2 + $0x20] sm:$0xf] %vm320_vm8, %v1470_v29  ;;  %v1164_v36 = vpop.permute.xlu0 %1163  ;;  %v986_v37 = vpop.permute.xlu1 %985 }
  0xa6   : > { %v680_v32 = vsel %vm241_vm2, %v679_v20, %v678_v30  ;;  %v236_v33 = vsel %vm235_vm0, %v234_v26, %v226_v18  ;;  %1166 = vst.msk [vmem:[#allocation2 + $0x18] sm:$0xf] %vm301_vm6, %v1164_v36 }
  0xa7   : > { %682 = vst.msk [vmem:[#allocation2 + $0xc] sm:$0xf] %vm244_vm3, %v680_v32  ;;  %v239_v34 = vsel %vm238_vm1, %v237_v27, %v236_v33  ;;  %v1527_v33 = vld [vmem:[%s2634_s1] sm:$0xff] }
  0xa8   : > { %v242_v35 = vsel %vm241_vm2, %v240_v31, %v239_v34  ;;  %988 = vst.msk [vmem:[#allocation2 + $0x14] sm:$0xf] %vm263_vm4, %v986_v37 }
  0xa9   : > { %245 = vst.msk [vmem:[#allocation2] sm:$0xf] %vm244_vm3, %v242_v35  ;;  %v1488_v38 = vpop.permute.xlu0 %1487  ;;  %v1308_v40 = vpop.permute.xlu1 %1307 }
  0xaa   : > { %1490 = vst.msk [vmem:[#allocation2 + $0x20] sm:$0xf] %vm339_vm9, %v1488_v38 }
  0xab   : > { %1310 = vst.msk [vmem:[#allocation2 + $0x1c] sm:$0xf] %vm301_vm6, %v1308_v40 }
  0xad   : > { %v860_v41 = vpop.permute.xlu0 %859  ;;  %v538_v42 = vpop.permute.xlu1 %537 }
  0xae   : > { %862 = vst.msk [vmem:[#allocation2 + $0x10] sm:$0xf] %vm282_vm5, %v860_v41 }
  0xaf   : > { %540 = vst.msk [vmem:[#allocation2 + $0x8] sm:$0xf] %vm244_vm3, %v538_v42 }
  0xb1   : > { %v1182_v43 = vpop.permute.xlu0 %1181  ;;  %v1004_v44 = vpop.permute.xlu1 %1003 }
  0xb2   : > { %1184 = vst.msk [vmem:[#allocation2 + $0x18] sm:$0xf] %vm320_vm8, %v1182_v43 }
  0xb3   : > { %1006 = vst.msk [vmem:[#allocation2 + $0x14] sm:$0xf] %vm282_vm5, %v1004_v44 }
  0xb5   : > { %v1506_v45 = vpop.permute.xlu0 %1505  ;;  %v1326_v46 = vpop.permute.xlu1 %1325 }
  0xb6   : > { %1508 = vst.msk [vmem:[#allocation2 + $0x20] sm:$0xf] %vm358_vm10, %v1506_v45 }
  0xb7   : > { %1328 = vst.msk [vmem:[#allocation2 + $0x1c] sm:$0xf] %vm320_vm8, %v1326_v46 }
  0xb9   : > { %v698_v47 = vpop.permute.xlu0 %697  ;;  %v556_v48 = vpop.permute.xlu1 %555 }
  0xba   : > { %700 = vst.msk [vmem:[#allocation2 + $0xc] sm:$0xf] %vm263_vm4, %v698_v47  ;;  %558 = vst.msk [vmem:[#allocation2 + $0x8] sm:$0xf] %vm263_vm4, %v556_v48 }
  0xbd   : > { %v1022_v49 = vpop.permute.xlu0 %1021  ;;  %v878_v50 = vpop.permute.xlu1 %877 }
  0xbe   : > { %1024 = vst.msk [vmem:[#allocation2 + $0x14] sm:$0xf] %vm301_vm6, %v1022_v49  ;;  %880 = vst.msk [vmem:[#allocation2 + $0x10] sm:$0xf] %vm301_vm6, %v878_v50 }
  0xc1   : > { %v1344_v51 = vpop.permute.xlu0 %1343  ;;  %v1200_v52 = vpop.permute.xlu1 %1199 }
  0xc2   : > { %1346 = vst.msk [vmem:[#allocation2 + $0x1c] sm:$0xf] %vm339_vm9, %v1344_v51  ;;  %1202 = vst.msk [vmem:[#allocation2 + $0x18] sm:$0xf] %vm339_vm9, %v1200_v52 }
  0xc5   : > { %v1524_v53 = vpop.permute.xlu1 %1523  ;;  %v394_v54 = vpop.permute.xlu0 %393 }
  0xc6   : > { %1526 = vst.msk [vmem:[#allocation2 + $0x20] sm:$0xf] %vm377_vm11, %v1524_v53 }
  0xc7   : > { %396 = vst.msk [vmem:[#allocation2 + $0x4] sm:$0xf] %vm244_vm3, %v394_v54 }
  0xc9   : > { %v574_v55 = vpop.permute.xlu1 %573  ;;  %v716_v56 = vpop.permute.xlu0 %715 }
  0xca   : > { %576 = vst.msk [vmem:[#allocation2 + $0x8] sm:$0xf] %vm282_vm5, %v574_v55  ;;  %718 = vst.msk [vmem:[#allocation2 + $0xc] sm:$0xf] %vm282_vm5, %v716_v56 }
  0xcd   : > { %v896_v57 = vpop.permute.xlu1 %895  ;;  %v1040_v58 = vpop.permute.xlu0 %1039  ;;  %v1532_v59 = vld [vmem:[#allocation2 + $0x20] sm:$0xf] }
  0xce   : > { %898 = vst.msk [vmem:[#allocation2 + $0x10] sm:$0xf] %vm320_vm8, %v896_v57  ;;  %1042 = vst.msk [vmem:[#allocation2 + $0x14] sm:$0xf] %vm320_vm8, %v1040_v58  ;;  %1757 = vmatpush3.msk.msra.mxu0 %vm1537_vm12, %v1532_v59 }
  0xcf   : > { %1758 = vmatprep.subr.mxu0 %v1890_v39 }
  0xd1   : > { %v1218_v60 = vpop.permute.xlu1 %1217  ;;  %v1362_v61 = vpop.permute.xlu0 %1361 }
  0xd2   : > { %1220 = vst.msk [vmem:[#allocation2 + $0x18] sm:$0xf] %vm358_vm10, %v1218_v60  ;;  %1364 = vst.msk [vmem:[#allocation2 + $0x1c] sm:$0xf] %vm358_vm10, %v1362_v61 }
  0xd5   : > { %v412_v62 = vpop.permute.xlu0 %411  ;;  %v261_v63 = vpop.permute.xlu1 %260 }
  0xd6   : > { %414 = vst.msk [vmem:[#allocation2 + $0x4] sm:$0xf] %vm263_vm4, %v412_v62  ;;  %264 = vst.msk [vmem:[#allocation2] sm:$0xf] %vm263_vm4, %v261_v63 }
  0xd9   : > { %v734_v0 = vpop.permute.xlu0 %733  ;;  %v592_v1 = vpop.permute.xlu1 %591 }
  0xda   : > { %736 = vst.msk [vmem:[#allocation2 + $0xc] sm:$0xf] %vm301_vm6, %v734_v0  ;;  %594 = vst.msk [vmem:[#allocation2 + $0x8] sm:$0xf] %vm301_vm6, %v592_v1 }
  0xdd   : > { %v1058_v2 = vpop.permute.xlu0 %1057  ;;  %v914_v3 = vpop.permute.xlu1 %913 }
  0xde   : > { %1060 = vst.msk [vmem:[#allocation2 + $0x14] sm:$0xf] %vm339_vm9, %v1058_v2  ;;  %916 = vst.msk [vmem:[#allocation2 + $0x10] sm:$0xf] %vm339_vm9, %v914_v3 }
  0xe1   : > { %v1380_v4 = vpop.permute.xlu0 %1379  ;;  %v1236_v5 = vpop.permute.xlu1 %1235 }
  0xe2   : > { %1382 = vst.msk [vmem:[#allocation2 + $0x1c] sm:$0xf] %vm377_vm11, %v1380_v4  ;;  %1238 = vst.msk [vmem:[#allocation2 + $0x18] sm:$0xf] %vm377_vm11, %v1236_v5 }
  0xe5   : > { %v430_v6 = vpop.permute.xlu0 %429  ;;  %v280_v7 = vpop.permute.xlu1 %279 }
  0xe6   : > { %432 = vst.msk [vmem:[#allocation2 + $0x4] sm:$0xf] %vm282_vm5, %v430_v6  ;;  %283 = vst.msk [vmem:[#allocation2] sm:$0xf] %vm282_vm5, %v280_v7 }
  0xe9   : > { %v752_v8 = vpop.permute.xlu0 %751  ;;  %v610_v9 = vpop.permute.xlu1 %609  ;;  %v1531_v10 = vld [vmem:[#allocation2 + $0x18] sm:$0xff] }
  0xea   : > { %754 = vst.msk [vmem:[#allocation2 + $0xc] sm:$0xf] %vm320_vm8, %v752_v8  ;;  %612 = vst.msk [vmem:[#allocation2 + $0x8] sm:$0xf] %vm320_vm8, %v610_v9  ;;  %1759 = vmatpush3.msra.mxu0 %v1531_v10 }
  0xeb   : > { %1760 = vmatprep.subr.mxu0 %v1890_v39 }
  0xed   : > { %v1076_v11 = vpop.permute.xlu0 %1075  ;;  %v932_v12 = vpop.permute.xlu1 %931 }
  0xee   : > { %1078 = vst.msk [vmem:[#allocation2 + $0x14] sm:$0xf] %vm358_vm10, %v1076_v11  ;;  %934 = vst.msk [vmem:[#allocation2 + $0x10] sm:$0xf] %vm358_vm10, %v932_v12 }
  0xf1   : > { %v448_v13 = vpop.permute.xlu0 %447  ;;  %v299_v14 = vpop.permute.xlu1 %298 }
  0xf2   : > { %450 = vst.msk [vmem:[#allocation2 + $0x4] sm:$0xf] %vm301_vm6, %v448_v13  ;;  %302 = vst.msk [vmem:[#allocation2] sm:$0xf] %vm301_vm6, %v299_v14 }
  0xf5   : > { %v770_v15 = vpop.permute.xlu0 %769  ;;  %v628_v16 = vpop.permute.xlu1 %627 }
  0xf6   : > { %772 = vst.msk [vmem:[#allocation2 + $0xc] sm:$0xf] %vm339_vm9, %v770_v15  ;;  %630 = vst.msk [vmem:[#allocation2 + $0x8] sm:$0xf] %vm339_vm9, %v628_v16 }
  0xf9   : > { %v1094_v17 = vpop.permute.xlu0 %1093  ;;  %v950_v18 = vpop.permute.xlu1 %949 }
  0xfa   : > { %1096 = vst.msk [vmem:[#allocation2 + $0x14] sm:$0xf] %vm377_vm11, %v1094_v17  ;;  %952 = vst.msk [vmem:[#allocation2 + $0x10] sm:$0xf] %vm377_vm11, %v950_v18 }
  0xfd   : > { %v466_v19 = vpop.permute.xlu0 %465  ;;  %v318_v20 = vpop.permute.xlu1 %317 }
  0xfe   : > { %468 = vst.msk [vmem:[#allocation2 + $0x4] sm:$0xf] %vm320_vm8, %v466_v19  ;;  %321 = vst.msk [vmem:[#allocation2] sm:$0xf] %vm320_vm8, %v318_v20 }
 0x101   : > { %v788_v21 = vpop.permute.xlu0 %787  ;;  %v646_v22 = vpop.permute.xlu1 %645  ;;  %v1530_v23 = vld [vmem:[#allocation2 + $0x10] sm:$0xff] }
 0x102   : > { %790 = vst.msk [vmem:[#allocation2 + $0xc] sm:$0xf] %vm358_vm10, %v788_v21  ;;  %648 = vst.msk [vmem:[#allocation2 + $0x8] sm:$0xf] %vm358_vm10, %v646_v22  ;;  %1761 = vmatpush3.msra.mxu0 %v1530_v23 }
 0x103   : > { %1762 = vmatprep.subr.mxu0 %v1890_v39 }
 0x106   : > { %v484_v24 = vpop.permute.xlu0 %483 }
 0x107   : > { %486 = vst.msk [vmem:[#allocation2 + $0x4] sm:$0xf] %vm339_vm9, %v484_v24 }
 0x108   : > { %v337_v25 = vpop.permute.xlu1 %336 }
 0x109   : > { %340 = vst.msk [vmem:[#allocation2] sm:$0xf] %vm339_vm9, %v337_v25 }
 0x10b   : > { %v806_v26 = vpop.permute.xlu0 %805 }
 0x10c   : > { %808 = vst.msk [vmem:[#allocation2 + $0xc] sm:$0xf] %vm377_vm11, %v806_v26 }
 0x10d   : > { %v664_v27 = vpop.permute.xlu1 %663 }
 0x10e   : > { %666 = vst.msk [vmem:[#allocation2 + $0x8] sm:$0xf] %vm377_vm11, %v664_v27 }
 0x10f   : > { %v502_v28 = vpop.permute.xlu0 %501 }
 0x110   : > { %504 = vst.msk [vmem:[#allocation2 + $0x4] sm:$0xf] %vm358_vm10, %v502_v28 }
 0x112   : > { %v356_v29 = vpop.permute.xlu1 %355 }
 0x113   : > { %359 = vst.msk [vmem:[#allocation2] sm:$0xf] %vm358_vm10, %v356_v29  ;;  %v520_v30 = vpop.permute.xlu0 %519 }
 0x114   : > { %522 = vst.msk [vmem:[#allocation2 + $0x4] sm:$0xf] %vm377_vm11, %v520_v30 }
 0x115   : > { %v1529_v32 = vld [vmem:[#allocation2 + $0x8] sm:$0xff] }
 0x116   : > { %v375_v31 = vpop.permute.xlu1 %374  ;;  %1763 = vmatpush3.msra.mxu0 %v1529_v32 }
 0x117   : > { %378 = vst.msk [vmem:[#allocation2] sm:$0xf] %vm377_vm11, %v375_v31  ;;  %1764 = vmatprep.subr.mxu0 %v1890_v39 }
 0x11e   : > { %v1528_v34 = vld [vmem:[#allocation2] sm:$0xff] }
 0x11f   : > { %1765 = vmatpush3.msra.mxu0 %v1528_v34 }
 0x120   : > { %1767 = vmatmul.mubr.msk.f32.vlgmr.msra.gmra.mxu0 %vm1533_vm13, %v1527_v33 }
 0x1e0   : > { %v1607_v35 = vpop.f32.mrf.mxu0 }
 0x1e1   : > { %1611 = vadd.xlane.f32.xlu1 %v1607_v35  ;;  %v1615_v36 = vmul.f32 %v1607_v35, %v1607_v35 }
 0x1e2   : > { %v1768_v37 = vpop.f32.mrf.mxu0 }
 0x1e3   : > { %1616 = vadd.xlane.f32.xlu0 %v1615_v36 }
 0x26a   : > { %v1612_v39 = vpop.xlane.xlu1 %1611 }
 0x26b   : > { %1614 = vst.msk [vmem:[%s215_s5] sm:$0xff] %vm1613_vm14, %v1612_v39 }
 0x26c   : > { %v1617_v38 = vpop.xlane.xlu0 %1616 }
 0x26d   : > { %1618 = vst.msk [vmem:[%s223_s8] sm:$0xff] %vm1613_vm14, %v1617_v38 }
 0x26e PF: > { %s14_s16 = sadd.s32 1, %s1872_s16   ;;  %s2637_s12 = smov %s1864_s14 }
 0x26f   : > { %p11_p6 = scmp.ge.s32.totalorder %s14_s16, 6   ;;  %s2638_s13 = smov %s1868_s15 }
 0x270   : > { %s2639_s14 = smov %s2642_s17  ;;  %s2640_s15 = smov %s2646_s18 }
 0x271   :  { %13 = sbr.rel (!%p11_p6) target bundleno = 3 (0x3), region = 70 }

</bundles_post_ra>
